<compile_context>
chip_gen: v7x
topology: tpu7x:2x2x1
jax: 0.10.0
libtpu: 0.0.40
codegen_flags: <defaults>
</compile_context>

<pallas_src>
import functools

import jax
import jax.numpy as jnp
from jax.experimental import pallas as pl
from jax.experimental.pallas import tpu as pltpu

EMBED = 32                 # embed_dim
HEADS = 4                  # num_heads
HEAD_DIM = EMBED // HEADS
SEQ = 16                   # Q_len == K_len == V_len
BATCH = 8                  # number of independent sequences processed by one pallas_call

HI = jax.lax.Precision.HIGHEST


def _pick_num_steps(batch):
    """Grid steps: 1 on single-TensorCore chips (v5e/v6e) to minimize fixed per-step
    overhead, 2 on dual-TC chips (v4/v5p/v7x/unknown) so megacore splits the work."""
    if batch < 2 or batch % 2 != 0:
        return 1
    kind = ""
    try:
        kind = jax.devices()[0].device_kind.lower()
    except Exception:
        pass
    single_tc = ("lite" in kind) or ("v5e" in kind) or ("v6e" in kind)
    return 1 if single_tc else 2


def _self_attention_kernel(x_ref, pos_ref, w_ref, const_ref, out_ref, *, Bblk):
    """One grid step = Bblk sequences.

    x_ref     : (1, Bblk*3L, E)   per sequence: rows [V | K | Q]
    pos_ref   : (1, Bblk*L + Bblk, E)
                rows [i*L:(i+1)*L]       : column-broadcast positions, [q,e] = pos_i[q]
                rows [Bblk*L+i]          : row-form positions in lanes [0:L]
    w_ref     : (E, 4E)           [wv | wk | wq | wo]            (grid-invariant)
    const_ref : (8+H*L, E)        rows 0..4: wva,wka,wvr,wkr,bo; rows 8..: head mask
    out_ref   : (1, Bblk*L, E)
    """
    L, E, H = SEQ, EMBED, HEADS
    HL = H * L
    scale = 1.0 / (E ** 0.5)

    x = x_ref[0]                       # (Bblk*3L, E)
    pslab = pos_ref[0]                 # (Bblk*L + Bblk, E)
    W = w_ref[...]                     # (E, 4E)
    const = const_ref[...]             # (8+HL, E)

    wva = const[0:1, :]
    wka = const[1:2, :]
    wvr = const[2:3, :]
    wkr = const[3:4, :]
    bo = const[4:5, :]
    hmask = const[8:8 + HL, :]         # block-diagonal head mask (HL, E)
    wo = W[:, 3 * E:4 * E]             # (E, E)

    # All Bblk sequences' V/K/Q projections in ONE MXU push against the (32,128) slab.
    proj = jnp.dot(x, W, preferred_element_type=jnp.float32, precision=HI)  # (Bblk*3L, 4E)

    ROWSEC = Bblk * L
    merged_parts = []
    for i in range(Bblk):              # short unrolled loop; all slice bases 8-aligned
        base = i * 3 * L
        posQE = pslab[i * L:(i + 1) * L, :]                  # (L, E)  [q,e] = pos[q]
        pos_row = pslab[ROWSEC + i:ROWSEC + i + 1, 0:L]      # (1, L)  [k]   = pos[k]

        # Absolute-position terms.  (The torch code computes log(pos+1)/10 and immediately
        # overwrites it with the raw positions; that behavior is replicated.)
        Vx = proj[base + 0 * L:base + 1 * L, 0 * E:1 * E] + posQE * wva      # (L, E)
        Kx = proj[base + 1 * L:base + 2 * L, 1 * E:2 * E] + posQE * wka      # (L, E)
        Qx = proj[base + 2 * L:base + 3 * L, 2 * E:3 * E]                    # (L, E)

        # Relative distance matrix: clamp(|p_q - p_k|, 0, 5000) / 5000
        rel = jnp.clip(jnp.abs(posQE[:, 0:L] - pos_row), 0.0, 5000.0) * (1.0 / 5000.0)

        # Heads stacked along sublanes: row h*L+q holds (head h, query q).
        Qbd = jnp.tile(Qx, (H, 1)) * hmask                   # (HL, E)
        energy = jax.lax.dot_general(Qbd, Kx, (((1,), (1,)), ((), ())),
                                     preferred_element_type=jnp.float32,
                                     precision=HI)           # (HL, L)

        # relative-position key bias: rel[q,k] * (Q[q,h,:] . wkr[h,:])  (VPU/XLU only)
        qdot = jnp.sum(Qbd * wkr, axis=1, keepdims=True)     # (HL, 1)
        rel_stk = jnp.tile(rel, (H, 1))                      # (HL, L)
        energy = (energy + qdot * rel_stk) * scale

        # Row softmax over k (rows are (head, query) pairs).
        m = jnp.max(energy, axis=1, keepdims=True)
        p = jnp.exp(energy - m)
        den = jnp.sum(p, axis=1, keepdims=True)
        attn = p * pl.reciprocal(den, approx=True)           # (HL, L)

        # attention @ V for all heads in one push; relative-V term; masked head merge.
        O = jnp.dot(attn, Vx, preferred_element_type=jnp.float32, precision=HI)  # (HL, E)
        s = jnp.sum(attn * rel_stk, axis=1, keepdims=True)                        # (HL, 1)
        O = (O + s * wvr) * hmask
        m_i = O[0:L, :]
        for h in range(1, H):            # disjoint column support -> exact merge
            m_i = m_i + O[h * L:(h + 1) * L, :]
        merged_parts.append(m_i)                                                   # (L, E)

    merged = merged_parts[0] if Bblk == 1 else jnp.concatenate(merged_parts, axis=0)

    # fc_out fused across the block + single lane-dense burst store.
    out_ref[0] = (jnp.dot(merged, wo, preferred_element_type=jnp.float32,
                          precision=HI) + bo)


def self_attention_pallas_batched(V, K, Q, position, params, num_steps=None):
    """V, K, Q: (B, L, E); position: (B, L).  Runs the module on B independent sequences."""
    B, L, E = Q.shape
    assert L == SEQ and E == EMBED
    if num_steps is None:
        num_steps = _pick_num_steps(B)
    assert B % num_steps == 0
    Bblk = B // num_steps
    HL = HEADS * L

    # Input slab: per step, Bblk sequences' [V|K|Q] stacked along sublanes.
    x = jnp.concatenate([V, K, Q], axis=1)                            # (B, 3L, E)
    x = x.reshape(num_steps, Bblk * 3 * L, E)

    # Packed positions: column-broadcast section (aligned per-sequence L-row blocks)
    # followed by the row-form section (one row per sequence, lanes [0:L]).
    posf = position.astype(jnp.float32).reshape(num_steps, Bblk, L)
    col_sec = jnp.broadcast_to(posf.reshape(num_steps, Bblk * L, 1),
                               (num_steps, Bblk * L, E))
    row_sec = jnp.pad(posf, ((0, 0), (0, 0), (0, E - L)))
    pos_slab = jnp.concatenate([col_sec, row_sec], axis=1)            # (S, Bblk*(L+1), E)

    # Grid-invariant weights: lane-dense (32,128) matmul slab + small-weight/mask slab.
    w_slab = jnp.concatenate([params["wv"], params["wk"],
                              params["wq"], params["wo"]], axis=1)    # (E, 4E)
    aux = jnp.concatenate([params["wva"], params["wka"], params["wvr"],
                           params["wkr"], params["bo"],
                           jnp.zeros((3, E), jnp.float32)], axis=0)   # (8, E)
    row_h = jnp.arange(HL, dtype=jnp.int32)[:, None] // L
    col_h = jnp.arange(E, dtype=jnp.int32)[None, :] // HEAD_DIM
    hmask = (row_h == col_h).astype(jnp.float32)                      # (HL, E)
    const = jnp.concatenate([aux, hmask], axis=0)                     # (8+HL, E)

    kernel = functools.partial(_self_attention_kernel, Bblk=Bblk)
    out = pl.pallas_call(
        kernel,
        grid=(num_steps,),
        out_shape=jax.ShapeDtypeStruct((num_steps, Bblk * L, E), jnp.float32),
        in_specs=[
            pl.BlockSpec((1, Bblk * 3 * L, E), lambda s: (s, 0, 0)),   # V|K|Q slab
            pl.BlockSpec((1, Bblk * (L + 1), E), lambda s: (s, 0, 0)), # packed positions
            pl.BlockSpec((E, 4 * E), lambda s: (0, 0)),                # weights (invariant)
            pl.BlockSpec((8 + HL, E), lambda s: (0, 0)),               # aux+mask (invariant)
        ],
        out_specs=pl.BlockSpec((1, Bblk * L, E), lambda s: (s, 0, 0)),
        compiler_params=pltpu.CompilerParams(
            dimension_semantics=("parallel",)),
    )(x, pos_slab, w_slab, const)
    # torch forward returns (squeeze(out), None) per sequence.
    return out.reshape(B, L, E), None


def init_params(key):
    """Deterministic synthetic init mirroring the module's parameter shapes."""
    ks = jax.random.split(key, 9)
    std_e = (2.0 / EMBED) ** 0.5    # kaiming_normal_, fan_in = embed_dim
    std_1 = (2.0 / 1.0) ** 0.5      # kaiming_normal_, fan_in = 1
    bound = 1.0 / (EMBED ** 0.5)
    return {
        # (in, out) = transposed nn.Linear weights
        "wq": jax.random.normal(ks[0], (EMBED, EMBED), jnp.float32) * std_e,
        "wk": jax.random.normal(ks[1], (EMBED, EMBED), jnp.float32) * std_e,
        "wv": jax.random.normal(ks[2], (EMBED, EMBED), jnp.float32) * std_e,
        # 1 -> embed_dim linears, stored as (1, E)
        "wva": jax.random.normal(ks[3], (1, EMBED), jnp.float32) * std_1,
        "wka": jax.random.normal(ks[4], (1, EMBED), jnp.float32) * std_1,
        "wvr": jax.random.normal(ks[5], (1, EMBED), jnp.float32) * std_1,
        "wkr": jax.random.normal(ks[6], (1, EMBED), jnp.float32) * std_1,
        # fc_out: weight (E,E) transposed, bias (1,E)
        "wo": jax.random.normal(ks[7], (EMBED, EMBED), jnp.float32) * std_e,
        "bo": jax.random.uniform(ks[8], (1, EMBED), jnp.float32,
                                 minval=-bound, maxval=bound),
    }


def ref_forward(V, K, Q, position, p):
    """Pure-JAX transcription of the torch forward for ONE sequence (materializes the full
    relative tensors, exactly like the module).  All matmuls at HIGHEST precision."""
    L = Q.shape[0]
    pos = position[0].astype(jnp.float32)
    Vx = jnp.dot(V, p["wv"], precision=HI)
    Kx = jnp.dot(K, p["wk"], precision=HI)
    Qx = jnp.dot(Q, p["wq"], precision=HI)
    Vh = Vx.reshape(L, HEADS, HEAD_DIM)
    Kh = Kx.reshape(L, HEADS, HEAD_DIM)
    Qh = Qx.reshape(L, HEADS, HEAD_DIM)
    ap = pos.reshape(L, 1)
    Vh = Vh + (ap * p["wva"][0]).reshape(L, HEADS, HEAD_DIM)
    Kh = Kh + (ap * p["wka"][0]).reshape(L, HEADS, HEAD_DIM)
    energy = jnp.einsum("qhd,khd->hqk", Qh, Kh, precision=HI)
    rel = jnp.clip(jnp.abs(pos.reshape(L, 1) - pos.reshape(1, L)), 0.0, 5000.0) / 5000.0
    relV = (rel[..., None] * p["wvr"][0]).reshape(L, L, HEADS, HEAD_DIM).transpose(2, 0, 1, 3)
    relK = (rel[..., None] * p["wkr"][0]).reshape(L, L, HEADS, HEAD_DIM).transpose(2, 0, 1, 3)
    energy = energy + jnp.einsum("qhd,hqkd->hqk", Qh, relK, precision=HI)
    attn = jax.nn.softmax(energy / (EMBED ** 0.5), axis=2)
    out = jnp.einsum("hqk,khd->qhd", attn, Vh, precision=HI)
    out = out + (attn[..., None] * relV).sum(axis=2).transpose(1, 0, 2)
    out = jnp.dot(out.reshape(L, EMBED), p["wo"], precision=HI) + p["bo"][0]
    return out


if __name__ == "__main__":
    key = jax.random.PRNGKey(0)
    k_v, k_k, k_q = jax.random.split(key, 3)

    V = jax.random.normal(k_v, (BATCH, SEQ, EMBED), jnp.float32)
    K = jax.random.normal(k_k, (BATCH, SEQ, EMBED), jnp.float32)
    Q = jax.random.normal(k_q, (BATCH, SEQ, EMBED), jnp.float32)
    # genomic-style monotone positions; spacing chosen so some pairwise distances exceed
    # 5000 and the clamp is exercised; each sequence gets a different absolute offset.
    base = jnp.arange(SEQ, dtype=jnp.float32) * 500.0
    position = base[None, :] + 250.0 * jnp.arange(BATCH, dtype=jnp.float32)[:, None]

    params = init_params(jax.random.PRNGKey(42))

    out, _ = self_attention_pallas_batched(V, K, Q, position, params)
    out = jax.block_until_ready(out)

    # Reference: per-sequence transcription of the torch forward (position passed as (1, L)
    # so that `position = position[0]` matches the module).
    ref = jax.vmap(lambda v, k, q, pos: ref_forward(v, k, q, pos[None, :], params))(
        V, K, Q, position)

    err = jnp.max(jnp.abs(out - ref))
    rel_err = float(err / jnp.max(jnp.abs(ref)))
    assert out.shape == (BATCH, SEQ, EMBED)
    # Scale-aware check (outputs are O(1e4) because raw genomic positions feed K/V); the
    # 2e-3 margin also covers the EUP approximate reciprocal used for the softmax denom.
    assert rel_err < 2e-3, f"relative mismatch vs reference: {rel_err}"
    print("KERNEL_OK")
</pallas_src>

<mosaic_0001>
module attributes {stable_mosaic.version = 11 : i64} {
  func.func @_self_attention_kernel(%arg0: i32, %arg1: memref<1x192x32xf32, #tpu.memory_space<vmem>>, %arg2: memref<1x68x32xf32, #tpu.memory_space<vmem>>, %arg3: memref<32x128xf32, #tpu.memory_space<vmem>>, %arg4: memref<72x32xf32, #tpu.memory_space<vmem>>, %arg5: memref<1x64x32xf32, #tpu.memory_space<vmem>>) attributes {dimension_semantics = [#tpu.dimension_semantics<parallel>], iteration_bounds = array<i64: 2>, scalar_prefetch = 0 : i64, scratch_operands = 0 : i64, tpu.core_type = #tpu.core_type<tc>, window_params = [{transform_indices = @transform_0, window_bounds = array<i64: 1, 192, 32>}, {transform_indices = @transform_1, window_bounds = array<i64: 1, 68, 32>}, {pipeline_mode = #tpu.pipeline_mode<synchronous>, transform_indices = @transform_2, window_bounds = array<i64: 32, 128>}, {pipeline_mode = #tpu.pipeline_mode<synchronous>, transform_indices = @transform_3, window_bounds = array<i64: 72, 32>}, {transform_indices = @transform_4, window_bounds = array<i64: 1, 64, 32>}]} {
    %c0 = arith.constant 0 : index
    %c0_0 = arith.constant 0 : index
    %c0_1 = arith.constant 0 : index
    %0 = vector.load %arg1[%c0, %c0_0, %c0_1] : memref<1x192x32xf32, #tpu.memory_space<vmem>>, vector<1x192x32xf32>
    %1 = vector.shape_cast %0 : vector<1x192x32xf32> to vector<192x32xf32>
    %c0_2 = arith.constant 0 : index
    %c0_3 = arith.constant 0 : index
    %c0_4 = arith.constant 0 : index
    %2 = vector.load %arg2[%c0_2, %c0_3, %c0_4] : memref<1x68x32xf32, #tpu.memory_space<vmem>>, vector<1x68x32xf32>
    %3 = vector.shape_cast %2 : vector<1x68x32xf32> to vector<68x32xf32>
    %c0_5 = arith.constant 0 : index
    %c0_6 = arith.constant 0 : index
    %4 = vector.load %arg3[%c0_5, %c0_6] : memref<32x128xf32, #tpu.memory_space<vmem>>, vector<32x128xf32>
    %c0_7 = arith.constant 0 : index
    %c0_8 = arith.constant 0 : index
    %5 = vector.load %arg4[%c0_7, %c0_8] : memref<72x32xf32, #tpu.memory_space<vmem>>, vector<72x32xf32>
    %6 = vector.extract_strided_slice %5 {offsets = [0, 0], sizes = [1, 32], strides = [1, 1]} : vector<72x32xf32> to vector<1x32xf32>
    %7 = vector.extract_strided_slice %5 {offsets = [1, 0], sizes = [1, 32], strides = [1, 1]} : vector<72x32xf32> to vector<1x32xf32>
    %8 = vector.extract_strided_slice %5 {offsets = [2, 0], sizes = [1, 32], strides = [1, 1]} : vector<72x32xf32> to vector<1x32xf32>
    %9 = vector.extract_strided_slice %5 {offsets = [3, 0], sizes = [1, 32], strides = [1, 1]} : vector<72x32xf32> to vector<1x32xf32>
    %10 = vector.extract_strided_slice %5 {offsets = [4, 0], sizes = [1, 32], strides = [1, 1]} : vector<72x32xf32> to vector<1x32xf32>
    %11 = vector.extract_strided_slice %5 {offsets = [8, 0], sizes = [64, 32], strides = [1, 1]} : vector<72x32xf32> to vector<64x32xf32>
    %12 = vector.extract_strided_slice %4 {offsets = [0, 96], sizes = [32, 32], strides = [1, 1]} : vector<32x128xf32> to vector<32x32xf32>
    %cst = arith.constant dense<0.000000e+00> : vector<192x128xf32>
    %13 = tpu.matmul %1, %4, %cst {dimension_numbers = #tpu.dot_dimension_numbers<[1], [0], [0], [1], [0, 0, 1, 1], [], []>, precision = #tpu.contract_precision<fp32>} : vector<192x32xf32>, vector<32x128xf32>, vector<192x128xf32> -> vector<192x128xf32>
    %14 = vector.extract_strided_slice %3 {offsets = [0, 0], sizes = [16, 32], strides = [1, 1]} : vector<68x32xf32> to vector<16x32xf32>
    %15 = vector.extract_strided_slice %3 {offsets = [64, 0], sizes = [1, 16], strides = [1, 1]} : vector<68x32xf32> to vector<1x16xf32>
    %16 = vector.extract_strided_slice %13 {offsets = [0, 0], sizes = [16, 32], strides = [1, 1]} : vector<192x128xf32> to vector<16x32xf32>
    %17 = vector.broadcast %6 : vector<1x32xf32> to vector<16x32xf32>
    %18 = arith.mulf %14, %17 : vector<16x32xf32>
    %19 = arith.addf %16, %18 : vector<16x32xf32>
    %20 = vector.extract_strided_slice %13 {offsets = [16, 32], sizes = [16, 32], strides = [1, 1]} : vector<192x128xf32> to vector<16x32xf32>
    %21 = vector.broadcast %7 : vector<1x32xf32> to vector<16x32xf32>
    %22 = arith.mulf %14, %21 : vector<16x32xf32>
    %23 = arith.addf %20, %22 : vector<16x32xf32>
    %24 = vector.extract_strided_slice %13 {offsets = [32, 64], sizes = [16, 32], strides = [1, 1]} : vector<192x128xf32> to vector<16x32xf32>
    %25 = vector.extract_strided_slice %14 {offsets = [0, 0], sizes = [16, 16], strides = [1, 1]} : vector<16x32xf32> to vector<16x16xf32>
    %26 = vector.broadcast %15 : vector<1x16xf32> to vector<16x16xf32>
    %27 = arith.subf %25, %26 : vector<16x16xf32>
    %28 = math.absf %27 : vector<16x16xf32>
    %cst_9 = arith.constant 0.000000e+00 : f32
    %cst_10 = arith.constant 5.000000e+03 : f32
    %29 = vector.broadcast %cst_9 : f32 to vector<16x16xf32>
    %30 = arith.maximumf %29, %28 : vector<16x16xf32>
    %31 = vector.broadcast %cst_10 : f32 to vector<16x16xf32>
    %32 = arith.minimumf %31, %30 : vector<16x16xf32>
    %cst_11 = arith.constant 2.000000e-04 : f32
    %33 = vector.broadcast %cst_11 : f32 to vector<16x16xf32>
    %34 = arith.mulf %32, %33 : vector<16x16xf32>
    %35 = tpu.concatenate %24, %24, %24, %24 in 0 : vector<16x32xf32>, vector<16x32xf32>, vector<16x32xf32>, vector<16x32xf32> -> vector<64x32xf32>
    %36 = arith.mulf %35, %11 : vector<64x32xf32>
    %cst_12 = arith.constant dense<0.000000e+00> : vector<64x16xf32>
    %37 = tpu.matmul %36, %23, %cst_12 {dimension_numbers = #tpu.dot_dimension_numbers<[1], [1], [0], [0], [0, 0, 1, 0], [], []>, precision = #tpu.contract_precision<fp32>} : vector<64x32xf32>, vector<16x32xf32>, vector<64x16xf32> -> vector<64x16xf32>
    %38 = vector.broadcast %9 : vector<1x32xf32> to vector<64x32xf32>
    %39 = arith.mulf %36, %38 : vector<64x32xf32>
    %cst_13 = arith.constant dense<0.000000e+00> : vector<64xf32>
    %40 = vector.multi_reduction <add>, %39, %cst_13 [1] : vector<64x32xf32> to vector<64xf32>
    %41 = vector.shape_cast %40 : vector<64xf32> to vector<64x1xf32>
    %42 = tpu.concatenate %34, %34, %34, %34 in 0 : vector<16x16xf32>, vector<16x16xf32>, vector<16x16xf32>, vector<16x16xf32> -> vector<64x16xf32>
    %43 = vector.broadcast %41 : vector<64x1xf32> to vector<64x16xf32>
    %44 = arith.mulf %43, %42 : vector<64x16xf32>
    %45 = arith.addf %37, %44 : vector<64x16xf32>
    %cst_14 = arith.constant 0.176776692 : f32
    %46 = vector.broadcast %cst_14 : f32 to vector<64x16xf32>
    %47 = arith.mulf %45, %46 : vector<64x16xf32>
    %cst_15 = arith.constant dense<0xFF800000> : vector<64xf32>
    %48 = vector.multi_reduction <maximumf>, %47, %cst_15 [1] : vector<64x16xf32> to vector<64xf32>
    %49 = vector.shape_cast %48 : vector<64xf32> to vector<64x1xf32>
    %50 = vector.broadcast %49 : vector<64x1xf32> to vector<64x16xf32>
    %51 = arith.subf %47, %50 : vector<64x16xf32>
    %52 = math.exp %51 : vector<64x16xf32>
    %cst_16 = arith.constant dense<0.000000e+00> : vector<64xf32>
    %53 = vector.multi_reduction <add>, %52, %cst_16 [1] : vector<64x16xf32> to vector<64xf32>
    %54 = vector.shape_cast %53 : vector<64xf32> to vector<64x1xf32>
    %55 = tpu.reciprocal %54 {approx = true} : vector<64x1xf32> -> vector<64x1xf32>
    %56 = vector.broadcast %55 : vector<64x1xf32> to vector<64x16xf32>
    %57 = arith.mulf %52, %56 : vector<64x16xf32>
    %cst_17 = arith.constant dense<0.000000e+00> : vector<64x32xf32>
    %58 = tpu.matmul %57, %19, %cst_17 {dimension_numbers = #tpu.dot_dimension_numbers<[1], [0], [0], [1], [0, 0, 1, 1], [], []>, precision = #tpu.contract_precision<fp32>} : vector<64x16xf32>, vector<16x32xf32>, vector<64x32xf32> -> vector<64x32xf32>
    %59 = arith.mulf %57, %42 : vector<64x16xf32>
    %cst_18 = arith.constant dense<0.000000e+00> : vector<64xf32>
    %60 = vector.multi_reduction <add>, %59, %cst_18 [1] : vector<64x16xf32> to vector<64xf32>
    %61 = vector.shape_cast %60 : vector<64xf32> to vector<64x1xf32>
    %62 = vector.broadcast %61 : vector<64x1xf32> to vector<64x32xf32>
    %63 = vector.broadcast %8 : vector<1x32xf32> to vector<64x32xf32>
    %64 = arith.mulf %62, %63 : vector<64x32xf32>
    %65 = arith.addf %58, %64 : vector<64x32xf32>
    %66 = arith.mulf %65, %11 : vector<64x32xf32>
    %67 = vector.extract_strided_slice %66 {offsets = [0, 0], sizes = [16, 32], strides = [1, 1]} : vector<64x32xf32> to vector<16x32xf32>
    %68 = vector.extract_strided_slice %66 {offsets = [16, 0], sizes = [16, 32], strides = [1, 1]} : vector<64x32xf32> to vector<16x32xf32>
    %69 = arith.addf %67, %68 : vector<16x32xf32>
    %70 = vector.extract_strided_slice %66 {offsets = [32, 0], sizes = [16, 32], strides = [1, 1]} : vector<64x32xf32> to vector<16x32xf32>
    %71 = arith.addf %69, %70 : vector<16x32xf32>
    %72 = vector.extract_strided_slice %66 {offsets = [48, 0], sizes = [16, 32], strides = [1, 1]} : vector<64x32xf32> to vector<16x32xf32>
    %73 = arith.addf %71, %72 : vector<16x32xf32>
    %74 = vector.extract_strided_slice %3 {offsets = [16, 0], sizes = [16, 32], strides = [1, 1]} : vector<68x32xf32> to vector<16x32xf32>
    %75 = vector.extract_strided_slice %3 {offsets = [65, 0], sizes = [1, 16], strides = [1, 1]} : vector<68x32xf32> to vector<1x16xf32>
    %76 = vector.extract_strided_slice %13 {offsets = [48, 0], sizes = [16, 32], strides = [1, 1]} : vector<192x128xf32> to vector<16x32xf32>
    %77 = vector.broadcast %6 : vector<1x32xf32> to vector<16x32xf32>
    %78 = arith.mulf %74, %77 : vector<16x32xf32>
    %79 = arith.addf %76, %78 : vector<16x32xf32>
    %80 = vector.extract_strided_slice %13 {offsets = [64, 32], sizes = [16, 32], strides = [1, 1]} : vector<192x128xf32> to vector<16x32xf32>
    %81 = vector.broadcast %7 : vector<1x32xf32> to vector<16x32xf32>
    %82 = arith.mulf %74, %81 : vector<16x32xf32>
    %83 = arith.addf %80, %82 : vector<16x32xf32>
    %84 = vector.extract_strided_slice %13 {offsets = [80, 64], sizes = [16, 32], strides = [1, 1]} : vector<192x128xf32> to vector<16x32xf32>
    %85 = vector.extract_strided_slice %74 {offsets = [0, 0], sizes = [16, 16], strides = [1, 1]} : vector<16x32xf32> to vector<16x16xf32>
    %86 = vector.broadcast %75 : vector<1x16xf32> to vector<16x16xf32>
    %87 = arith.subf %85, %86 : vector<16x16xf32>
    %88 = math.absf %87 : vector<16x16xf32>
    %cst_19 = arith.constant 0.000000e+00 : f32
    %cst_20 = arith.constant 5.000000e+03 : f32
    %89 = vector.broadcast %cst_19 : f32 to vector<16x16xf32>
    %90 = arith.maximumf %89, %88 : vector<16x16xf32>
    %91 = vector.broadcast %cst_20 : f32 to vector<16x16xf32>
    %92 = arith.minimumf %91, %90 : vector<16x16xf32>
    %cst_21 = arith.constant 2.000000e-04 : f32
    %93 = vector.broadcast %cst_21 : f32 to vector<16x16xf32>
    %94 = arith.mulf %92, %93 : vector<16x16xf32>
    %95 = tpu.concatenate %84, %84, %84, %84 in 0 : vector<16x32xf32>, vector<16x32xf32>, vector<16x32xf32>, vector<16x32xf32> -> vector<64x32xf32>
    %96 = arith.mulf %95, %11 : vector<64x32xf32>
    %cst_22 = arith.constant dense<0.000000e+00> : vector<64x16xf32>
    %97 = tpu.matmul %96, %83, %cst_22 {dimension_numbers = #tpu.dot_dimension_numbers<[1], [1], [0], [0], [0, 0, 1, 0], [], []>, precision = #tpu.contract_precision<fp32>} : vector<64x32xf32>, vector<16x32xf32>, vector<64x16xf32> -> vector<64x16xf32>
    %98 = vector.broadcast %9 : vector<1x32xf32> to vector<64x32xf32>
    %99 = arith.mulf %96, %98 : vector<64x32xf32>
    %cst_23 = arith.constant dense<0.000000e+00> : vector<64xf32>
    %100 = vector.multi_reduction <add>, %99, %cst_23 [1] : vector<64x32xf32> to vector<64xf32>
    %101 = vector.shape_cast %100 : vector<64xf32> to vector<64x1xf32>
    %102 = tpu.concatenate %94, %94, %94, %94 in 0 : vector<16x16xf32>, vector<16x16xf32>, vector<16x16xf32>, vector<16x16xf32> -> vector<64x16xf32>
    %103 = vector.broadcast %101 : vector<64x1xf32> to vector<64x16xf32>
    %104 = arith.mulf %103, %102 : vector<64x16xf32>
    %105 = arith.addf %97, %104 : vector<64x16xf32>
    %cst_24 = arith.constant 0.176776692 : f32
    %106 = vector.broadcast %cst_24 : f32 to vector<64x16xf32>
    %107 = arith.mulf %105, %106 : vector<64x16xf32>
    %cst_25 = arith.constant dense<0xFF800000> : vector<64xf32>
    %108 = vector.multi_reduction <maximumf>, %107, %cst_25 [1] : vector<64x16xf32> to vector<64xf32>
    %109 = vector.shape_cast %108 : vector<64xf32> to vector<64x1xf32>
    %110 = vector.broadcast %109 : vector<64x1xf32> to vector<64x16xf32>
    %111 = arith.subf %107, %110 : vector<64x16xf32>
    %112 = math.exp %111 : vector<64x16xf32>
    %cst_26 = arith.constant dense<0.000000e+00> : vector<64xf32>
    %113 = vector.multi_reduction <add>, %112, %cst_26 [1] : vector<64x16xf32> to vector<64xf32>
    %114 = vector.shape_cast %113 : vector<64xf32> to vector<64x1xf32>
    %115 = tpu.reciprocal %114 {approx = true} : vector<64x1xf32> -> vector<64x1xf32>
    %116 = vector.broadcast %115 : vector<64x1xf32> to vector<64x16xf32>
    %117 = arith.mulf %112, %116 : vector<64x16xf32>
    %cst_27 = arith.constant dense<0.000000e+00> : vector<64x32xf32>
    %118 = tpu.matmul %117, %79, %cst_27 {dimension_numbers = #tpu.dot_dimension_numbers<[1], [0], [0], [1], [0, 0, 1, 1], [], []>, precision = #tpu.contract_precision<fp32>} : vector<64x16xf32>, vector<16x32xf32>, vector<64x32xf32> -> vector<64x32xf32>
    %119 = arith.mulf %117, %102 : vector<64x16xf32>
    %cst_28 = arith.constant dense<0.000000e+00> : vector<64xf32>
    %120 = vector.multi_reduction <add>, %119, %cst_28 [1] : vector<64x16xf32> to vector<64xf32>
    %121 = vector.shape_cast %120 : vector<64xf32> to vector<64x1xf32>
    %122 = vector.broadcast %121 : vector<64x1xf32> to vector<64x32xf32>
    %123 = vector.broadcast %8 : vector<1x32xf32> to vector<64x32xf32>
    %124 = arith.mulf %122, %123 : vector<64x32xf32>
    %125 = arith.addf %118, %124 : vector<64x32xf32>
    %126 = arith.mulf %125, %11 : vector<64x32xf32>
    %127 = vector.extract_strided_slice %126 {offsets = [0, 0], sizes = [16, 32], strides = [1, 1]} : vector<64x32xf32> to vector<16x32xf32>
    %128 = vector.extract_strided_slice %126 {offsets = [16, 0], sizes = [16, 32], strides = [1, 1]} : vector<64x32xf32> to vector<16x32xf32>
    %129 = arith.addf %127, %128 : vector<16x32xf32>
    %130 = vector.extract_strided_slice %126 {offsets = [32, 0], sizes = [16, 32], strides = [1, 1]} : vector<64x32xf32> to vector<16x32xf32>
    %131 = arith.addf %129, %130 : vector<16x32xf32>
    %132 = vector.extract_strided_slice %126 {offsets = [48, 0], sizes = [16, 32], strides = [1, 1]} : vector<64x32xf32> to vector<16x32xf32>
    %133 = arith.addf %131, %132 : vector<16x32xf32>
    %134 = vector.extract_strided_slice %3 {offsets = [32, 0], sizes = [16, 32], strides = [1, 1]} : vector<68x32xf32> to vector<16x32xf32>
    %135 = vector.extract_strided_slice %3 {offsets = [66, 0], sizes = [1, 16], strides = [1, 1]} : vector<68x32xf32> to vector<1x16xf32>
    %136 = vector.extract_strided_slice %13 {offsets = [96, 0], sizes = [16, 32], strides = [1, 1]} : vector<192x128xf32> to vector<16x32xf32>
    %137 = vector.broadcast %6 : vector<1x32xf32> to vector<16x32xf32>
    %138 = arith.mulf %134, %137 : vector<16x32xf32>
    %139 = arith.addf %136, %138 : vector<16x32xf32>
    %140 = vector.extract_strided_slice %13 {offsets = [112, 32], sizes = [16, 32], strides = [1, 1]} : vector<192x128xf32> to vector<16x32xf32>
    %141 = vector.broadcast %7 : vector<1x32xf32> to vector<16x32xf32>
    %142 = arith.mulf %134, %141 : vector<16x32xf32>
    %143 = arith.addf %140, %142 : vector<16x32xf32>
    %144 = vector.extract_strided_slice %13 {offsets = [128, 64], sizes = [16, 32], strides = [1, 1]} : vector<192x128xf32> to vector<16x32xf32>
    %145 = vector.extract_strided_slice %134 {offsets = [0, 0], sizes = [16, 16], strides = [1, 1]} : vector<16x32xf32> to vector<16x16xf32>
    %146 = vector.broadcast %135 : vector<1x16xf32> to vector<16x16xf32>
    %147 = arith.subf %145, %146 : vector<16x16xf32>
    %148 = math.absf %147 : vector<16x16xf32>
    %cst_29 = arith.constant 0.000000e+00 : f32
    %cst_30 = arith.constant 5.000000e+03 : f32
    %149 = vector.broadcast %cst_29 : f32 to vector<16x16xf32>
    %150 = arith.maximumf %149, %148 : vector<16x16xf32>
    %151 = vector.broadcast %cst_30 : f32 to vector<16x16xf32>
    %152 = arith.minimumf %151, %150 : vector<16x16xf32>
    %cst_31 = arith.constant 2.000000e-04 : f32
    %153 = vector.broadcast %cst_31 : f32 to vector<16x16xf32>
    %154 = arith.mulf %152, %153 : vector<16x16xf32>
    %155 = tpu.concatenate %144, %144, %144, %144 in 0 : vector<16x32xf32>, vector<16x32xf32>, vector<16x32xf32>, vector<16x32xf32> -> vector<64x32xf32>
    %156 = arith.mulf %155, %11 : vector<64x32xf32>
    %cst_32 = arith.constant dense<0.000000e+00> : vector<64x16xf32>
    %157 = tpu.matmul %156, %143, %cst_32 {dimension_numbers = #tpu.dot_dimension_numbers<[1], [1], [0], [0], [0, 0, 1, 0], [], []>, precision = #tpu.contract_precision<fp32>} : vector<64x32xf32>, vector<16x32xf32>, vector<64x16xf32> -> vector<64x16xf32>
    %158 = vector.broadcast %9 : vector<1x32xf32> to vector<64x32xf32>
    %159 = arith.mulf %156, %158 : vector<64x32xf32>
    %cst_33 = arith.constant dense<0.000000e+00> : vector<64xf32>
    %160 = vector.multi_reduction <add>, %159, %cst_33 [1] : vector<64x32xf32> to vector<64xf32>
    %161 = vector.shape_cast %160 : vector<64xf32> to vector<64x1xf32>
    %162 = tpu.concatenate %154, %154, %154, %154 in 0 : vector<16x16xf32>, vector<16x16xf32>, vector<16x16xf32>, vector<16x16xf32> -> vector<64x16xf32>
    %163 = vector.broadcast %161 : vector<64x1xf32> to vector<64x16xf32>
    %164 = arith.mulf %163, %162 : vector<64x16xf32>
    %165 = arith.addf %157, %164 : vector<64x16xf32>
    %cst_34 = arith.constant 0.176776692 : f32
    %166 = vector.broadcast %cst_34 : f32 to vector<64x16xf32>
    %167 = arith.mulf %165, %166 : vector<64x16xf32>
    %cst_35 = arith.constant dense<0xFF800000> : vector<64xf32>
    %168 = vector.multi_reduction <maximumf>, %167, %cst_35 [1] : vector<64x16xf32> to vector<64xf32>
    %169 = vector.shape_cast %168 : vector<64xf32> to vector<64x1xf32>
    %170 = vector.broadcast %169 : vector<64x1xf32> to vector<64x16xf32>
    %171 = arith.subf %167, %170 : vector<64x16xf32>
    %172 = math.exp %171 : vector<64x16xf32>
    %cst_36 = arith.constant dense<0.000000e+00> : vector<64xf32>
    %173 = vector.multi_reduction <add>, %172, %cst_36 [1] : vector<64x16xf32> to vector<64xf32>
    %174 = vector.shape_cast %173 : vector<64xf32> to vector<64x1xf32>
    %175 = tpu.reciprocal %174 {approx = true} : vector<64x1xf32> -> vector<64x1xf32>
    %176 = vector.broadcast %175 : vector<64x1xf32> to vector<64x16xf32>
    %177 = arith.mulf %172, %176 : vector<64x16xf32>
    %cst_37 = arith.constant dense<0.000000e+00> : vector<64x32xf32>
    %178 = tpu.matmul %177, %139, %cst_37 {dimension_numbers = #tpu.dot_dimension_numbers<[1], [0], [0], [1], [0, 0, 1, 1], [], []>, precision = #tpu.contract_precision<fp32>} : vector<64x16xf32>, vector<16x32xf32>, vector<64x32xf32> -> vector<64x32xf32>
    %179 = arith.mulf %177, %162 : vector<64x16xf32>
    %cst_38 = arith.constant dense<0.000000e+00> : vector<64xf32>
    %180 = vector.multi_reduction <add>, %179, %cst_38 [1] : vector<64x16xf32> to vector<64xf32>
    %181 = vector.shape_cast %180 : vector<64xf32> to vector<64x1xf32>
    %182 = vector.broadcast %181 : vector<64x1xf32> to vector<64x32xf32>
    %183 = vector.broadcast %8 : vector<1x32xf32> to vector<64x32xf32>
    %184 = arith.mulf %182, %183 : vector<64x32xf32>
    %185 = arith.addf %178, %184 : vector<64x32xf32>
    %186 = arith.mulf %185, %11 : vector<64x32xf32>
    %187 = vector.extract_strided_slice %186 {offsets = [0, 0], sizes = [16, 32], strides = [1, 1]} : vector<64x32xf32> to vector<16x32xf32>
    %188 = vector.extract_strided_slice %186 {offsets = [16, 0], sizes = [16, 32], strides = [1, 1]} : vector<64x32xf32> to vector<16x32xf32>
    %189 = arith.addf %187, %188 : vector<16x32xf32>
    %190 = vector.extract_strided_slice %186 {offsets = [32, 0], sizes = [16, 32], strides = [1, 1]} : vector<64x32xf32> to vector<16x32xf32>
    %191 = arith.addf %189, %190 : vector<16x32xf32>
    %192 = vector.extract_strided_slice %186 {offsets = [48, 0], sizes = [16, 32], strides = [1, 1]} : vector<64x32xf32> to vector<16x32xf32>
    %193 = arith.addf %191, %192 : vector<16x32xf32>
    %194 = vector.extract_strided_slice %3 {offsets = [48, 0], sizes = [16, 32], strides = [1, 1]} : vector<68x32xf32> to vector<16x32xf32>
    %195 = vector.extract_strided_slice %3 {offsets = [67, 0], sizes = [1, 16], strides = [1, 1]} : vector<68x32xf32> to vector<1x16xf32>
    %196 = vector.extract_strided_slice %13 {offsets = [144, 0], sizes = [16, 32], strides = [1, 1]} : vector<192x128xf32> to vector<16x32xf32>
    %197 = vector.broadcast %6 : vector<1x32xf32> to vector<16x32xf32>
    %198 = arith.mulf %194, %197 : vector<16x32xf32>
    %199 = arith.addf %196, %198 : vector<16x32xf32>
    %200 = vector.extract_strided_slice %13 {offsets = [160, 32], sizes = [16, 32], strides = [1, 1]} : vector<192x128xf32> to vector<16x32xf32>
    %201 = vector.broadcast %7 : vector<1x32xf32> to vector<16x32xf32>
    %202 = arith.mulf %194, %201 : vector<16x32xf32>
    %203 = arith.addf %200, %202 : vector<16x32xf32>
    %204 = vector.extract_strided_slice %13 {offsets = [176, 64], sizes = [16, 32], strides = [1, 1]} : vector<192x128xf32> to vector<16x32xf32>
    %205 = vector.extract_strided_slice %194 {offsets = [0, 0], sizes = [16, 16], strides = [1, 1]} : vector<16x32xf32> to vector<16x16xf32>
    %206 = vector.broadcast %195 : vector<1x16xf32> to vector<16x16xf32>
    %207 = arith.subf %205, %206 : vector<16x16xf32>
    %208 = math.absf %207 : vector<16x16xf32>
    %cst_39 = arith.constant 0.000000e+00 : f32
    %cst_40 = arith.constant 5.000000e+03 : f32
    %209 = vector.broadcast %cst_39 : f32 to vector<16x16xf32>
    %210 = arith.maximumf %209, %208 : vector<16x16xf32>
    %211 = vector.broadcast %cst_40 : f32 to vector<16x16xf32>
    %212 = arith.minimumf %211, %210 : vector<16x16xf32>
    %cst_41 = arith.constant 2.000000e-04 : f32
    %213 = vector.broadcast %cst_41 : f32 to vector<16x16xf32>
    %214 = arith.mulf %212, %213 : vector<16x16xf32>
    %215 = tpu.concatenate %204, %204, %204, %204 in 0 : vector<16x32xf32>, vector<16x32xf32>, vector<16x32xf32>, vector<16x32xf32> -> vector<64x32xf32>
    %216 = arith.mulf %215, %11 : vector<64x32xf32>
    %cst_42 = arith.constant dense<0.000000e+00> : vector<64x16xf32>
    %217 = tpu.matmul %216, %203, %cst_42 {dimension_numbers = #tpu.dot_dimension_numbers<[1], [1], [0], [0], [0, 0, 1, 0], [], []>, precision = #tpu.contract_precision<fp32>} : vector<64x32xf32>, vector<16x32xf32>, vector<64x16xf32> -> vector<64x16xf32>
    %218 = vector.broadcast %9 : vector<1x32xf32> to vector<64x32xf32>
    %219 = arith.mulf %216, %218 : vector<64x32xf32>
    %cst_43 = arith.constant dense<0.000000e+00> : vector<64xf32>
    %220 = vector.multi_reduction <add>, %219, %cst_43 [1] : vector<64x32xf32> to vector<64xf32>
    %221 = vector.shape_cast %220 : vector<64xf32> to vector<64x1xf32>
    %222 = tpu.concatenate %214, %214, %214, %214 in 0 : vector<16x16xf32>, vector<16x16xf32>, vector<16x16xf32>, vector<16x16xf32> -> vector<64x16xf32>
    %223 = vector.broadcast %221 : vector<64x1xf32> to vector<64x16xf32>
    %224 = arith.mulf %223, %222 : vector<64x16xf32>
    %225 = arith.addf %217, %224 : vector<64x16xf32>
    %cst_44 = arith.constant 0.176776692 : f32
    %226 = vector.broadcast %cst_44 : f32 to vector<64x16xf32>
    %227 = arith.mulf %225, %226 : vector<64x16xf32>
    %cst_45 = arith.constant dense<0xFF800000> : vector<64xf32>
    %228 = vector.multi_reduction <maximumf>, %227, %cst_45 [1] : vector<64x16xf32> to vector<64xf32>
    %229 = vector.shape_cast %228 : vector<64xf32> to vector<64x1xf32>
    %230 = vector.broadcast %229 : vector<64x1xf32> to vector<64x16xf32>
    %231 = arith.subf %227, %230 : vector<64x16xf32>
    %232 = math.exp %231 : vector<64x16xf32>
    %cst_46 = arith.constant dense<0.000000e+00> : vector<64xf32>
    %233 = vector.multi_reduction <add>, %232, %cst_46 [1] : vector<64x16xf32> to vector<64xf32>
    %234 = vector.shape_cast %233 : vector<64xf32> to vector<64x1xf32>
    %235 = tpu.reciprocal %234 {approx = true} : vector<64x1xf32> -> vector<64x1xf32>
    %236 = vector.broadcast %235 : vector<64x1xf32> to vector<64x16xf32>
    %237 = arith.mulf %232, %236 : vector<64x16xf32>
    %cst_47 = arith.constant dense<0.000000e+00> : vector<64x32xf32>
    %238 = tpu.matmul %237, %199, %cst_47 {dimension_numbers = #tpu.dot_dimension_numbers<[1], [0], [0], [1], [0, 0, 1, 1], [], []>, precision = #tpu.contract_precision<fp32>} : vector<64x16xf32>, vector<16x32xf32>, vector<64x32xf32> -> vector<64x32xf32>
    %239 = arith.mulf %237, %222 : vector<64x16xf32>
    %cst_48 = arith.constant dense<0.000000e+00> : vector<64xf32>
    %240 = vector.multi_reduction <add>, %239, %cst_48 [1] : vector<64x16xf32> to vector<64xf32>
    %241 = vector.shape_cast %240 : vector<64xf32> to vector<64x1xf32>
    %242 = vector.broadcast %241 : vector<64x1xf32> to vector<64x32xf32>
    %243 = vector.broadcast %8 : vector<1x32xf32> to vector<64x32xf32>
    %244 = arith.mulf %242, %243 : vector<64x32xf32>
    %245 = arith.addf %238, %244 : vector<64x32xf32>
    %246 = arith.mulf %245, %11 : vector<64x32xf32>
    %247 = vector.extract_strided_slice %246 {offsets = [0, 0], sizes = [16, 32], strides = [1, 1]} : vector<64x32xf32> to vector<16x32xf32>
    %248 = vector.extract_strided_slice %246 {offsets = [16, 0], sizes = [16, 32], strides = [1, 1]} : vector<64x32xf32> to vector<16x32xf32>
    %249 = arith.addf %247, %248 : vector<16x32xf32>
    %250 = vector.extract_strided_slice %246 {offsets = [32, 0], sizes = [16, 32], strides = [1, 1]} : vector<64x32xf32> to vector<16x32xf32>
    %251 = arith.addf %249, %250 : vector<16x32xf32>
    %252 = vector.extract_strided_slice %246 {offsets = [48, 0], sizes = [16, 32], strides = [1, 1]} : vector<64x32xf32> to vector<16x32xf32>
    %253 = arith.addf %251, %252 : vector<16x32xf32>
    %254 = tpu.concatenate %73, %133, %193, %253 in 0 : vector<16x32xf32>, vector<16x32xf32>, vector<16x32xf32>, vector<16x32xf32> -> vector<64x32xf32>
    %cst_49 = arith.constant dense<0.000000e+00> : vector<64x32xf32>
    %255 = tpu.matmul %254, %12, %cst_49 {dimension_numbers = #tpu.dot_dimension_numbers<[1], [0], [0], [1], [0, 0, 1, 1], [], []>, precision = #tpu.contract_precision<fp32>} : vector<64x32xf32>, vector<32x32xf32>, vector<64x32xf32> -> vector<64x32xf32>
    %256 = vector.broadcast %10 : vector<1x32xf32> to vector<64x32xf32>
    %257 = arith.addf %255, %256 : vector<64x32xf32>
    %c0_50 = arith.constant 0 : index
    %c0_51 = arith.constant 0 : index
    %c0_52 = arith.constant 0 : index
    %258 = vector.load %arg5[%c0_50, %c0_51, %c0_52] : memref<1x64x32xf32, #tpu.memory_space<vmem>>, vector<1x64x32xf32>
    %259 = vector.shape_cast %258 : vector<1x64x32xf32> to vector<64x32xf32>
    %260 = vector.shape_cast %257 : vector<64x32xf32> to vector<1x64x32xf32>
    tpu.vector_store %arg5[%c0_50, %c0_51, %c0_52], %260 {strides = array<i32>} : memref<1x64x32xf32, #tpu.memory_space<vmem>>, vector<1x64x32xf32>,
    return
  }
  func.func @transform_0(%arg0: i32) -> (i32, i32, i32) {
    %c0_i32 = arith.constant 0 : i32
    %c0_i32_0 = arith.constant 0 : i32
    %c0_i32_1 = arith.constant 0 : i32
    return %arg0, %c0_i32, %c0_i32_0 : i32, i32, i32
  }
  func.func @transform_1(%arg0: i32) -> (i32, i32, i32) {
    %c0_i32 = arith.constant 0 : i32
    %c0_i32_0 = arith.constant 0 : i32
    %c0_i32_1 = arith.constant 0 : i32
    return %arg0, %c0_i32, %c0_i32_0 : i32, i32, i32
  }
  func.func @transform_2(%arg0: i32) -> (i32, i32) {
    %c0_i32 = arith.constant 0 : i32
    %c0_i32_0 = arith.constant 0 : i32
    %c0_i32_1 = arith.constant 0 : i32
    return %c0_i32, %c0_i32_0 : i32, i32
  }
  func.func @transform_3(%arg0: i32) -> (i32, i32) {
    %c0_i32 = arith.constant 0 : i32
    %c0_i32_0 = arith.constant 0 : i32
    %c0_i32_1 = arith.constant 0 : i32
    return %c0_i32, %c0_i32_0 : i32, i32
  }
  func.func @transform_4(%arg0: i32) -> (i32, i32, i32) {
    %c0_i32 = arith.constant 0 : i32
    %c0_i32_0 = arith.constant 0 : i32
    %c0_i32_1 = arith.constant 0 : i32
    return %arg0, %c0_i32, %c0_i32_0 : i32, i32, i32
  }
}

</mosaic_0001>

<bundles_post_ra>
// kernel: tpu_custom_call.1
= control target key start
LH: loop header
LB: loop body
LE: loop exit
PB: predicated region body
PF: predicated region fallthrough
CT: control target
= control target key end

     0   :  { %s13108_s15 = smov 0   ;;  %s16241_s0 = inlined_call_operand.vmem [shape: f32[2,192,32], index: 0, kind: input, shape index: {}]   ;;  %s16242_s1 = inlined_call_operand.vmem [shape: f32[2,68,32], index: 1, kind: input, shape index: {}]   ;;  %s16243_s2 = inlined_call_operand.vmem [shape: f32[32,128], index: 2, kind: input, shape index: {}]   ;;  %s16244_s3 = inlined_call_operand.vmem [shape: f32[72,32], index: 3, kind: input, shape index: {}]   ;;  %s16245_s4 = inlined_call_operand.vmem [shape: f32[2,64,32], index: 4, kind: output, shape index: {}]  }
   0x1 LB: > { %s10185_s16 = sadd.s32 4294967295, %s13078_s15   ;;  %p10189_p0 = scmp.ge.s32.totalorder %s13078_s15, 1  ;;  %s13078_s15 = sphi %s13108_s15, %s14_s15  }
   0x2   : > { %p172_p1 = scmp.lt.s32.totalorder %s13078_s15, 3 }
   0x4   : > { %p173_p2 = pnand %p10189_p0, %p172_p1 }
   0x6   : > { %176 = sbr.rel (%p173_p2) target bundleno = 3126 (0xc36), region = 36 }
   0xd   : > { %v251_v0 = vld [vmem:[%s16243_s2] sm:$0xff]  ;;  %v252_v1 = vld [vmem:[%s16243_s2 + $0x8] sm:$0xff]  ;;  %v253_v2 = vld [vmem:[%s16243_s2 + $0x10] sm:$0xff]  ;;  %p203_p3 = scmp.lt.s32.totalorder %s10185_s16, 1  ;;  %vm264_vm0 = vcmask 261120   ;;  %s13080_s6 = smov 64  }
   0xe   : > { %v338_v3 = vand.u32 4294901760, %v251_v0  ;;  %v341_v4 = vand.u32 4294901760, %v252_v1  ;;  %v254_v5 = vld [vmem:[%s16243_s2 + $0x18] sm:$0xff]  ;;  %v344_v6 = vand.u32 4294901760, %v253_v2  ;;  %s13081_s18 = smov 32   ;;  %s13082_s29 = smov 96  }
   0xf   : > { %v347_v7 = vand.u32 4294901760, %v254_v5  ;;  %s16524_s16 = smov (!%p203_p3, %s10185_s16), 1  ;;  %vm2787_vm1 = vcmask 130048  }
  0x10   : > { %v13130_v8 = vpack.c.bf16 %v341_v4, %v338_v3  ;;  %v13132_v9 = vsub.f32 %v251_v0, %v338_v3  ;;  %v13134_v10 = vsub.f32 %v252_v1, %v341_v4  ;;  %v13136_v11 = vsub.f32 %v253_v2, %v344_v6  ;;  %s12909_s25 = smul.u32 192, %s16524_s16 }
  0x11   : > { %v13138_v12 = vpack.c.bf16 %v347_v7, %v344_v6  ;;  %v13141_v13 = vsub.f32 %v254_v5, %v347_v7  ;;  %s12910_s5 = smul.u32 72, %s16524_s16 }
  0x12   : > { %12070 = vmatprep.subr.bf16.mxu0 %v13130_v8  ;;  %v16263_v14 = vand.u32 4294901760, %v13132_v9  ;;  %v16262_v15 = vand.u32 4294901760, %v13134_v10  ;;  %v16261_v16 = vand.u32 4294901760, %v13136_v11  ;;  %s13151_s28 = scalar_lea.vmem %s16241_s0, %s12909_s25 }
  0x13   : > { %12072 = vmatpush3.bf16.msra.mxu0 %v13130_v8  ;;  %v218_v17 = vld [vmem:[%s13151_s28] sm:$0xff]  ;;  %v219_v20 = vld [vmem:[%s13151_s28 + $0x8] sm:$0xff]  ;;  %v220_v21 = vld [vmem:[%s13151_s28 + $0x10] sm:$0xff]  ;;  %v16260_v22 = vand.u32 4294901760, %v13141_v13  ;;  %s13538_s9 = scalar_lea.vmem %s16242_s1, %s12910_s5 }
  0x14   : > { %12074 = vmatprep.subr.bf16.mxu0 %v13138_v12  ;;  %v650_v18 = vsub.f32 %v13132_v9, %v16263_v14  ;;  %v657_v19 = vsub.f32 %v13134_v10, %v16262_v15  ;;  %v266_v23 = vsel %vm264_vm0, %v218_v17, 0  ;;  %v269_v24 = vsel %vm264_vm0, %v219_v20, 0  ;;  %v221_v26 = vld [vmem:[%s13151_s28 + $0x18] sm:$0xff]  ;;  %v222_v27 = vld [vmem:[%s13151_s28 + $0x20] sm:$0xff]  ;;  %v223_v28 = vld [vmem:[%s13151_s28 + $0x28] sm:$0xff] }
  0x15   : > { %v272_v25 = vsel %vm264_vm0, %v220_v21, 0  ;;  %v13173_v29 = vsub.f32 %v13136_v11, %v16261_v16  ;;  %v13175_v30 = vand.u32 4294901760, %v266_v23  ;;  %v13177_v33 = vand.u32 4294901760, %v269_v24  ;;  %v224_v34 = vld [vmem:[%s13151_s28 + $0x30] sm:$0xff]  ;;  %v225_v43 = vld [vmem:[%s13151_s28 + $0x38] sm:$0xff]  ;;  %v226_v0 = vld [vmem:[%s13151_s28 + $0x40] sm:$0xff] }
  0x16   : > { %v651_v31 = vand.u32 4294901760, %v650_v18  ;;  %v658_v32 = vand.u32 4294901760, %v657_v19  ;;  %v13181_v35 = vand.u32 4294901760, %v272_v25  ;;  %v275_v36 = vsel %vm264_vm0, %v221_v26, 0  ;;  %v227_v1 = vld [vmem:[%s13151_s28 + $0x48] sm:$0xff]  ;;  %v228_v19 = vld [vmem:[%s13151_s28 + $0x50] sm:$0xff] }
  0x17   : > { %12076 = vmatpush3.bf16.msra.mxu0 %v13138_v12  ;;  %v278_v37 = vsel %vm264_vm0, %v222_v27, 0  ;;  %v281_v38 = vsel %vm264_vm0, %v223_v28, 0  ;;  %v13187_v39 = vsub.f32 %v266_v23, %v13175_v30  ;;  %v13190_v41 = vsub.f32 %v269_v24, %v13177_v33  ;;  %v229_v20 = vld [vmem:[%s13151_s28 + $0x58] sm:$0xff]  ;;  %v240_v15 = vld [vmem:[%s13151_s28 + $0xb0] sm:$0xff] }
  0x18   : > { %v12077_v40 = vpack.c.bf16 %v658_v32, %v651_v31  ;;  %v13192_v42 = vand.u32 4294901760, %v275_v36  ;;  %v13196_v44 = vsub.f32 %v272_v25, %v13181_v35  ;;  %v13198_v45 = vand.u32 4294901760, %v278_v37  ;;  %v230_v32 = vld [vmem:[%s13151_s28 + $0x60] sm:$0xff] }
  0x19   : > { %v13200_v46 = vand.u32 4294901760, %v281_v38  ;;  %v284_v47 = vsel %vm264_vm0, %v224_v34, 0  ;;  %v16257_v48 = vand.u32 4294901760, %v13187_v39  ;;  %v16255_v49 = vand.u32 4294901760, %v13190_v41 }
  0x1a   : > { %12078 = vmatprep.subr.bf16.mxu0 %v12077_v40  ;;  %v13206_v50 = vsub.f32 %v275_v36, %v13192_v42  ;;  %v13208_v51 = vand.u32 4294901760, %v284_v47  ;;  %v16254_v52 = vand.u32 4294901760, %v13196_v44  ;;  %v13212_v53 = vsub.f32 %v278_v37, %v13198_v45 }
  0x1b   : > { %v13215_v54 = vsub.f32 %v281_v38, %v13200_v46  ;;  %v287_v55 = vsel %vm264_vm0, %v225_v43, 0  ;;  %v409_v56 = vsub.f32 %v13187_v39, %v16257_v48  ;;  %v419_v57 = vsub.f32 %v13190_v41, %v16255_v49  ;;  %v238_v49 = vld [vmem:[%s13151_s28 + $0xa0] sm:$0xff] }
  0x1c   : > { %v16253_v58 = vand.u32 4294901760, %v13206_v50  ;;  %v13226_v59 = vsub.f32 %v284_v47, %v13208_v51  ;;  %v429_v60 = vsub.f32 %v13196_v44, %v16254_v52  ;;  %v16252_v61 = vand.u32 4294901760, %v13212_v53 }
  0x1d   : > { %v16251_v62 = vand.u32 4294901760, %v13215_v54  ;;  %v13233_v63 = vand.u32 4294901760, %v287_v55  ;;  %v410_v2 = vand.u32 4294901760, %v409_v56  ;;  %v420_v3 = vand.u32 4294901760, %v419_v57  ;;  %v231_v57 = vld [vmem:[%s13151_s28 + $0x68] sm:$0xff] }
  0x1e   : > { %v439_v4 = vsub.f32 %v13206_v50, %v16253_v58  ;;  %v16248_v5 = vand.u32 4294901760, %v13226_v59  ;;  %v430_v6 = vand.u32 4294901760, %v429_v60  ;;  %v449_v7 = vsub.f32 %v13212_v53, %v16252_v61 }
  0x1f   : > { %v459_v17 = vsub.f32 %v13215_v54, %v16251_v62  ;;  %v13248_v18 = vsub.f32 %v287_v55, %v13233_v63  ;;  %10925 = vmatprep.mubr.f32.mxu0 %v410_v2  ;;  %v290_v23 = vsel %vm264_vm0, %v226_v0, 0  ;;  %v293_v24 = vsel %vm264_vm0, %v227_v1, 0 }
  0x20   : > { %v469_v21 = vsub.f32 %v13226_v59, %v16248_v5  ;;  %v671_v25 = vsub.f32 %v13141_v13, %v16260_v22  ;;  %10926 = vmatmul.mubr.f32.vlgmr.msra.gmra.mrb[0].mxu0 %v420_v3  ;;  %v440_v26 = vand.u32 4294901760, %v439_v4  ;;  %v450_v27 = vand.u32 4294901760, %v449_v7  ;;  %v232_v7 = vld [vmem:[%s13151_s28 + $0x70] sm:$0xff]  ;;  %v237_v5 = vld [vmem:[%s13151_s28 + $0x98] sm:$0xff] }
  0x21   : > { %v16247_v28 = vand.u32 4294901760, %v13248_v18  ;;  %v13261_v31 = vand.u32 4294901760, %v290_v23  ;;  %12080 = vmatpush3.bf16.msra.mxu0 %v12077_v40  ;;  %10928 = vmatprep.mubr.f32.mxu0 %v430_v6  ;;  %v460_v34 = vand.u32 4294901760, %v459_v17  ;;  %v13264_v36 = vand.u32 4294901760, %v293_v24  ;;  %v233_v17 = vld [vmem:[%s13151_s28 + $0x78] sm:$0xff] }
  0x22   : > { %v296_v37 = vsel %vm264_vm0, %v228_v19, 0  ;;  %v299_v38 = vsel %vm264_vm0, %v229_v20, 0  ;;  %v470_v43 = vand.u32 4294901760, %v469_v21  ;;  %v302_v60 = vsel %vm264_vm0, %v230_v32, 0 }
  0x23   : > { %v13269_v47 = vsub.f32 %v290_v23, %v13261_v31  ;;  %v13271_v55 = vand.u32 4294901760, %v296_v37  ;;  %v13273_v56 = vand.u32 4294901760, %v299_v38  ;;  %v13277_v40 = vsub.f32 %v293_v24, %v13264_v36 }
  0x24   : > { %v665_v0 = vand.u32 4294901760, %v13173_v29  ;;  %v672_v1 = vand.u32 4294901760, %v671_v25  ;;  %10929 = vmatmul.mubr.f32.gmra.mrb[2].mxu0 %v440_v26  ;;  %v479_v2 = vsub.f32 %v13248_v18, %v16247_v28  ;;  %v13294_v19 = vand.u32 4294901760, %v302_v60 }
  0x25   : > { %v16246_v3 = vand.u32 4294901760, %v13269_v47  ;;  %v13286_v4 = vsub.f32 %v296_v37, %v13271_v55  ;;  %v13289_v6 = vsub.f32 %v299_v38, %v13273_v56  ;;  %10931 = vmatprep.mubr.f32.mxu0 %v450_v27  ;;  %v16249_v29 = vand.u32 4294901760, %v13277_v40 }
  0x26   : > { %v12081_v20 = vpack.c.bf16 %v672_v1, %v665_v0  ;;  %v305_v21 = vsel %vm264_vm0, %v231_v57, 0  ;;  %v13305_v26 = vpack.c.bf16 %v13134_v10, %v13132_v9  ;;  %v13309_v32 = vsub.f32 %v302_v60, %v13294_v19  ;;  %v234_v57 = vld [vmem:[%s13151_s28 + $0x80] sm:$0xff] }
  0x27   : > { %v489_v23 = vsub.f32 %v13269_v47, %v16246_v3  ;;  %v16250_v24 = vand.u32 4294901760, %v13286_v4  ;;  %v13301_v25 = vand.u32 4294901760, %v305_v21  ;;  %v16256_v27 = vand.u32 4294901760, %v13289_v6 }
  0x28   : > { %12082 = vmatprep.subr.bf16.mxu0 %v12081_v20  ;;  %v308_v37 = vsel %vm264_vm0, %v232_v7, 0  ;;  %v311_v38 = vsel %vm264_vm0, %v233_v17, 0  ;;  %10932 = vmatmul.mubr.f32.gmra.mrb[4].mxu0 %v460_v34  ;;  %v480_v0 = vand.u32 4294901760, %v479_v2  ;;  %v499_v3 = vsub.f32 %v13277_v40, %v16249_v29  ;;  %v235_v2 = vld [vmem:[%s13151_s28 + $0x88] sm:$0xff] }
  0x29   : > { %v490_v1 = vand.u32 4294901760, %v489_v23  ;;  %v13318_v28 = vsub.f32 %v305_v21, %v13301_v25  ;;  %10934 = vmatprep.mubr.f32.mxu0 %v470_v43  ;;  %v509_v60 = vsub.f32 %v13286_v4, %v16250_v24  ;;  %v16258_v7 = vand.u32 4294901760, %v13309_v32  ;;  %12084 = vmatpush3.bf16.msra.mxu0 %v12081_v20  ;;  %v236_v23 = vld [vmem:[%s13151_s28 + $0x90] sm:$0xff] }
  0x2a   : > { %v13324_v17 = vand.u32 4294901760, %v308_v37  ;;  %v13326_v34 = vand.u32 4294901760, %v311_v38  ;;  %v314_v21 = vsel %vm264_vm0, %v234_v57, 0  ;;  %12086 = vmatprep.subr.bf16.mxu0 %v13305_v26  ;;  %v519_v43 = vsub.f32 %v13289_v6, %v16256_v27 }
  0x2b   : > { %16360 = vst [vmem:[#allocation2_spill] sm:$0xff] %v13318_v28  ;;  %v16259_v29 = vand.u32 4294901760, %v13318_v28  ;;  %v13343_v62 = vand.u32 4294901760, %v314_v21  ;;  %v500_v61 = vand.u32 4294901760, %v499_v3  ;;  %v317_v58 = vsel %vm264_vm0, %v235_v2, 0 }
  0x2c   : > { %v13338_v20 = vsub.f32 %v308_v37, %v13324_v17  ;;  %v13341_v24 = vsub.f32 %v311_v38, %v13326_v34  ;;  %10935 = vmatmul.mubr.f32.gmra.mrb[6].mxu0 %v480_v0  ;;  %v320_v57 = vsel %vm264_vm0, %v236_v23, 0  ;;  %v323_v52 = vsel %vm264_vm0, %v237_v5, 0 }
  0x2d   : > { %10937 = vmatprep.mubr.f32.mxu0 %v490_v1  ;;  %v510_v27 = vand.u32 4294901760, %v509_v60  ;;  %v529_v37 = vsub.f32 %v13309_v32, %v16258_v7  ;;  %v13354_v48 = vsub.f32 %v314_v21, %v13343_v62  ;;  %v539_v3 = vsub.f32 %v13318_v28, %v16259_v29  ;;  %v239_v1 = vld [vmem:[%s13151_s28 + $0xa8] sm:$0xff]  ;;  %v241_v28 = vld [vmem:[%s13151_s28 + $0xb8] sm:$0xff] }
  0x2e   : > { %16361 = vst [vmem:[#allocation3_spill] sm:$0xff] %v13338_v20  ;;  %16362 = vst [vmem:[#allocation4_spill] sm:$0xff] %v13341_v24  ;;  %v16264_v38 = vand.u32 4294901760, %v13338_v20  ;;  %v13359_v0 = vand.u32 4294901760, %v317_v58  ;;  %v13361_v5 = vand.u32 4294901760, %v320_v57  ;;  %v13368_v23 = vand.u32 4294901760, %v323_v52 }
  0x2f   : > { %16363 = vst [vmem:[#allocation5_spill] sm:$0xff] %v13354_v48  ;;  %v326_v21 = vsel %vm264_vm0, %v238_v49, 0  ;;  %v520_v7 = vand.u32 4294901760, %v519_v43  ;;  %v16271_v29 = vand.u32 4294901760, %v13354_v48  ;;  %v530_v14 = vand.u32 4294901760, %v529_v37 }
  0x30   : > { %v549_v60 = vsub.f32 %v13338_v20, %v16264_v38  ;;  %10938 = vmatmul.mubr.f32.gmra.mrb[8].mxu0 %v500_v61  ;;  %v13373_v22 = vsub.f32 %v317_v58, %v13359_v0  ;;  %v13376_v16 = vsub.f32 %v320_v57, %v13361_v5  ;;  %v13379_v38 = vand.u32 4294901760, %v326_v21 }
  0x31   : > { %10940 = vmatprep.mubr.f32.mxu0 %v510_v27  ;;  %v329_v2 = vsel %vm264_vm0, %v239_v1, 0  ;;  %v540_v20 = vand.u32 4294901760, %v539_v3  ;;  %v16364_v61 = vand.u32 4294901760, %v13341_v24  ;;  %v13387_v58 = vsub.f32 %v323_v52, %v13368_v23 }
  0x32   : > { %v550_v49 = vand.u32 4294901760, %v549_v60  ;;  %v332_v57 = vsel %vm264_vm0, %v240_v15, 0  ;;  %v569_v27 = vsub.f32 %v13354_v48, %v16271_v29  ;;  %v16275_v37 = vand.u32 4294901760, %v13373_v22 }
  0x33   : > { %v559_v43 = vsub.f32 %v13341_v24, %v16364_v61  ;;  %v13395_v1 = vand.u32 4294901760, %v329_v2  ;;  %v13398_v60 = vsub.f32 %v326_v21, %v13379_v38  ;;  %v13400_v61 = vand.u32 4294901760, %v332_v57 }
  0x34   : > { %10941 = vmatmul.mubr.f32.gmra.mrb[10].mxu0 %v520_v7  ;;  %v335_v52 = vsel %vm264_vm0, %v241_v28, 0  ;;  %v16365_v15 = vand.u32 4294901760, %v13132_v9  ;;  %v16366_v7 = vand.u32 4294901760, %v13134_v10  ;;  %v579_v3 = vsub.f32 %v13373_v22, %v16275_v37 }
  0x35   : > { %10943 = vmatprep.mubr.f32.mxu0 %v530_v14  ;;  %v560_v29 = vand.u32 4294901760, %v559_v43  ;;  %v16274_v14 = vand.u32 4294901760, %v13387_v58  ;;  %v13414_v21 = vsub.f32 %v329_v2, %v13395_v1  ;;  %v13416_v48 = vand.u32 4294901760, %v335_v52 }
  0x36   : > { %v13407_v24 = vpack.c.bf16 %v16366_v7, %v16365_v15  ;;  %v570_v28 = vand.u32 4294901760, %v569_v27  ;;  %v16367_v9 = vand.u32 4294901760, %v13376_v16  ;;  %v16277_v43 = vand.u32 4294901760, %v13398_v60 }
  0x37   : > { %v580_v15 = vand.u32 4294901760, %v579_v3  ;;  %v599_v2 = vsub.f32 %v13387_v58, %v16274_v14  ;;  %v16276_v7 = vand.u32 4294901760, %v13414_v21 }
  0x38   : > { %10944 = vmatmul.mubr.f32.gmra.mrb[12].mxu0 %v540_v20  ;;  %v589_v10 = vsub.f32 %v13376_v16, %v16367_v9  ;;  %v13423_v20 = vsub.f32 %v332_v57, %v13400_v61  ;;  %v609_v9 = vsub.f32 %v13398_v60, %v16277_v43 }
  0x39   : > { %10946 = vmatprep.mubr.f32.mxu0 %v550_v49  ;;  %v13430_v49 = vsub.f32 %v335_v52, %v13416_v48  ;;  %v619_v3 = vsub.f32 %v13414_v21, %v16276_v7  ;;  %v16369_v7 = vand.u32 4294901760, %v13141_v13 }
  0x3a   : > { %v590_v27 = vand.u32 4294901760, %v589_v10  ;;  %v628_v57 = vand.u32 4294901760, %v13423_v20  ;;  %v610_v37 = vand.u32 4294901760, %v609_v9  ;;  %v12089_v9 = vpack.c.bf16 %v13141_v13, %v13136_v11  ;;  %v16371_v13 = vld [vmem:[#allocation3_spill] sm:$0xff] }
  0x3b   : > { %v638_v14 = vand.u32 4294901760, %v13430_v49 }
  0x3c   : > { %10947 = vmatmul.mubr.f32.gmra.mrb[14].mxu0 %v560_v29  ;;  %v600_v29 = vand.u32 4294901760, %v599_v2  ;;  %v629_v52 = vsub.f32 %v13423_v20, %v628_v57  ;;  %v16368_v2 = vand.u32 4294901760, %v13136_v11  ;;  %v16370_v11 = vld [vmem:[#allocation2_spill] sm:$0xff] }
  0x3d   : > { %10949 = vmatprep.mubr.f32.mxu0 %v570_v28  ;;  %v620_v28 = vand.u32 4294901760, %v619_v3  ;;  %v639_v10 = vsub.f32 %v13430_v49, %v638_v14  ;;  %v16376_v3 = vand.u32 4294901760, %v13196_v44 }
  0x3e   : > { %v13450_v43 = vpack.c.bf16 %v16369_v7, %v16368_v2  ;;  %v16374_v7 = vand.u32 4294901760, %v13187_v39 }
  0x40   : > { %10950 = vmatmul.mubr.f32.gmra.mrb[16].mxu0 %v580_v15  ;;  %v630_v15 = vand.u32 4294901760, %v629_v52  ;;  %v16377_v52 = vand.u32 4294901760, %v13206_v50 }
  0x41   : > { %10952 = vmatprep.mubr.f32.mxu0 %v590_v27  ;;  %v640_v27 = vand.u32 4294901760, %v639_v10  ;;  %v16385_v10 = vand.u32 4294901760, %v13286_v4 }
  0x44   : > { %10953 = vmatmul.mubr.f32.gmra.mrb[18].mxu0 %v600_v29  ;;  %v16375_v29 = vand.u32 4294901760, %v13190_v41 }
  0x45   : > { %10955 = vmatprep.mubr.f32.mxu0 %v610_v37  ;;  %v16373_v37 = vld [vmem:[#allocation5_spill] sm:$0xff] }
  0x48   : > { %10956 = vmatmul.mubr.f32.gmra.mrb[20].mxu0 %v620_v28  ;;  %v16378_v28 = vand.u32 4294901760, %v13212_v53 }
  0x49   : > { %10958 = vmatprep.mubr.f32.mxu0 %v630_v15  ;;  %v13556_v15 = vld [vmem:[%s13538_s9] sm:$0xff] }
  0x4c   : > { %10959 = vmatmul.mubr.f32.gmra.mrb[22].mxu0 %v640_v27  ;;  %v259_v27 = vld [vmem:[%s16244_s3 + $0x20] sm:$0xff] }
  0x4d   : > { %10969 = vmatprep.mubr.f32.mxu0 %v13175_v30 }
  0x50   : > { %10970 = vmatmul.mubr.f32.vlgmr.msra.gmra.mrb[0].mxu0 %v13177_v33 }
  0x51   : > { %12088 = vmatpush3.bf16.msra.mxu0 %v13305_v26  ;;  %10972 = vmatprep.mubr.f32.mxu0 %v13181_v35  ;;  %v16372_v26 = vld [vmem:[#allocation4_spill] sm:$0xff] }
  0x52   : > { %12090 = vmatprep.subr.bf16.mxu0 %v12089_v9 }
  0x54   : > { %10973 = vmatmul.mubr.f32.gmra.mrb[2].mxu0 %v13192_v42 }
  0x55   : > { %10975 = vmatprep.mubr.f32.mxu0 %v13198_v45  ;;  %12092 = vmatpush3.bf16.msra.mxu0 %v12089_v9  ;;  %v16386_v9 = vand.u32 4294901760, %v13289_v6 }
  0x56   : > { %12094 = vmatprep.subr.bf16.mxu0 %v13130_v8 }
  0x58   : > { %10976 = vmatmul.mubr.f32.gmra.mrb[4].mxu0 %v13200_v46 }
  0x59   : > { %10978 = vmatprep.mubr.f32.mxu0 %v13208_v51 }
  0x5c   : > { %10979 = vmatmul.mubr.f32.gmra.mrb[6].mxu0 %v13233_v63 }
  0x5d   : > { %10981 = vmatprep.mubr.f32.mxu0 %v13261_v31 }
  0x60   : > { %10982 = vmatmul.mubr.f32.gmra.mrb[8].mxu0 %v13264_v36 }
  0x61   : > { %10984 = vmatprep.mubr.f32.mxu0 %v13271_v55 }
  0x64   : > { %10985 = vmatmul.mubr.f32.gmra.mrb[10].mxu0 %v13273_v56 }
  0x65   : > { %10987 = vmatprep.mubr.f32.mxu0 %v13294_v19 }
  0x68   : > { %10988 = vmatmul.mubr.f32.gmra.mrb[12].mxu0 %v13301_v25 }
  0x69   : > { %10990 = vmatprep.mubr.f32.mxu0 %v13324_v17 }
  0x6c   : > { %10991 = vmatmul.mubr.f32.gmra.mrb[14].mxu0 %v13326_v34 }
  0x6d   : > { %10993 = vmatprep.mubr.f32.mxu0 %v13343_v62 }
  0x70   : > { %10994 = vmatmul.mubr.f32.gmra.mrb[16].mxu0 %v13359_v0 }
  0x71   : > { %10996 = vmatprep.mubr.f32.mxu0 %v13361_v5 }
  0x74   : > { %10997 = vmatmul.mubr.f32.gmra.mrb[18].mxu0 %v13368_v23 }
  0x75   : > { %10999 = vmatprep.mubr.f32.mxu0 %v13379_v38 }
  0x78   : > { %11000 = vmatmul.mubr.f32.gmra.mrb[20].mxu0 %v13395_v1 }
  0x79   : > { %11002 = vmatprep.mubr.f32.mxu0 %v13400_v61 }
  0x7c   : > { %11003 = vmatmul.mubr.f32.gmra.mrb[22].mxu0 %v13416_v48 }
  0x7d   : > { %11013 = vmatprep.mubr.f32.mxu0 %v13187_v39  ;;  %v16379_v39 = vand.u32 4294901760, %v13215_v54 }
  0x80   : > { %11014 = vmatmul.mubr.f32.vlgmr.msra.gmra.mrb[0].mxu0 %v13190_v41  ;;  %v16380_v41 = vand.u32 4294901760, %v13226_v59 }
  0x81   : > { %12096 = vmatpush3.bf16.msra.mxu0 %v13130_v8  ;;  %11016 = vmatprep.mubr.f32.mxu0 %v13196_v44  ;;  %v16381_v44 = vand.u32 4294901760, %v13248_v18 }
  0x82   : > { %12098 = vmatprep.subr.bf16.mxu0 %v13138_v12 }
  0x84   : > { %11017 = vmatmul.mubr.f32.gmra.mrb[2].mxu0 %v13206_v50  ;;  %v256_v50 = vld [vmem:[%s16244_s3 + $0x8] sm:$0xff] }
  0x85   : > { %11019 = vmatprep.mubr.f32.mxu0 %v13212_v53  ;;  %12100 = vmatpush3.bf16.msra.mxu0 %v13138_v12  ;;  %v1811_v53 = vlaneseq }
  0x86   : > { %12102 = vmatprep.subr.bf16.mxu0 %v13407_v24  ;;  %1857 = vrot.lane.b32.xlu1 %v256_v50, %s13080_s6  ;;  %v16395_v50 = vand.u32 4294901760, %v13398_v60 }
  0x88   : > { %11020 = vmatmul.mubr.f32.gmra.mrb[4].mxu0 %v13215_v54  ;;  %v13540_v54 = vshrl.u32 %v1811_v53, 7 }
  0x89   : > { %11022 = vmatprep.mubr.f32.mxu0 %v13226_v59  ;;  %v257_v59 = vld [vmem:[%s16244_s3 + $0x10] sm:$0xff] }
  0x8a   : > { %16383 = vst [vmem:[#allocation2_spill] sm:$0xff] %v13540_v54  ;;  %1859 = vrot.lane.b32.xlu1 %v257_v59, %s13080_s6 }
  0x8c   : > { %11023 = vmatmul.mubr.f32.gmra.mrb[6].mxu0 %v13248_v18  ;;  %v13548_v18 = vld [vmem:[%s16244_s3] sm:$0xff] }
  0x8d   : > { %11025 = vmatprep.mubr.f32.mxu0 %v13269_v47 }
  0x8e   : > { %1863 = vrot.lane.b32.xlu1 %v259_v27, %s13080_s6 }
  0x90   : > { %11026 = vmatmul.mubr.f32.gmra.mrb[8].mxu0 %v13277_v40 }
  0x91   : > { %11028 = vmatprep.mubr.f32.mxu0 %v13286_v4 }
  0x94   : > { %11029 = vmatmul.mubr.f32.gmra.mrb[10].mxu0 %v13289_v6  ;;  %v16388_v6 = vand.u32 4294901760, %v16370_v11 }
  0x95   : > { %11031 = vmatprep.mubr.f32.mxu0 %v13309_v32 }
  0x98   : > { %11032 = vmatmul.mubr.f32.gmra.mrb[12].mxu0 %v16370_v11  ;;  %v16391_v11 = vand.u32 4294901760, %v16373_v37 }
  0x99   : > { %11034 = vmatprep.mubr.f32.mxu0 %v16371_v13 }
  0x9c   : > { %11035 = vmatmul.mubr.f32.gmra.mrb[14].mxu0 %v16372_v26 }
  0x9d   : > { %11037 = vmatprep.mubr.f32.mxu0 %v16373_v37  ;;  %v16394_v37 = vand.u32 4294901760, %v13387_v58 }
  0xa0   : > { %11038 = vmatmul.mubr.f32.gmra.mrb[16].mxu0 %v13373_v22 }
  0xa1   : > { %11040 = vmatprep.mubr.f32.mxu0 %v13376_v16 }
  0xa4   : > { %11041 = vmatmul.mubr.f32.gmra.mrb[18].mxu0 %v13387_v58  ;;  %v13699_v58 = vld [vmem:[%s13538_s9 + $0x10] sm:$0xff] }
  0xa5   : > { %11043 = vmatprep.mubr.f32.mxu0 %v13398_v60 }
  0xa8   : > { %11044 = vmatmul.mubr.f32.gmra.mrb[20].mxu0 %v13414_v21 }
  0xa9   : > { %11046 = vmatprep.mubr.f32.mxu0 %v13423_v20 }
  0xac   : > { %11047 = vmatmul.mubr.f32.gmra.mrb[22].mxu0 %v13430_v49 }
  0xad   : > { %11057 = vmatprep.mubr.f32.mxu0 %v16374_v7  ;;  %v16387_v7 = vand.u32 4294901760, %v13309_v32  ;;  %v263_v32 = vld [vmem:[%s16244_s3 + $0x40] sm:$0xff] }
  0xb0   : > { %11058 = vmatmul.mubr.f32.vlgmr.msra.gmra.mrb[0].mxu0 %v16375_v29 }
  0xb1   : > { %12104 = vmatpush3.bf16.msra.mxu0 %v13407_v24  ;;  %11060 = vmatprep.mubr.f32.mxu0 %v16376_v3  ;;  %v16382_v24 = vand.u32 4294901760, %v13269_v47  ;;  %v16384_v47 = vand.u32 4294901760, %v13277_v40  ;;  %v13568_v40 = vld [vmem:[%s13538_s9 + $0x8] sm:$0xff]  ;;  %v261_v3 = vld [vmem:[%s16244_s3 + $0x30] sm:$0xff] }
  0xb2   : > { %12106 = vmatprep.subr.bf16.mxu0 %v13450_v43  ;;  %1867 = vrot.lane.b32.xlu1 %v261_v3, %s13080_s6 }
  0xb4   : > { %11061 = vmatmul.mubr.f32.gmra.mrb[2].mxu0 %v16377_v52  ;;  %v16389_v52 = vand.u32 4294901760, %v16371_v13  ;;  %v260_v13 = vld [vmem:[%s16244_s3 + $0x28] sm:$0xff] }
  0xb5   : > { %11063 = vmatprep.mubr.f32.mxu0 %v16378_v28  ;;  %12108 = vmatpush3.bf16.msra.mxu0 %v13450_v43  ;;  %v16279_v43 = vsub.s32 1, %v13540_v54  ;;  %v258_v28 = vld [vmem:[%s16244_s3 + $0x18] sm:$0xff] }
  0xb6   : > { %12110 = vmatprep.subr.bf16.mxu0 %v13130_v8  ;;  %1871 = vrot.lane.b32.xlu1 %v263_v32, %s13080_s6 }
  0xb7   : > { %v13562_v2 = vrot.slane %v13548_v18, %v16279_v43 }
  0xb8   : > { %11064 = vmatmul.mubr.f32.gmra.mrb[4].mxu0 %v16379_v39  ;;  %v16390_v39 = vand.u32 4294901760, %v16372_v26  ;;  %v262_v26 = vld [vmem:[%s16244_s3 + $0x38] sm:$0xff] }
  0xb9   : > { %11066 = vmatprep.mubr.f32.mxu0 %v16380_v41  ;;  %v1823_v4 = vmul.f32 %v13562_v2, %v13556_v15  ;;  %v1824_v29 = vmul.f32 %v13562_v2, %v13568_v40  ;;  %v16392_v41 = vand.u32 4294901760, %v13373_v22  ;;  %v16396_v22 = vand.u32 4294901760, %v13414_v21 }
  0xbb   : > { %1827 = vrot.lane.b32.xlu0 %v1823_v4, %s13081_s18 }
  0xbc   : > { %11067 = vmatmul.mubr.f32.gmra.mrb[6].mxu0 %v16381_v44  ;;  %v16393_v44 = vand.u32 4294901760, %v13376_v16 }
  0xbd   : > { %11069 = vmatprep.mubr.f32.mxu0 %v16382_v24 }
  0xbf   : > { %1829 = vrot.lane.b32.xlu0 %v1824_v29, %s13081_s18 }
  0xc0   : > { %11070 = vmatmul.mubr.f32.gmra.mrb[8].mxu0 %v16384_v47 }
  0xc1   : > { %11072 = vmatprep.mubr.f32.mxu0 %v16385_v10 }
  0xc3   : > { %1861 = vrot.lane.b32.xlu0 %v258_v28, %s13080_s6 }
  0xc4   : > { %11073 = vmatmul.mubr.f32.gmra.mrb[10].mxu0 %v16386_v9 }
  0xc5   : > { %11075 = vmatprep.mubr.f32.mxu0 %v16387_v7 }
  0xc7   : > { %1865 = vrot.lane.b32.xlu0 %v260_v13, %s13080_s6 }
  0xc8   : > { %11076 = vmatmul.mubr.f32.gmra.mrb[12].mxu0 %v16388_v6 }
  0xc9   : > { %11078 = vmatprep.mubr.f32.mxu0 %v16389_v52 }
  0xcb   : > { %1869 = vrot.lane.b32.xlu0 %v262_v26, %s13080_s6 }
  0xcc   : > { %11079 = vmatmul.mubr.f32.gmra.mrb[14].mxu0 %v16390_v39 }
  0xcd   : > { %11081 = vmatprep.mubr.f32.mxu0 %v16391_v11 }
  0xd0   : > { %11082 = vmatmul.mubr.f32.gmra.mrb[16].mxu0 %v16392_v41 }
  0xd1   : > { %11084 = vmatprep.mubr.f32.mxu0 %v16393_v44 }
  0xd4   : > { %11085 = vmatmul.mubr.f32.gmra.mrb[18].mxu0 %v16394_v37 }
  0xd5   : > { %11087 = vmatprep.mubr.f32.mxu0 %v16395_v50 }
  0xd8   : > { %11088 = vmatmul.mubr.f32.gmra.mrb[20].mxu0 %v16396_v22 }
  0xd9   : > { %11090 = vmatprep.mubr.f32.mxu0 %v628_v57 }
  0xdc   : > { %11091 = vmatmul.mubr.f32.gmra.mrb[22].mxu0 %v638_v14 }
  0xdd   : > { %11101 = vmatprep.mubr.f32.mxu0 %v13175_v30 }
  0xe0   : > { %11102 = vmatmul.mubr.f32.vlgmr.msra.gmra.mrb[0].mxu0 %v13177_v33 }
  0xe1   : > { %12112 = vmatpush3.bf16.msra.mxu0 %v13130_v8  ;;  %11104 = vmatprep.mubr.f32.mxu0 %v13181_v35  ;;  %v16280_v8 = vsub.s32 0, %v13540_v54 }
  0xe2   : > { %12114 = vmatprep.subr.bf16.mxu0 %v13138_v12 }
  0xe4   : > { %11105 = vmatmul.mubr.f32.gmra.mrb[2].mxu0 %v13192_v42 }
  0xe5   : > { %11107 = vmatprep.mubr.f32.mxu0 %v13198_v45  ;;  %12116 = vmatpush3.bf16.msra.mxu0 %v13138_v12  ;;  %v13678_v12 = vrot.slane %v13548_v18, %v16280_v8 }
  0xe7   : > { %v3718_v57 = vmul.f32 %v13678_v12, %v13699_v58 }
  0xe8   : > { %11108 = vmatmul.mubr.f32.gmra.mrb[4].mxu0 %v13200_v46 }
  0xe9   : > { %11110 = vmatprep.mubr.f32.mxu0 %v13208_v51 }
  0xec   : > { %11111 = vmatmul.mubr.f32.gmra.mrb[6].mxu0 %v13233_v63 }
  0xed   : > { %11113 = vmatprep.mubr.f32.mxu0 %v13261_v31 }
  0xf0   : > { %11114 = vmatmul.mubr.f32.gmra.mrb[8].mxu0 %v13264_v36 }
  0xf1   : > { %11116 = vmatprep.mubr.f32.mxu0 %v13271_v55 }
  0xf4   : > { %11117 = vmatmul.mubr.f32.gmra.mrb[10].mxu0 %v13273_v56 }
  0xf5   : > { %11119 = vmatprep.mubr.f32.mxu0 %v13294_v19 }
  0xf8   : > { %11120 = vmatmul.mubr.f32.gmra.mrb[12].mxu0 %v13301_v25  ;;  %v13680_v16 = vpop.permute.xlu1 %1857 }
  0xf9   : > { %11122 = vmatprep.mubr.f32.mxu0 %v13324_v17 }
  0xfc   : > { %11123 = vmatmul.mubr.f32.gmra.mrb[14].mxu0 %v13326_v34 }
  0xfd   : > { %11125 = vmatprep.mubr.f32.mxu0 %v13343_v62 }
 0x100   : > { %11126 = vmatmul.mubr.f32.gmra.mrb[16].mxu0 %v13359_v0 }
 0x101   : > { %11128 = vmatprep.mubr.f32.mxu0 %v13361_v5 }
 0x104   : > { %11129 = vmatmul.mubr.f32.gmra.mrb[18].mxu0 %v13368_v23 }
 0x105   : > { %11131 = vmatprep.mubr.f32.mxu0 %v13379_v38 }
 0x108   : > { %11132 = vmatmul.mubr.f32.gmra.mrb[20].mxu0 %v13395_v1 }
 0x109   : > { %11134 = vmatprep.mubr.f32.mxu0 %v13400_v61 }
 0x10c   : > { %11135 = vmatmul.mubr.f32.gmra.mrb[22].mxu0 %v13416_v48 }
 0x10d   : > { %11145 = vmatprep.mubr.f32.mxu0 %v13175_v30 }
 0x110   : > { %11146 = vmatmul.mubr.f32.vlgmr.msra.gmra.mrb[0].mxu0 %v13177_v33  ;;  %v1816_v33 = vmul.f32 %v13678_v12, %v13568_v40 }
 0x111   : > { %11148 = vmatprep.mubr.f32.mxu0 %v13181_v35  ;;  %v1815_v35 = vmul.f32 %v13678_v12, %v13556_v15 }
 0x114   : > { %11149 = vmatmul.mubr.f32.gmra.mrb[2].mxu0 %v13192_v42  ;;  %v13686_v42 = vpop.permute.xlu1 %1859 }
 0x115   : > { %11151 = vmatprep.mubr.f32.mxu0 %v13198_v45 }
 0x118   : > { %11152 = vmatmul.mubr.f32.gmra.mrb[4].mxu0 %v13200_v46 }
 0x119   : > { %11154 = vmatprep.mubr.f32.mxu0 %v13208_v51 }
 0x11c   : > { %11155 = vmatmul.mubr.f32.gmra.mrb[6].mxu0 %v13233_v63 }
 0x11d   : > { %11157 = vmatprep.mubr.f32.mxu0 %v13261_v31 }
 0x120   : > { %11158 = vmatmul.mubr.f32.gmra.mrb[8].mxu0 %v13264_v36 }
 0x121   : > { %11160 = vmatprep.mubr.f32.mxu0 %v13271_v55 }
 0x124   : > { %11161 = vmatmul.mubr.f32.gmra.mrb[10].mxu0 %v13273_v56 }
 0x125   : > { %11163 = vmatprep.mubr.f32.mxu0 %v13294_v19 }
 0x128   : > { %11164 = vmatmul.mubr.f32.gmra.mrb[12].mxu0 %v13301_v25  ;;  %v13688_v25 = vpop.permute.xlu1 %1863 }
 0x129   : > { %11166 = vmatprep.mubr.f32.mxu0 %v13324_v17 }
 0x12c   : > { %11167 = vmatmul.mubr.f32.gmra.mrb[14].mxu0 %v13326_v34  ;;  %v13718_v47 = vpop.permute.xlu1 %1867 }
 0x12d   : > { %11169 = vmatprep.mubr.f32.mxu0 %v13343_v62  ;;  %v1828_v30 = vpop.permute.xlu0 %1827 }
 0x130   : > { %11170 = vmatmul.mubr.f32.gmra.mrb[16].mxu0 %v13359_v0  ;;  %v13693_v0 = vld [vmem:[%s13538_s9 + $0x18] sm:$0xff]  ;;  %v13743_v26 = vpop.permute.xlu1 %1871 }
 0x131   : > { %11172 = vmatprep.mubr.f32.mxu0 %v13361_v5  ;;  %v1830_v46 = vpop.permute.xlu0 %1829  ;;  %v3719_v20 = vmul.f32 %v13678_v12, %v13693_v0 }
 0x134   : > { %11173 = vmatmul.mubr.f32.gmra.mrb[18].mxu0 %v13368_v23 }
 0x135   : > { %11175 = vmatprep.mubr.f32.mxu0 %v13379_v38  ;;  %v13695_v23 = vpop.permute.xlu0 %1861 }
 0x138   : > { %11176 = vmatmul.mubr.f32.gmra.mrb[20].mxu0 %v13395_v1 }
 0x139   : > { %11178 = vmatprep.mubr.f32.mxu0 %v13400_v61  ;;  %v13722_v27 = vpop.permute.xlu0 %1865 }
 0x13c   : > { %11179 = vmatmul.mubr.f32.gmra.mrb[22].mxu0 %v13416_v48 }
 0x1e3   : > { %v11147_v45 = vpop.f32.mrb[0].mxu0 }
 0x1e4   : > { %v1818_v48 = vadd.f32 %v11147_v45, %v1816_v33  ;;  %v1669_v51 = vpop.f32.mrb[1].mxu0  ;;  %v13753_v33 = vpop.permute.xlu0 %1869  ;;  %v13758_v45 = vld [vmem:[%s13538_s9 + $0x20] sm:$0xff] }
 0x1e5   : > { %v1817_v62 = vadd.f32 %v1815_v35, %v1669_v51  ;;  %v16278_v51 = vsub.s32 3, %v13540_v54 }
 0x1e6   : > { %v2948_v63 = vand.u32 4294901760, %v1818_v48 }
 0x1e7   : > { %v2945_v31 = vand.u32 4294901760, %v1817_v62  ;;  %v11150_v36 = vpop.f32.mrb[2].mxu0 }
 0x1e8   : > { %v3100_v55 = vsub.f32 %v1818_v48, %v2948_v63  ;;  %v1834_v56 = vadd.f32 %v11150_v36, %v1830_v46  ;;  %v1681_v19 = vpop.f32.mrb[3].mxu0 }
 0x1e9   : > { %v13690_v17 = vpack.c.bf16 %v2948_v63, %v2945_v31  ;;  %v3093_v34 = vsub.f32 %v1817_v62, %v2945_v31  ;;  %v1833_v38 = vadd.f32 %v1828_v30, %v1681_v19  ;;  %v13751_v30 = vld [vmem:[%s13538_s9 + $0x28] sm:$0xff]  ;;  %v5572_v19 = vmul.f32 %v13678_v12, %v13758_v45 }
 0x1ea   : > { %v3101_v5 = vand.u32 4294901760, %v3100_v55  ;;  %1997 = vrot.lane.b32.xlu1 %v1834_v56, %s13082_s29  ;;  %v5573_v36 = vmul.f32 %v13678_v12, %v13751_v30 }
 0x1eb   : > { %v3094_v1 = vand.u32 4294901760, %v3093_v34  ;;  %1995 = vrot.lane.b32.xlu0 %v1833_v38, %s13082_s29  ;;  %v11153_v60 = vpop.f32.mrb[4].mxu0  ;;  %v13702_v61 = vpack.c.bf16 %v3100_v55, %v3093_v34 }
 0x1ec   : > { %v1693_v14 = vpop.f32.mrb[5].mxu0  ;;  %v13705_v21 = vmul.f32 %v11153_v60, %v13686_v42  ;;  %v3102_v24 = vsub.f32 %v3100_v55, %v3101_v5  ;;  %v13725_v7 = vmul.f32 %v11153_v60, %v13688_v25  ;;  %v13741_v44 = vmul.f32 %v11153_v60, %v13718_v47 }
 0x1ed   : > { %v13710_v49 = vmul.f32 %v13680_v16, %v1693_v14  ;;  %v3095_v53 = vsub.f32 %v3093_v34, %v3094_v1  ;;  %v13716_v59 = vpack.c.bf16 %v3101_v5, %v3094_v1  ;;  %v13728_v52 = vmul.f32 %v13695_v23, %v1693_v14 }
 0x1ee   : > { %1979 = vrot.lane.b32.xlu1 %v13705_v21, %s13080_s6  ;;  %v3103_v3 = vand.u32 4294901760, %v3102_v24  ;;  %v13748_v22 = vmul.f32 %v13722_v27, %v1693_v14  ;;  %v13772_v31 = vmul.f32 %v11153_v60, %v13743_v26  ;;  %v13777_v56 = vmul.f32 %v13753_v33, %v1693_v14 }
 0x1ef   : > { %1977 = vrot.lane.b32.xlu0 %v13710_v49, %s13080_s6  ;;  %v11156_v10 = vpop.f32.mrb[6].mxu0  ;;  %v3096_v29 = vand.u32 4294901760, %v3095_v53  ;;  %v1892_v60 = vrot.slane %v13548_v18, %v16278_v51 }
 0x1f0   : > { %v3721_v9 = vadd.f32 %v11156_v10, %v3719_v20  ;;  %v1705_v4 = vpop.f32.mrb[7].mxu0 }
 0x1f1   : > { %v3720_v6 = vadd.f32 %v3718_v57, %v1705_v4  ;;  %v13732_v28 = vpack.c.bf16 %v3103_v3, %v3096_v29 }
 0x1f2   : > { %v4802_v32 = vand.u32 4294901760, %v3721_v9  ;;  %1983 = vrot.lane.b32.xlu1 %v13725_v7, %s13080_s6 }
 0x1f3   : > { %v4799_v39 = vand.u32 4294901760, %v3720_v6  ;;  %1981 = vrot.lane.b32.xlu0 %v13728_v52, %s13080_s6  ;;  %v13736_v11 = vpop.f32.mrb[8].mxu0 }
 0x1f4   : > { %v4954_v13 = vsub.f32 %v3721_v9, %v4802_v32  ;;  %v13738_v41 = vpop.f32.mrb[9].mxu0 }
 0x1f5   : > { %v13745_v37 = vpack.c.bf16 %v4802_v32, %v4799_v39  ;;  %v4947_v50 = vsub.f32 %v3720_v6, %v4799_v39  ;;  %v249_v32 = vld [vmem:[%s13538_s9 + $0x38] sm:$0xff] }
 0x1f6   : > { %v4955_v35 = vand.u32 4294901760, %v4954_v13  ;;  %1987 = vrot.lane.b32.xlu1 %v13741_v44, %s13080_s6 }
 0x1f7   : > { %16397 = vst [vmem:[#allocation3_spill] sm:$0xff] %v13745_v37  ;;  %v4948_v46 = vand.u32 4294901760, %v4947_v50  ;;  %1985 = vrot.lane.b32.xlu0 %v13748_v22, %s13080_s6  ;;  %v13762_v48 = vpop.f32.mrb[10].mxu0  ;;  %12190 = vmatprep.subr.bf16.mxu0 %v13745_v37  ;;  %v13766_v62 = vpack.c.bf16 %v4954_v13, %v4947_v50 }
 0x1f8   : > { %v13768_v63 = vpop.f32.mrb[11].mxu0  ;;  %12192 = vmatpush3.bf16.msra.mxu0 %v13745_v37  ;;  %v4956_v55 = vsub.f32 %v4954_v13, %v4955_v35  ;;  %v248_v13 = vld [vmem:[%s13538_s9 + $0x30] sm:$0xff] }
 0x1f9   : > { %16398 = vst [vmem:[#allocation4_spill] sm:$0xff] %v13766_v62  ;;  %v4949_v34 = vsub.f32 %v4947_v50, %v4948_v46  ;;  %v13783_v5 = vpack.c.bf16 %v4955_v35, %v4948_v46 }
 0x1fa   : > { %1991 = vrot.lane.b32.xlu1 %v13772_v31, %s13080_s6  ;;  %v4957_v38 = vand.u32 4294901760, %v4956_v55  ;;  %v7427_v55 = vmul.f32 %v13678_v12, %v249_v32 }
 0x1fb   : > { %16399 = vst [vmem:[#allocation5_spill] sm:$0xff] %v13783_v5  ;;  %1989 = vrot.lane.b32.xlu0 %v13777_v56, %s13080_s6  ;;  %v11165_v1 = vpop.f32.mrb[12].mxu0  ;;  %v4950_v14 = vand.u32 4294901760, %v4949_v34 }
 0x1fc   : > { %v5575_v20 = vadd.f32 %v11165_v1, %v5573_v36  ;;  %v1741_v57 = vpop.f32.mrb[13].mxu0 }
 0x1fd   : > { %v5574_v53 = vadd.f32 %v5572_v19, %v1741_v57  ;;  %v13790_v24 = vpack.c.bf16 %v4957_v38, %v4950_v14  ;;  %v7426_v19 = vmul.f32 %v13678_v12, %v248_v13 }
 0x1fe   : > { %v6656_v10 = vand.u32 4294901760, %v5575_v20 }
 0x1ff   : > { %16400 = vst [vmem:[#allocation6_spill] sm:$0xff] %v13790_v24  ;;  %v6653_v9 = vand.u32 4294901760, %v5574_v53  ;;  %1894 = vrot.lane.b32.xlu0 %v1892_v60, %s13080_s6  ;;  %v13793_v4 = vpop.f32.mrb[14].mxu0  ;;  %12194 = vmatprep.subr.bf16.mxu0 %v13790_v24 }
 0x200   : > { %16401 = vst [vmem:[#allocation7_spill] sm:$0xff] %v13793_v4  ;;  %v6808_v29 = vsub.f32 %v5575_v20, %v6656_v10  ;;  %v13796_v3 = vpop.f32.mrb[15].mxu0 }
 0x201   : > { %16402 = vst [vmem:[#allocation8_spill] sm:$0xff] %v13796_v3  ;;  %v13798_v6 = vpack.c.bf16 %v6656_v10, %v6653_v9  ;;  %v6801_v18 = vsub.f32 %v5574_v53, %v6653_v9 }
 0x202   : > { %v6809_v39 = vand.u32 4294901760, %v6808_v29 }
 0x203   : > { %16403 = vst [vmem:[#allocation9_spill] sm:$0xff] %v13798_v6  ;;  %v6802_v50 = vand.u32 4294901760, %v6801_v18  ;;  %v13802_v35 = vpop.f32.mrb[16].mxu0  ;;  %v13804_v46 = vpack.c.bf16 %v6808_v29, %v6801_v18 }
 0x204   : > { %16404 = vst [vmem:[#allocation10_spill] sm:$0xff] %v13802_v35  ;;  %v13806_v36 = vpop.f32.mrb[17].mxu0  ;;  %v6810_v38 = vsub.f32 %v6808_v29, %v6809_v39 }
 0x205   : > { %16405 = vst [vmem:[#allocation11_spill] sm:$0xff] %v13804_v46  ;;  %16406 = vst [vmem:[#allocation12_spill] sm:$0xff] %v13806_v36  ;;  %v6803_v34 = vsub.f32 %v6801_v18, %v6802_v50  ;;  %v13810_v1 = vpack.c.bf16 %v6809_v39, %v6802_v50 }
 0x206   : > { %v6811_v53 = vand.u32 4294901760, %v6810_v38 }
 0x207   : > { %16407 = vst [vmem:[#allocation13_spill] sm:$0xff] %v13810_v1  ;;  %v11174_v60 = vpop.f32.mrb[18].mxu0  ;;  %v6804_v57 = vand.u32 4294901760, %v6803_v34 }
 0x208   : > { %v7429_v14 = vadd.f32 %v11174_v60, %v7427_v55  ;;  %v1777_v20 = vpop.f32.mrb[19].mxu0 }
 0x209   : > { %v7428_v10 = vadd.f32 %v7426_v19, %v1777_v20  ;;  %v13812_v51 = vpack.c.bf16 %v6811_v53, %v6804_v57 }
 0x20a   : > { %v8510_v9 = vand.u32 4294901760, %v7429_v14 }
 0x20b   : > { %16408 = vst [vmem:[#allocation14_spill] sm:$0xff] %v13812_v51  ;;  %v8507_v43 = vand.u32 4294901760, %v7428_v10  ;;  %v13814_v8 = vpop.f32.mrb[20].mxu0 }
 0x20c   : > { %16409 = vst [vmem:[#allocation15_spill] sm:$0xff] %v13814_v8  ;;  %v8662_v46 = vsub.f32 %v7429_v14, %v8510_v9  ;;  %v13816_v32 = vpop.f32.mrb[21].mxu0 }
 0x20d   : > { %16410 = vst [vmem:[#allocation16_spill] sm:$0xff] %v13816_v32  ;;  %v13818_v12 = vpack.c.bf16 %v8510_v9, %v8507_v43  ;;  %v8655_v29 = vsub.f32 %v7428_v10, %v8507_v43 }
 0x20e   : > { %v8663_v18 = vand.u32 4294901760, %v8662_v46 }
 0x20f   : > { %16411 = vst [vmem:[#allocation17_spill] sm:$0xff] %v13818_v12  ;;  %v8656_v39 = vand.u32 4294901760, %v8655_v29  ;;  %v13820_v13 = vpop.f32.mrb[22].mxu0  ;;  %v13822_v50 = vpack.c.bf16 %v8662_v46, %v8655_v29 }
 0x210   : > { %16412 = vst [vmem:[#allocation18_spill] sm:$0xff] %v13820_v13  ;;  %v13824_v55 = vpop.f32.mrb[23].mxu0  ;;  %v8664_v34 = vsub.f32 %v8662_v46, %v8663_v18 }
 0x211   : > { %16413 = vst [vmem:[#allocation19_spill] sm:$0xff] %v13822_v50  ;;  %16414 = vst [vmem:[#allocation20_spill] sm:$0xff] %v13824_v55  ;;  %v8657_v19 = vsub.f32 %v8655_v29, %v8656_v39  ;;  %v13826_v38 = vpack.c.bf16 %v8663_v18, %v8656_v39 }
 0x212   : > { %v8665_v20 = vand.u32 4294901760, %v8664_v34 }
 0x213   : > { %16415 = vst [vmem:[#allocation21_spill] sm:$0xff] %v13826_v38  ;;  %v8658_v60 = vand.u32 4294901760, %v8657_v19 }
 0x215   : > { %v13828_v14 = vpack.c.bf16 %v8665_v20, %v8658_v60 }
 0x217   : > { %16416 = vst [vmem:[#allocation22_spill] sm:$0xff] %v13828_v14 }
 0x25c   : > { %v1998_v57 = vpop.permute.xlu1 %1997 }
 0x25d   : > { %v2017_v53 = vsel %vm264_vm0, %v1998_v57, 0  ;;  %v1996_v43 = vpop.permute.xlu0 %1995 }
 0x25e   : > { %v2023_v10 = vand.u32 4294901760, %v2017_v53  ;;  %v2015_v9 = vsel %vm264_vm0, %v1996_v43, 0 }
 0x25f   : > { %v2020_v12 = vand.u32 4294901760, %v2015_v9 }
 0x260   : > { %v13832_v1 = vsub.f32 %v2017_v53, %v2023_v10  ;;  %v1980_v50 = vpop.permute.xlu1 %1979 }
 0x261   : > { %v13834_v51 = vpack.c.bf16 %v2023_v10, %v2020_v12  ;;  %v13836_v46 = vsub.f32 %v2015_v9, %v2020_v12  ;;  %v2001_v29 = vsel %vm264_vm0, %v1980_v50, 0  ;;  %v1978_v18 = vpop.permute.xlu0 %1977 }
 0x262   : > { %v16289_v39 = vand.u32 4294901760, %v13832_v1  ;;  %v13840_v19 = vand.u32 4294901760, %v2001_v29  ;;  %v1999_v34 = vsel %vm264_vm0, %v1978_v18, 0 }
 0x263   : > { %v16291_v60 = vand.u32 4294901760, %v13836_v46  ;;  %v13844_v20 = vand.u32 4294901760, %v1999_v34  ;;  %12118 = vmatprep.subr.bf16.mxu1 %v13834_v51 }
 0x264   : > { %v13848_v57 = vsub.f32 %v2001_v29, %v13840_v19  ;;  %12120 = vmatpush3.bf16.xpose.msra.mxu1 %v13834_v51  ;;  %v1984_v12 = vpop.permute.xlu1 %1983  ;;  %v2177_v50 = vsub.f32 %v13832_v1, %v16289_v39 }
 0x265   : > { %v13855_v53 = vsub.f32 %v1999_v34, %v13844_v20  ;;  %v2005_v43 = vsel %vm264_vm0, %v1984_v12, 0  ;;  %v1982_v10 = vpop.permute.xlu0 %1981  ;;  %v2170_v9 = vsub.f32 %v13836_v46, %v16291_v60 }
 0x266   : > { %v13861_v18 = vand.u32 4294901760, %v2005_v43  ;;  %v2003_v29 = vsel %vm264_vm0, %v1982_v10, 0  ;;  %v2178_v38 = vand.u32 4294901760, %v2177_v50  ;;  %v16298_v14 = vand.u32 4294901760, %v13848_v57 }
 0x267   : > { %v13865_v6 = vand.u32 4294901760, %v2003_v29  ;;  %v2171_v39 = vand.u32 4294901760, %v2170_v9  ;;  %v16299_v34 = vand.u32 4294901760, %v13855_v53 }
 0x268   : > { %v13869_v5 = vsub.f32 %v2005_v43, %v13861_v18  ;;  %v1988_v12 = vpop.permute.xlu1 %1987  ;;  %v2099_v60 = vsub.f32 %v13848_v57, %v16298_v14 }
 0x269   : > { %v13875_v37 = vsub.f32 %v2003_v29, %v13865_v6  ;;  %v2009_v50 = vsel %vm264_vm0, %v1988_v12, 0  ;;  %v1986_v10 = vpop.permute.xlu0 %1985  ;;  %v12121_v62 = vpack.c.bf16 %v2178_v38, %v2171_v39  ;;  %v2089_v9 = vsub.f32 %v13855_v53, %v16299_v34 }
 0x26a   : > { %v13881_v24 = vand.u32 4294901760, %v2009_v50  ;;  %v2007_v43 = vsel %vm264_vm0, %v1986_v10, 0  ;;  %v16301_v55 = vand.u32 4294901760, %v13869_v5  ;;  %v2100_v39 = vand.u32 4294901760, %v2099_v60 }
 0x26b   : > { %v13885_v13 = vand.u32 4294901760, %v2007_v43  ;;  %12122 = vmatprep.subr.bf16.mxu1 %v12121_v62  ;;  %v2090_v14 = vand.u32 4294901760, %v2089_v9  ;;  %v16303_v29 = vand.u32 4294901760, %v13875_v37  ;;  %v12125_v60 = vpack.c.bf16 %v13832_v1, %v13836_v46 }
 0x26c   : > { %v13889_v12 = vsub.f32 %v2009_v50, %v13881_v24  ;;  %v1992_v38 = vpop.permute.xlu1 %1991  ;;  %v2119_v34 = vsub.f32 %v13869_v5, %v16301_v55 }
 0x26d   : > { %v13895_v32 = vsub.f32 %v2007_v43, %v13885_v13  ;;  %v2013_v10 = vsel %vm264_vm0, %v1992_v38, 0  ;;  %11185 = vmatprep.mubr.f32.mxu1 %v2090_v14  ;;  %v1990_v8 = vpop.permute.xlu0 %1989  ;;  %v2109_v9 = vsub.f32 %v13875_v37, %v16303_v29 }
 0x26e   : > { %v13901_v36 = vand.u32 4294901760, %v2013_v10  ;;  %v2011_v50 = vsel %vm264_vm0, %v1990_v8, 0  ;;  %11186 = vmatmul.mubr.f32.vlgmr.msra.gmra.mrb[0].mxu1 %v2100_v39  ;;  %v16304_v55 = vand.u32 4294901760, %v13889_v12  ;;  %v2120_v29 = vand.u32 4294901760, %v2119_v34 }
 0x26f   : > { %v13907_v43 = vand.u32 4294901760, %v2011_v50  ;;  %12124 = vmatpush3.bf16.xpose.msra.mxu1 %v12121_v62  ;;  %v2110_v38 = vand.u32 4294901760, %v2109_v9  ;;  %v16305_v14 = vand.u32 4294901760, %v13895_v32 }
 0x270   : > { %v13911_v35 = vsub.f32 %v2013_v10, %v13901_v36  ;;  %12126 = vmatprep.subr.bf16.mxu1 %v12125_v60  ;;  %v2139_v8 = vsub.f32 %v13889_v12, %v16304_v55 }
 0x271   : > { %v2147_v39 = vsub.f32 %v2011_v50, %v13907_v43  ;;  %11188 = vmatprep.mubr.f32.mxu1 %v2110_v38  ;;  %v13917_v3 = vpop.permute.xlu0 %1894  ;;  %v2129_v62 = vsub.f32 %v13895_v32, %v16305_v14 }
 0x272   : > { %11189 = vmatmul.mubr.f32.gmra.mrb[2].mxu1 %v2120_v29  ;;  %v1898_v10 = vmul.f32 %v13917_v3, %v13705_v21  ;;  %v1897_v34 = vmul.f32 %v13917_v3, %v13710_v49  ;;  %v2158_v55 = vand.u32 4294901760, %v13911_v35  ;;  %v2140_v50 = vand.u32 4294901760, %v2139_v8 }
 0x273   : > { %v2130_v9 = vand.u32 4294901760, %v2129_v62  ;;  %v2148_v4 = vand.u32 4294901760, %v2147_v39  ;;  %v1900_v21 = vmul.f32 %v13917_v3, %v13725_v7  ;;  %v1899_v49 = vmul.f32 %v13917_v3, %v13728_v52 }
 0x274   : > { %1915 = vrot.lane.b32.xlu0 %v1898_v10, %s13080_s6  ;;  %1913 = vrot.lane.b32.xlu1 %v1897_v34, %s13080_s6  ;;  %v2159_v14 = vsub.f32 %v13911_v35, %v2158_v55  ;;  %v1902_v8 = vmul.f32 %v13917_v3, %v13741_v44  ;;  %v1901_v10 = vmul.f32 %v13917_v3, %v13748_v22  ;;  %v16417_v44 = vand.u32 4294901760, %v13836_v46 }
 0x275   : > { %11191 = vmatprep.mubr.f32.mxu1 %v2130_v9  ;;  %v2149_v38 = vsub.f32 %v2147_v39, %v2148_v4  ;;  %v1904_v7 = vmul.f32 %v13917_v3, %v13772_v31  ;;  %v1903_v52 = vmul.f32 %v13917_v3, %v13777_v56  ;;  %v16418_v22 = vand.u32 4294901760, %v13832_v1 }
 0x276   : > { %11192 = vmatmul.mubr.f32.gmra.mrb[4].mxu1 %v2140_v50  ;;  %v2160_v62 = vand.u32 4294901760, %v2159_v14  ;;  %v16419_v56 = vand.u32 4294901760, %v13855_v53  ;;  %v16420_v1 = vand.u32 4294901760, %v13848_v57  ;;  %v16421_v46 = vand.u32 4294901760, %v13875_v37 }
 0x277   : > { %v2150_v29 = vand.u32 4294901760, %v2149_v38  ;;  %v12133_v31 = vpack.c.bf16 %v16418_v22, %v16417_v44  ;;  %v16423_v14 = vand.u32 4294901760, %v13895_v32 }
 0x278   : > { %1919 = vrot.lane.b32.xlu0 %v1900_v21, %s13080_s6  ;;  %1917 = vrot.lane.b32.xlu1 %v1899_v49, %s13080_s6 }
 0x279   : > { %11194 = vmatprep.mubr.f32.mxu1 %v2150_v29 }
 0x27a   : > { %11195 = vmatmul.mubr.f32.gmra.mrb[6].mxu1 %v2160_v62 }
 0x27b   : > { %11201 = vmatprep.mubr.f32.mxu1 %v13844_v20 }
 0x27c   : > { %1923 = vrot.lane.b32.xlu0 %v1902_v8, %s13080_s6  ;;  %1921 = vrot.lane.b32.xlu1 %v1901_v10, %s13080_s6 }
 0x27e   : > { %11202 = vmatmul.mubr.f32.vlgmr.msra.gmra.mrb[0].mxu1 %v13840_v19 }
 0x27f   : > { %12128 = vmatpush3.bf16.xpose.msra.mxu1 %v12125_v60  ;;  %11204 = vmatprep.mubr.f32.mxu1 %v13865_v6  ;;  %v16422_v60 = vand.u32 4294901760, %v13869_v5 }
 0x280   : > { %12130 = vmatprep.subr.bf16.mxu1 %v13834_v51  ;;  %1927 = vrot.lane.b32.xlu0 %v1904_v7, %s13080_s6 }
 0x281   : > { %1925 = vrot.lane.b32.xlu1 %v1903_v52, %s13080_s6 }
 0x282   : > { %11205 = vmatmul.mubr.f32.gmra.mrb[2].mxu1 %v13861_v18 }
 0x283   : > { %11207 = vmatprep.mubr.f32.mxu1 %v13885_v13 }
 0x286   : > { %11208 = vmatmul.mubr.f32.gmra.mrb[4].mxu1 %v13881_v24 }
 0x287   : > { %11210 = vmatprep.mubr.f32.mxu1 %v13907_v43 }
 0x28a   : > { %11211 = vmatmul.mubr.f32.gmra.mrb[6].mxu1 %v13901_v36 }
 0x28b   : > { %11217 = vmatprep.mubr.f32.mxu1 %v13855_v53 }
 0x28e   : > { %11218 = vmatmul.mubr.f32.vlgmr.msra.gmra.mrb[0].mxu1 %v13848_v57 }
 0x28f   : > { %12132 = vmatpush3.bf16.xpose.msra.mxu1 %v13834_v51  ;;  %11220 = vmatprep.mubr.f32.mxu1 %v13875_v37 }
 0x290   : > { %12134 = vmatprep.subr.bf16.mxu1 %v12133_v31 }
 0x292   : > { %11221 = vmatmul.mubr.f32.gmra.mrb[2].mxu1 %v13869_v5 }
 0x293   : > { %11223 = vmatprep.mubr.f32.mxu1 %v13895_v32 }
 0x296   : > { %11224 = vmatmul.mubr.f32.gmra.mrb[4].mxu1 %v13889_v12 }
 0x297   : > { %11226 = vmatprep.mubr.f32.mxu1 %v2147_v39  ;;  %v16425_v39 = vsub.s32 0, %v13540_v54 }
 0x29a   : > { %11227 = vmatmul.mubr.f32.gmra.mrb[6].mxu1 %v13911_v35  ;;  %v16424_v35 = vand.u32 4294901760, %v13889_v12 }
 0x29b   : > { %11233 = vmatprep.mubr.f32.mxu1 %v16419_v56 }
 0x29e   : > { %11234 = vmatmul.mubr.f32.vlgmr.msra.gmra.mrb[0].mxu1 %v16420_v1 }
 0x29f   : > { %12136 = vmatpush3.bf16.xpose.msra.mxu1 %v12133_v31  ;;  %11236 = vmatprep.mubr.f32.mxu1 %v16421_v46 }
 0x2a0   : > { %12138 = vmatprep.subr.bf16.mxu1 %v13834_v51 }
 0x2a2   : > { %11237 = vmatmul.mubr.f32.gmra.mrb[2].mxu1 %v16422_v60 }
 0x2a3   : > { %11239 = vmatprep.mubr.f32.mxu1 %v16423_v14 }
 0x2a6   : > { %11240 = vmatmul.mubr.f32.gmra.mrb[4].mxu1 %v16424_v35 }
 0x2a7   : > { %11242 = vmatprep.mubr.f32.mxu1 %v2148_v4 }
 0x2aa   : > { %11243 = vmatmul.mubr.f32.gmra.mrb[6].mxu1 %v2158_v55 }
 0x2ab   : > { %11249 = vmatprep.mubr.f32.mxu1 %v13844_v20 }
 0x2ae   : > { %11250 = vmatmul.mubr.f32.vlgmr.msra.gmra.mrb[0].mxu1 %v13840_v19 }
 0x2af   : > { %12140 = vmatpush3.bf16.xpose.msra.mxu1 %v13834_v51  ;;  %11252 = vmatprep.mubr.f32.mxu1 %v13865_v6 }
 0x2b0   : > { %12142 = vmatprep.subr.bf16.mxu1 %v13690_v17 }
 0x2b2   : > { %11253 = vmatmul.mubr.f32.gmra.mrb[2].mxu1 %v13861_v18 }
 0x2b3   : > { %11255 = vmatprep.mubr.f32.mxu1 %v13885_v13 }
 0x2b6   : > { %11256 = vmatmul.mubr.f32.gmra.mrb[4].mxu1 %v13881_v24 }
 0x2b7   : > { %11258 = vmatprep.mubr.f32.mxu1 %v13907_v43 }
 0x2ba   : > { %11259 = vmatmul.mubr.f32.gmra.mrb[6].mxu1 %v13901_v36 }
 0x2bb   : > { %11265 = vmatprep.mubr.f32.mxu1 %v13844_v20 }
 0x2be   : > { %11266 = vmatmul.mubr.f32.vlgmr.msra.gmra.mrb[0].mxu1 %v13840_v19 }
 0x2bf   : > { %12144 = vmatpush3.bf16.msra.mxu1 %v13690_v17  ;;  %11268 = vmatprep.mubr.f32.mxu1 %v13865_v6 }
 0x2c0   : > { %12146 = vmatprep.subr.bf16.mxu1 %v13732_v28 }
 0x2c2   : > { %11269 = vmatmul.mubr.f32.gmra.mrb[2].mxu1 %v13861_v18 }
 0x2c3   : > { %11271 = vmatprep.mubr.f32.mxu1 %v13885_v13 }
 0x2c6   : > { %11272 = vmatmul.mubr.f32.gmra.mrb[4].mxu1 %v13881_v24 }
 0x2c7   : > { %11274 = vmatprep.mubr.f32.mxu1 %v13907_v43  ;;  %v250_v43 = vld [vmem:[%s13538_s9 + $0x40] sm:$0xf] }
 0x2c8   : > { %v1838_v34 = vrot.slane %v250_v43, %v16425_v39 }
 0x2ca   : > { %11275 = vmatmul.mubr.f32.gmra.mrb[6].mxu1 %v13901_v36  ;;  %v1840_v9 = vsub.f32 %v13568_v40, %v1838_v34  ;;  %v1839_v50 = vsub.f32 %v13556_v15, %v1838_v34 }
 0x2cc   : > { %v1842_v38 = vand.u32 2147483647, %v1840_v9  ;;  %v1841_v21 = vand.u32 2147483647, %v1839_v50 }
 0x2ce   : > { %v1844_v49 = vmax.f32 %v1842_v38, 0.0  ;;  %v1843_v29 = vmax.f32 %v1841_v21, 0.0 }
 0x2d0   : > { %v1846_v8 = vmin.f32 %v1844_v49, 5000.0  ;;  %v1845_v7 = vmin.f32 %v1843_v29, 5000.0 }
 0x2d2   : > { %v14015_v52 = vmul.f32 0.0002, %v1846_v8  ;;  %v14017_v44 = vmul.f32 0.0002, %v1845_v7 }
 0x2e6   : > { %v1916_v37 = vpop.permute.xlu0 %1915  ;;  %v1914_v51 = vpop.permute.xlu1 %1913 }
 0x2e7   : > { %v1940_v5 = vsel %vm264_vm0, %v1916_v37, 0.0  ;;  %v1937_v4 = vsel %vm264_vm0, %v1914_v51, 0.0 }
 0x2e8   : > { %1941 = vadd.xlane.f32.xlu0 %v1940_v5  ;;  %1938 = vadd.xlane.f32.xlu1 %v1937_v4 }
 0x2ea   : > { %v1920_v6 = vpop.permute.xlu0 %1919  ;;  %v1918_v32 = vpop.permute.xlu1 %1917 }
 0x2eb   : > { %v1946_v55 = vsel %vm264_vm0, %v1920_v6, 0.0  ;;  %v1943_v13 = vsel %vm264_vm0, %v1918_v32, 0.0 }
 0x2ec   : > { %1947 = vadd.xlane.f32.xlu1 %v1946_v55  ;;  %1944 = vadd.xlane.f32.xlu0 %v1943_v13 }
 0x2ee   : > { %v1924_v24 = vpop.permute.xlu0 %1923  ;;  %v1922_v19 = vpop.permute.xlu1 %1921 }
 0x2ef   : > { %v1952_v36 = vsel %vm264_vm0, %v1924_v24, 0.0  ;;  %v1949_v20 = vsel %vm264_vm0, %v1922_v19, 0.0 }
 0x2f0   : > { %1953 = vadd.xlane.f32.xlu1 %v1952_v36  ;;  %1950 = vadd.xlane.f32.xlu0 %v1949_v20 }
 0x2f2   : > { %v1928_v57 = vpop.permute.xlu0 %1927 }
 0x2f3   : > { %v1926_v53 = vpop.permute.xlu1 %1925  ;;  %v1958_v18 = vsel %vm264_vm0, %v1928_v57, 0.0 }
 0x2f4   : > { %1959 = vadd.xlane.f32.xlu1 %v1958_v18  ;;  %v1955_v12 = vsel %vm264_vm0, %v1926_v53, 0.0 }
 0x2f5   : > { %1956 = vadd.xlane.f32.xlu0 %v1955_v12 }
 0x375   : > { %v1939_v62 = vpop.xlane.xlu1 %1938  ;;  %v1942_v10 = vpop.xlane.xlu0 %1941 }
 0x376   : > { %v1962_v56 = vmul.f32 %v1942_v10, %v14015_v52  ;;  %v1961_v40 = vmul.f32 %v1939_v62, %v14017_v44 }
 0x379   : > { %v1948_v22 = vpop.xlane.xlu1 %1947  ;;  %v1945_v31 = vpop.xlane.xlu0 %1944 }
 0x37a   : > { %v1964_v35 = vmul.f32 %v1948_v22, %v14015_v52  ;;  %v1963_v5 = vmul.f32 %v1945_v31, %v14017_v44 }
 0x37d   : > { %v1954_v60 = vpop.xlane.xlu1 %1953  ;;  %v1951_v37 = vpop.xlane.xlu0 %1950 }
 0x37e   : > { %v1966_v36 = vmul.f32 %v1954_v60, %v14015_v52  ;;  %v1965_v57 = vmul.f32 %v1951_v37, %v14017_v44 }
 0x381   : > { %v1960_v53 = vpop.xlane.xlu1 %1959 }
 0x382   : > { %v1957_v43 = vpop.xlane.xlu0 %1956  ;;  %v1968_v21 = vmul.f32 %v1960_v53, %v14015_v52 }
 0x383   : > { %v1967_v29 = vmul.f32 %v1957_v43, %v14017_v44 }
 0x391   : > { %v11267_v1 = vpop.f32.mrb[0].mxu1 }
 0x392   : > { %v12357_v15 = vadd.f32 %v11267_v1, %v1962_v56  ;;  %v2733_v46 = vpop.f32.mrb[1].mxu1 }
 0x393   : > { %v12358_v14 = vadd.f32 %v2733_v46, %v1961_v40 }
 0x394   : > { %v2780_v51 = vmul.f32 0.17677669, %v12357_v15 }
 0x395   : > { %v2779_v4 = vmul.f32 0.17677669, %v12358_v14  ;;  %v11270_v6 = vpop.f32.mrb[2].mxu1 }
 0x396   : > { %v12359_v32 = vadd.f32 %v11270_v6, %v1964_v35  ;;  %v2745_v55 = vpop.f32.mrb[3].mxu1  ;;  %v2791_v13 = vsel %vm2787_vm1, %v2780_v51, -inf }
 0x397   : > { %v12360_v24 = vadd.f32 %v2745_v55, %v1963_v5  ;;  %2792 = vmax.xlane.f32.xlu1 %v2791_v13  ;;  %v2788_v19 = vsel %vm2787_vm1, %v2779_v4, -inf }
 0x398   : > { %v2782_v20 = vmul.f32 0.17677669, %v12359_v32  ;;  %2789 = vmax.xlane.f32.xlu0 %v2788_v19 }
 0x399   : > { %v2781_v18 = vmul.f32 0.17677669, %v12360_v24  ;;  %v11273_v12 = vpop.f32.mrb[4].mxu1 }
 0x39a   : > { %v12361_v39 = vadd.f32 %v11273_v12, %v1966_v36  ;;  %v2757_v34 = vpop.f32.mrb[5].mxu1  ;;  %v2797_v9 = vsel %vm2787_vm1, %v2782_v20, -inf }
 0x39b   : > { %v12362_v50 = vadd.f32 %v2757_v34, %v1965_v57  ;;  %2798 = vmax.xlane.f32.xlu1 %v2797_v9  ;;  %v2794_v38 = vsel %vm2787_vm1, %v2781_v18, -inf }
 0x39c   : > { %v2784_v49 = vmul.f32 0.17677669, %v12361_v39  ;;  %2795 = vmax.xlane.f32.xlu0 %v2794_v38 }
 0x39d   : > { %v2783_v62 = vmul.f32 0.17677669, %v12362_v50  ;;  %v11276_v8 = vpop.f32.mrb[6].mxu1 }
 0x39e   : > { %v12363_v10 = vadd.f32 %v11276_v8, %v1968_v21  ;;  %v2769_v7 = vpop.f32.mrb[7].mxu1  ;;  %v2803_v22 = vsel %vm2787_vm1, %v2784_v49, -inf }
 0x39f   : > { %v12364_v31 = vadd.f32 %v2769_v7, %v1967_v29  ;;  %2804 = vmax.xlane.f32.xlu1 %v2803_v22  ;;  %v2800_v56 = vsel %vm2787_vm1, %v2783_v62, -inf }
 0x3a0   : > { %v2786_v40 = vmul.f32 0.17677669, %v12363_v10  ;;  %2801 = vmax.xlane.f32.xlu0 %v2800_v56 }
 0x3a1   : > { %v2785_v1 = vmul.f32 0.17677669, %v12364_v31 }
 0x3a2   : > { %v2809_v15 = vsel %vm2787_vm1, %v2786_v40, -inf }
 0x3a3   : > { %2810 = vmax.xlane.f32.xlu1 %v2809_v15  ;;  %v2806_v46 = vsel %vm2787_vm1, %v2785_v1, -inf }
 0x3a4   : > { %2807 = vmax.xlane.f32.xlu0 %v2806_v46 }
 0x424   : > { %v2793_v60 = vpop.xlane.xlu1 %2792 }
 0x425   : > { %v2813_v14 = vsub.f32 %v2780_v51, %v2793_v60  ;;  %v2790_v35 = vpop.xlane.xlu0 %2789 }
 0x426   : > { %v2812_v37 = vsub.f32 %v2779_v4, %v2790_v35  ;;  %v3722_v35 = vmul.f32 %v13562_v2, %v13699_v58 }
 0x427   : > { %v2822_v5 = vmul.f32 1.442695, %v2813_v14  ;;  %v3723_v14 = vmul.f32 %v13562_v2, %v13693_v0 }
 0x428   : > { %v2820_v6 = vmul.f32 1.442695, %v2812_v37  ;;  %v2799_v32 = vpop.xlane.xlu1 %2798 }
 0x429   : > { %12922 = vpow2.f32 %v2822_v5  ;;  %v2815_v55 = vsub.f32 %v2782_v20, %v2799_v32  ;;  %v2796_v13 = vpop.xlane.xlu0 %2795 }
 0x42a   : > { %12924 = vpow2.f32 %v2820_v6  ;;  %v2814_v24 = vsub.f32 %v2781_v18, %v2796_v13 }
 0x42b   : > { %v2826_v19 = vmul.f32 1.442695, %v2815_v55 }
 0x42c   : > { %v2824_v36 = vmul.f32 1.442695, %v2814_v24  ;;  %v2805_v57 = vpop.xlane.xlu1 %2804 }
 0x42d   : > { %12926 = vpow2.f32 %v2826_v19  ;;  %v2817_v53 = vsub.f32 %v2784_v49, %v2805_v57  ;;  %v2802_v12 = vpop.xlane.xlu0 %2801 }
 0x42e   : > { %12928 = vpow2.f32 %v2824_v36  ;;  %v2816_v43 = vsub.f32 %v2783_v62, %v2802_v12 }
 0x42f   : > { %v2830_v39 = vmul.f32 1.442695, %v2817_v53 }
 0x430   : > { %v2828_v51 = vmul.f32 1.442695, %v2816_v43  ;;  %v2811_v34 = vpop.xlane.xlu1 %2810 }
 0x431   : > { %12930 = vpow2.f32 %v2830_v39  ;;  %v2819_v4 = vsub.f32 %v2786_v40, %v2811_v34  ;;  %v2808_v9 = vpop.xlane.xlu0 %2807 }
 0x432   : > { %12932 = vpow2.f32 %v2828_v51  ;;  %v2818_v50 = vsub.f32 %v2785_v1, %v2808_v9 }
 0x433   : > { %v12923_v20 = vpop.eup %12922  ;;  %v2834_v38 = vmul.f32 1.442695, %v2819_v4 }
 0x434   : > { %v12925_v21 = vpop.eup %12924  ;;  %v2832_v18 = vmul.f32 1.442695, %v2818_v50  ;;  %v2839_v29 = vsel %vm2787_vm1, %v12923_v20, 0.0 }
 0x435   : > { %12934 = vpow2.f32 %v2834_v38  ;;  %2840 = vadd.xlane.f32.xlu1 %v2839_v29  ;;  %v2836_v49 = vsel %vm2787_vm1, %v12925_v21, 0.0 }
 0x436   : > { %12936 = vpow2.f32 %v2832_v18  ;;  %2837 = vadd.xlane.f32.xlu0 %v2836_v49 }
 0x437   : > { %v12927_v62 = vpop.eup %12926 }
 0x438   : > { %v12929_v8 = vpop.eup %12928  ;;  %v2845_v10 = vsel %vm2787_vm1, %v12927_v62, 0.0 }
 0x439   : > { %2846 = vadd.xlane.f32.xlu1 %v2845_v10  ;;  %v2842_v7 = vsel %vm2787_vm1, %v12929_v8, 0.0 }
 0x43a   : > { %2843 = vadd.xlane.f32.xlu0 %v2842_v7 }
 0x43b   : > { %v12931_v22 = vpop.eup %12930 }
 0x43c   : > { %v14039_v31 = vpop.eup %12932  ;;  %v2851_v56 = vsel %vm2787_vm1, %v12931_v22, 0.0 }
 0x43d   : > { %2852 = vadd.xlane.f32.xlu1 %v2851_v56  ;;  %v2848_v40 = vsel %vm2787_vm1, %v14039_v31, 0.0 }
 0x43e   : > { %2849 = vadd.xlane.f32.xlu0 %v2848_v40 }
 0x43f   : > { %v14044_v1 = vpop.eup %12934 }
 0x440   : > { %v14046_v15 = vpop.eup %12936  ;;  %v2857_v46 = vsel %vm2787_vm1, %v14044_v1, 0.0 }
 0x441   : > { %2858 = vadd.xlane.f32.xlu1 %v2857_v46  ;;  %v2854_v60 = vsel %vm2787_vm1, %v14046_v15, 0.0  ;;  %v14098_v46 = vmul.f32 %v13762_v48, %v13686_v42 }
 0x442   : > { %2855 = vadd.xlane.f32.xlu0 %v2854_v60 }
 0x452   : > { %3728 = vrot.lane.b32.xlu1 %v3723_v14, %s13081_s18 }
 0x458   : > { %3726 = vrot.lane.b32.xlu0 %v3722_v35, %s13081_s18 }
 0x4c2   : > { %v2841_v37 = vpop.xlane.xlu1 %2840 }
 0x4c3   : > { %12938 = vrcp.f32 %v2841_v37  ;;  %v2838_v5 = vpop.xlane.xlu0 %2837  ;;  %v14111_v37 = vmul.f32 %v13680_v16, %v13768_v63 }
 0x4c4   : > { %12940 = vrcp.f32 %v2838_v5 }
 0x4c6   : > { %v2847_v6 = vpop.xlane.xlu1 %2846 }
 0x4c7   : > { %12942 = vrcp.f32 %v2847_v6  ;;  %v2844_v32 = vpop.xlane.xlu0 %2843 }
 0x4c8   : > { %12944 = vrcp.f32 %v2844_v32 }
 0x4ca   : > { %v2853_v55 = vpop.xlane.xlu1 %2852 }
 0x4cb   : > { %12946 = vrcp.f32 %v2853_v55  ;;  %v2850_v13 = vpop.xlane.xlu0 %2849 }
 0x4cc   : > { %12948 = vrcp.f32 %v2850_v13 }
 0x4cd   : > { %v12939_v0 = vpop.eup %12938 }
 0x4ce   : > { %v12941_v24 = vpop.eup %12940  ;;  %v14058_v19 = vmul.f32 %v12939_v0, %v12923_v20  ;;  %v2859_v36 = vpop.xlane.xlu1 %2858 }
 0x4cf   : > { %12950 = vrcp.f32 %v2859_v36  ;;  %v2856_v58 = vpop.xlane.xlu0 %2855  ;;  %v14060_v57 = vmul.f32 %v12941_v24, %v12925_v21 }
 0x4d0   : > { %v2924_v53 = vsel %vm2787_vm1, %v14058_v19, 0  ;;  %12952 = vrcp.f32 %v2856_v58 }
 0x4d1   : > { %v12943_v12 = vpop.eup %12942  ;;  %v14064_v43 = vand.u32 4294901760, %v2924_v53  ;;  %v2921_v39 = vsel %vm2787_vm1, %v14060_v57, 0 }
 0x4d2   : > { %v12945_v51 = vpop.eup %12944  ;;  %v3729_v34 = vpop.permute.xlu1 %3728  ;;  %v14068_v4 = vand.u32 4294901760, %v2921_v39  ;;  %v14070_v9 = vmul.f32 %v12943_v12, %v12927_v62 }
 0x4d3   : > { %v14073_v50 = vsub.f32 %v2924_v53, %v14064_v43  ;;  %v3733_v20 = vadd.f32 %v13736_v11, %v3729_v34  ;;  %v3727_v38 = vpop.permute.xlu0 %3726  ;;  %v14076_v21 = vmul.f32 %v12945_v51, %v12929_v8 }
 0x4d4   : > { %16426 = vst [vmem:[#allocation23_spill] sm:$0xff] %v14070_v9  ;;  %v3732_v18 = vadd.f32 %v3727_v38, %v13738_v41  ;;  %v14080_v29 = vsub.f32 %v2921_v39, %v14068_v4  ;;  %v2930_v49 = vsel %vm2787_vm1, %v14070_v9, 0  ;;  %v14151_v38 = vmul.f32 %v13695_v23, %v13768_v63  ;;  %v16447_v9 = vld [vmem:[#allocation16_spill] sm:$0xff] }
 0x4d5   : > { %16427 = vst [vmem:[#allocation24_spill] sm:$0xff] %v14076_v21  ;;  %v12947_v10 = vpop.eup %12946  ;;  %3856 = vrot.lane.b32.xlu0 %v3733_v20, %s13082_s29  ;;  %v3023_v62 = vand.u32 4294901760, %v14073_v50  ;;  %v2927_v7 = vsel %vm2787_vm1, %v14076_v21, 0  ;;  %v14088_v11 = vand.u32 4294901760, %v2930_v49 }
 0x4d6   : > { %v12949_v8 = vpop.eup %12948  ;;  %3854 = vrot.lane.b32.xlu1 %v3732_v18, %s13082_s29  ;;  %v3013_v41 = vand.u32 4294901760, %v14080_v29  ;;  %v14092_v56 = vand.u32 4294901760, %v2927_v7  ;;  %v14094_v40 = vmul.f32 %v12947_v10, %v12931_v22 }
 0x4d7   : > { %v3024_v60 = vsub.f32 %v14073_v50, %v3023_v62  ;;  %v14104_v14 = vsub.f32 %v2930_v49, %v14088_v11  ;;  %v14107_v35 = vmul.f32 %v12949_v8, %v14039_v31  ;;  %v14125_v31 = vmul.f32 %v13762_v48, %v13688_v25 }
 0x4d8   : > { %16428 = vst [vmem:[#allocation25_spill] sm:$0xff] %v14094_v40  ;;  %v3014_v22 = vsub.f32 %v14080_v29, %v3013_v41  ;;  %v14117_v5 = vsub.f32 %v2927_v7, %v14092_v56  ;;  %v2936_v6 = vsel %vm2787_vm1, %v14094_v40, 0 }
 0x4d9   : > { %16429 = vst [vmem:[#allocation26_spill] sm:$0xff] %v14107_v35  ;;  %v12951_v32 = vpop.eup %12950  ;;  %3838 = vrot.lane.b32.xlu0 %v14098_v46, %s13080_s6  ;;  %v16307_v55 = vand.u32 4294901760, %v14104_v14  ;;  %v2933_v13 = vsel %vm2787_vm1, %v14107_v35, 0  ;;  %v14130_v0 = vand.u32 4294901760, %v2936_v6  ;;  %v3025_v39 = vand.u32 4294901760, %v3024_v60 }
 0x4da   : > { %v12953_v24 = vpop.eup %12952  ;;  %3836 = vrot.lane.b32.xlu1 %v14111_v37, %s13080_s6  ;;  %v3015_v36 = vand.u32 4294901760, %v3014_v22  ;;  %v3033_v58 = vand.u32 4294901760, %v14117_v5  ;;  %v14135_v53 = vand.u32 4294901760, %v2933_v13  ;;  %v14138_v12 = vmul.f32 %v12951_v32, %v14044_v1 }
 0x4db   : > { %v3044_v51 = vsub.f32 %v14104_v14, %v16307_v55  ;;  %v14144_v34 = vsub.f32 %v2936_v6, %v14130_v0  ;;  %v14147_v20 = vmul.f32 %v12953_v24, %v14046_v15  ;;  %v14177_v32 = vmul.f32 %v13762_v48, %v13718_v47 }
 0x4dc   : > { %16430 = vst [vmem:[#allocation27_spill] sm:$0xff] %v14138_v12  ;;  %11281 = vmatprep.mubr.f32.mxu1 %v3015_v36  ;;  %v3034_v1 = vsub.f32 %v14117_v5, %v3033_v58  ;;  %v14157_v18 = vsub.f32 %v2933_v13, %v14135_v53  ;;  %v2942_v49 = vsel %vm2787_vm1, %v14138_v12, 0  ;;  %v14185_v24 = vmul.f32 %v13722_v27, %v13768_v63 }
 0x4dd   : > { %16431 = vst [vmem:[#allocation28_spill] sm:$0xff] %v14147_v20  ;;  %11282 = vmatmul.mubr.f32.vlgmr.msra.gmra.mrb[8].mxu1 %v3025_v39  ;;  %3842 = vrot.lane.b32.xlu0 %v14125_v31, %s13080_s6  ;;  %v16306_v15 = vand.u32 4294901760, %v14144_v34  ;;  %v2939_v10 = vsel %vm2787_vm1, %v14147_v20, 0  ;;  %v14166_v7 = vand.u32 4294901760, %v2942_v49  ;;  %v3045_v6 = vand.u32 4294901760, %v3044_v51 }
 0x4de   : > { %12148 = vmatpush3.bf16.msra.mxu1 %v13732_v28  ;;  %3840 = vrot.lane.b32.xlu1 %v14151_v38, %s13080_s6  ;;  %v3035_v8 = vand.u32 4294901760, %v3034_v1  ;;  %v3053_v60 = vand.u32 4294901760, %v14157_v18  ;;  %v14172_v22 = vand.u32 4294901760, %v2939_v10 }
 0x4df   : > { %12150 = vmatprep.subr.bf16.mxu1 %v13702_v61  ;;  %v3064_v13 = vsub.f32 %v14144_v34, %v16306_v15  ;;  %v3082_v28 = vsub.f32 %v2942_v49, %v14166_v7 }
 0x4e0   : > { %11284 = vmatprep.mubr.f32.mxu1 %v3035_v8  ;;  %v3054_v36 = vsub.f32 %v14157_v18, %v3053_v60  ;;  %v3072_v39 = vsub.f32 %v2939_v10, %v14172_v22  ;;  %v14195_v8 = vmul.f32 %v13762_v48, %v13743_v26  ;;  %v14199_v10 = vmul.f32 %v13753_v33, %v13768_v63 }
 0x4e1   : > { %11285 = vmatmul.mubr.f32.gmra.mrb[10].mxu1 %v3045_v6  ;;  %3846 = vrot.lane.b32.xlu0 %v14177_v32, %s13080_s6  ;;  %v3083_v51 = vand.u32 4294901760, %v3082_v28  ;;  %v3065_v49 = vand.u32 4294901760, %v3064_v13  ;;  %v5576_v48 = vmul.f32 %v13562_v2, %v13758_v45 }
 0x4e2   : > { %3844 = vrot.lane.b32.xlu1 %v14185_v24, %s13080_s6  ;;  %v3055_v1 = vand.u32 4294901760, %v3054_v36  ;;  %v3073_v15 = vand.u32 4294901760, %v3072_v39  ;;  %v5577_v36 = vmul.f32 %v13562_v2, %v13751_v30  ;;  %v16433_v30 = vand.u32 4294901760, %v14144_v34 }
 0x4e3   : > { %v3084_v55 = vsub.f32 %v3082_v28, %v3083_v51 }
 0x4e4   : > { %11287 = vmatprep.mubr.f32.mxu1 %v3055_v1  ;;  %v3074_v6 = vsub.f32 %v3072_v39, %v3073_v15 }
 0x4e5   : > { %11288 = vmatmul.mubr.f32.gmra.mrb[12].mxu1 %v3065_v49  ;;  %3850 = vrot.lane.b32.xlu0 %v14195_v8, %s13080_s6  ;;  %v3085_v1 = vand.u32 4294901760, %v3084_v55 }
 0x4e6   : > { %3848 = vrot.lane.b32.xlu1 %v14199_v10, %s13080_s6  ;;  %v3075_v13 = vand.u32 4294901760, %v3074_v6 }
 0x4e8   : > { %11290 = vmatprep.mubr.f32.mxu1 %v3075_v13 }
 0x4e9   : > { %11291 = vmatmul.mubr.f32.gmra.mrb[14].mxu1 %v3085_v1  ;;  %5582 = vrot.lane.b32.xlu0 %v5577_v36, %s13081_s18 }
 0x4ea   : > { %11297 = vmatprep.mubr.f32.mxu1 %v14068_v4  ;;  %5580 = vrot.lane.b32.xlu1 %v5576_v48, %s13081_s18 }
 0x4ed   : > { %11298 = vmatmul.mubr.f32.vlgmr.msra.gmra.mrb[8].mxu1 %v14064_v43 }
 0x4ee   : > { %12152 = vmatpush3.bf16.msra.mxu1 %v13702_v61  ;;  %11300 = vmatprep.mubr.f32.mxu1 %v14092_v56  ;;  %v16432_v61 = vand.u32 4294901760, %v14104_v14 }
 0x4ef   : > { %12154 = vmatprep.subr.bf16.mxu1 %v13690_v17 }
 0x4f1   : > { %11301 = vmatmul.mubr.f32.gmra.mrb[10].mxu1 %v14088_v11 }
 0x4f2   : > { %11303 = vmatprep.mubr.f32.mxu1 %v14135_v53 }
 0x4f5   : > { %11304 = vmatmul.mubr.f32.gmra.mrb[12].mxu1 %v14130_v0 }
 0x4f6   : > { %11306 = vmatprep.mubr.f32.mxu1 %v14172_v22 }
 0x4f9   : > { %11307 = vmatmul.mubr.f32.gmra.mrb[14].mxu1 %v14166_v7 }
 0x4fa   : > { %11313 = vmatprep.mubr.f32.mxu1 %v14080_v29 }
 0x4fd   : > { %11314 = vmatmul.mubr.f32.vlgmr.msra.gmra.mrb[8].mxu1 %v14073_v50 }
 0x4fe   : > { %12156 = vmatpush3.bf16.msra.mxu1 %v13690_v17  ;;  %11316 = vmatprep.mubr.f32.mxu1 %v14117_v5 }
 0x4ff   : > { %12158 = vmatprep.subr.bf16.mxu1 %v13716_v59 }
 0x501   : > { %11317 = vmatmul.mubr.f32.gmra.mrb[10].mxu1 %v14104_v14 }
 0x502   : > { %11319 = vmatprep.mubr.f32.mxu1 %v14157_v18 }
 0x505   : > { %11320 = vmatmul.mubr.f32.gmra.mrb[12].mxu1 %v14144_v34 }
 0x506   : > { %11322 = vmatprep.mubr.f32.mxu1 %v3072_v39 }
 0x509   : > { %11323 = vmatmul.mubr.f32.gmra.mrb[14].mxu1 %v3082_v28 }
 0x50a   : > { %11329 = vmatprep.mubr.f32.mxu1 %v3013_v41 }
 0x50d   : > { %11330 = vmatmul.mubr.f32.vlgmr.msra.gmra.mrb[8].mxu1 %v3023_v62 }
 0x50e   : > { %12160 = vmatpush3.bf16.msra.mxu1 %v13716_v59  ;;  %11332 = vmatprep.mubr.f32.mxu1 %v3033_v58 }
 0x50f   : > { %12162 = vmatprep.subr.bf16.mxu1 %v13690_v17 }
 0x511   : > { %11333 = vmatmul.mubr.f32.gmra.mrb[10].mxu1 %v16432_v61 }
 0x512   : > { %11335 = vmatprep.mubr.f32.mxu1 %v3053_v60 }
 0x515   : > { %11336 = vmatmul.mubr.f32.gmra.mrb[12].mxu1 %v16433_v30 }
 0x516   : > { %11338 = vmatprep.mubr.f32.mxu1 %v3073_v15 }
 0x519   : > { %11339 = vmatmul.mubr.f32.gmra.mrb[14].mxu1 %v3083_v51 }
 0x51a   : > { %11345 = vmatprep.mubr.f32.mxu1 %v14068_v4 }
 0x51d   : > { %11346 = vmatmul.mubr.f32.vlgmr.msra.gmra.mrb[8].mxu1 %v14064_v43 }
 0x51e   : > { %12164 = vmatpush3.bf16.msra.mxu1 %v13690_v17  ;;  %11348 = vmatprep.mubr.f32.mxu1 %v14092_v56 }
 0x521   : > { %11349 = vmatmul.mubr.f32.gmra.mrb[10].mxu1 %v14088_v11 }
 0x522   : > { %11351 = vmatprep.mubr.f32.mxu1 %v14135_v53 }
 0x525   : > { %11352 = vmatmul.mubr.f32.gmra.mrb[12].mxu1 %v14130_v0 }
 0x526   : > { %11354 = vmatprep.mubr.f32.mxu1 %v14172_v22 }
 0x529   : > { %11355 = vmatmul.mubr.f32.gmra.mrb[14].mxu1 %v14166_v7 }
 0x52a   : > { %11361 = vmatprep.mubr.f32.mxu1 %v14068_v4 }
 0x52d   : > { %11362 = vmatmul.mubr.f32.vlgmr.msra.gmra.mrb[8].mxu1 %v14064_v43 }
 0x52e   : > { %11364 = vmatprep.mubr.f32.mxu1 %v14092_v56 }
 0x531   : > { %11365 = vmatmul.mubr.f32.gmra.mrb[10].mxu1 %v14088_v11 }
 0x532   : > { %11367 = vmatprep.mubr.f32.mxu1 %v14135_v53 }
 0x535   : > { %11368 = vmatmul.mubr.f32.gmra.mrb[12].mxu1 %v14130_v0 }
 0x536   : > { %11370 = vmatprep.mubr.f32.mxu1 %v14172_v22 }
 0x539   : > { %11371 = vmatmul.mubr.f32.gmra.mrb[14].mxu1 %v14166_v7 }
 0x547   : > { %v3857_v17 = vpop.permute.xlu0 %3856 }
 0x548   : > { %v3876_v59 = vsel %vm264_vm0, %v3857_v17, 0  ;;  %v3855_v45 = vpop.permute.xlu1 %3854 }
 0x549   : > { %v3882_v63 = vand.u32 4294901760, %v3876_v59  ;;  %v3874_v4 = vsel %vm264_vm0, %v3855_v45, 0 }
 0x54a   : > { %v3879_v43 = vand.u32 4294901760, %v3874_v4 }
 0x54b   : > { %v14260_v50 = vsub.f32 %v3876_v59, %v3882_v63  ;;  %v3839_v29 = vpop.permute.xlu0 %3838 }
 0x54c   : > { %v14262_v62 = vpack.c.bf16 %v3882_v63, %v3879_v43  ;;  %v14264_v11 = vsub.f32 %v3874_v4, %v3879_v43  ;;  %v3860_v41 = vsel %vm264_vm0, %v3839_v29, 0  ;;  %v3837_v56 = vpop.permute.xlu1 %3836 }
 0x54d   : > { %v16312_v14 = vand.u32 4294901760, %v14260_v50  ;;  %v14268_v5 = vand.u32 4294901760, %v3860_v41  ;;  %v3858_v55 = vsel %vm264_vm0, %v3837_v56, 0 }
 0x54e   : > { %v16313_v0 = vand.u32 4294901760, %v14264_v11  ;;  %v14272_v58 = vand.u32 4294901760, %v3858_v55  ;;  %12166 = vmatprep.subr.bf16.mxu1 %v14262_v62 }
 0x54f   : > { %v14276_v53 = vsub.f32 %v3860_v41, %v14268_v5  ;;  %12168 = vmatpush3.bf16.xpose.msra.mxu1 %v14262_v62  ;;  %v3843_v34 = vpop.permute.xlu0 %3842  ;;  %v4036_v18 = vsub.f32 %v14260_v50, %v16312_v14 }
 0x550   : > { %v14283_v15 = vsub.f32 %v3858_v55, %v14272_v58  ;;  %v3864_v7 = vsel %vm264_vm0, %v3843_v34, 0  ;;  %v3841_v60 = vpop.permute.xlu1 %3840  ;;  %v4029_v22 = vsub.f32 %v14264_v11, %v16313_v0 }
 0x551   : > { %v16310_v28 = vand.u32 4294901760, %v14276_v53  ;;  %v14290_v39 = vand.u32 4294901760, %v3864_v7  ;;  %v3862_v51 = vsel %vm264_vm0, %v3841_v60, 0  ;;  %v4037_v49 = vand.u32 4294901760, %v4036_v18 }
 0x552   : > { %v14293_v6 = vand.u32 4294901760, %v3862_v51  ;;  %v4030_v36 = vand.u32 4294901760, %v4029_v22  ;;  %v16311_v13 = vand.u32 4294901760, %v14283_v15 }
 0x553   : > { %v3958_v48 = vsub.f32 %v14276_v53, %v16310_v28  ;;  %v14300_v1 = vsub.f32 %v3864_v7, %v14290_v39  ;;  %v3847_v61 = vpop.permute.xlu0 %3846  ;;  %v16434_v28 = vld [vmem:[#allocation7_spill] sm:$0xff] }
 0x554   : > { %v14303_v30 = vsub.f32 %v3862_v51, %v14293_v6  ;;  %v3868_v17 = vsel %vm264_vm0, %v3847_v61, 0  ;;  %v3845_v59 = vpop.permute.xlu1 %3844  ;;  %v12169_v45 = vpack.c.bf16 %v4037_v49, %v4030_v36  ;;  %v3948_v63 = vsub.f32 %v14283_v15, %v16311_v13 }
 0x555   : > { %v14309_v4 = vand.u32 4294901760, %v3868_v17  ;;  %v3866_v43 = vsel %vm264_vm0, %v3845_v59, 0  ;;  %v16308_v29 = vand.u32 4294901760, %v14300_v1  ;;  %v3959_v34 = vand.u32 4294901760, %v3958_v48 }
 0x556   : > { %v14313_v41 = vand.u32 4294901760, %v3866_v43  ;;  %12170 = vmatprep.subr.bf16.mxu1 %v12169_v45  ;;  %v3949_v56 = vand.u32 4294901760, %v3948_v63  ;;  %v16309_v55 = vand.u32 4294901760, %v14303_v30 }
 0x557   : > { %v14317_v18 = vsub.f32 %v3868_v17, %v14309_v4  ;;  %v3851_v7 = vpop.permute.xlu0 %3850  ;;  %v3978_v60 = vsub.f32 %v14300_v1, %v16308_v29  ;;  %v12173_v17 = vpack.c.bf16 %v14260_v50, %v14264_v11 }
 0x558   : > { %v14323_v22 = vsub.f32 %v3866_v43, %v14313_v41  ;;  %v3872_v51 = vsel %vm264_vm0, %v3851_v7, 0  ;;  %11377 = vmatprep.mubr.f32.mxu1 %v3949_v56  ;;  %v3849_v49 = vpop.permute.xlu1 %3848  ;;  %v3968_v36 = vsub.f32 %v14303_v30, %v16309_v55 }
 0x559   : > { %v14329_v48 = vand.u32 4294901760, %v3872_v51  ;;  %v3870_v61 = vsel %vm264_vm0, %v3849_v49, 0  ;;  %11378 = vmatmul.mubr.f32.vlgmr.msra.gmra.mrb[16].mxu1 %v3959_v34  ;;  %v16314_v59 = vand.u32 4294901760, %v14317_v18  ;;  %v3979_v55 = vand.u32 4294901760, %v3978_v60 }
 0x55a   : > { %v14335_v63 = vand.u32 4294901760, %v3870_v61  ;;  %12172 = vmatpush3.bf16.xpose.msra.mxu1 %v12169_v45  ;;  %v3969_v43 = vand.u32 4294901760, %v3968_v36  ;;  %v3987_v56 = vand.u32 4294901760, %v14323_v22 }
 0x55b   : > { %v14339_v7 = vsub.f32 %v3872_v51, %v14329_v48  ;;  %12174 = vmatprep.subr.bf16.mxu1 %v12173_v17  ;;  %v5583_v29 = vpop.permute.xlu0 %5582  ;;  %v3998_v34 = vsub.f32 %v14317_v18, %v16314_v59  ;;  %v16435_v51 = vld [vmem:[#allocation8_spill] sm:$0xff] }
 0x55c   : > { %v14345_v49 = vsub.f32 %v3870_v61, %v14335_v63  ;;  %v5587_v13 = vadd.f32 %v16434_v28, %v5583_v29  ;;  %11380 = vmatprep.mubr.f32.mxu1 %v3969_v43  ;;  %v5581_v45 = vpop.permute.xlu1 %5580  ;;  %v3988_v36 = vsub.f32 %v14323_v22, %v3987_v56  ;;  %v16436_v29 = vld [vmem:[#allocation10_spill] sm:$0xff] }
 0x55d   : > { %v5586_v14 = vadd.f32 %v5581_v45, %v16435_v51  ;;  %11381 = vmatmul.mubr.f32.gmra.mrb[18].mxu1 %v3979_v55  ;;  %v16315_v60 = vand.u32 4294901760, %v14339_v7  ;;  %v3999_v61 = vand.u32 4294901760, %v3998_v34  ;;  %v14361_v43 = vmul.f32 %v16436_v29, %v13686_v42  ;;  %v16437_v45 = vld [vmem:[#allocation12_spill] sm:$0xff] }
 0x55e   : > { %5710 = vrot.lane.b32.xlu0 %v5587_v13, %s13082_s29  ;;  %v3989_v0 = vand.u32 4294901760, %v3988_v36  ;;  %v4007_v59 = vand.u32 4294901760, %v14345_v49  ;;  %v14366_v13 = vmul.f32 %v13680_v16, %v16437_v45  ;;  %v14378_v36 = vmul.f32 %v13695_v23, %v16437_v45 }
 0x55f   : > { %5708 = vrot.lane.b32.xlu1 %v5586_v14, %s13082_s29  ;;  %v4018_v28 = vsub.f32 %v14339_v7, %v16315_v60  ;;  %v14388_v51 = vmul.f32 %v16436_v29, %v13718_v47 }
 0x560   : > { %11383 = vmatprep.mubr.f32.mxu1 %v3989_v0  ;;  %v4008_v55 = vsub.f32 %v14345_v49, %v4007_v59  ;;  %v14374_v0 = vmul.f32 %v16436_v29, %v13688_v25 }
 0x561   : > { %11384 = vmatmul.mubr.f32.gmra.mrb[20].mxu1 %v3999_v61  ;;  %v4019_v34 = vand.u32 4294901760, %v4018_v28  ;;  %v14393_v61 = vmul.f32 %v13722_v27, %v16437_v45  ;;  %v14403_v28 = vmul.f32 %v16436_v29, %v13743_v26  ;;  %v16438_v29 = vand.u32 4294901760, %v14264_v11 }
 0x562   : > { %5692 = vrot.lane.b32.xlu0 %v14361_v43, %s13080_s6  ;;  %v4009_v14 = vand.u32 4294901760, %v4008_v55  ;;  %v13050_v55 = vld [vmem:[%s13538_s9 + $0x38] sm:$0xff]  ;;  %v16442_v11 = vand.u32 4294901760, %v14303_v30 }
 0x563   : > { %5690 = vrot.lane.b32.xlu1 %v14366_v13, %s13080_s6 }
 0x564   : > { %11386 = vmatprep.mubr.f32.mxu1 %v4009_v14  ;;  %v7431_v14 = vmul.f32 %v13050_v55, %v13562_v2 }
 0x565   : > { %11387 = vmatmul.mubr.f32.gmra.mrb[22].mxu1 %v4019_v34  ;;  %v13051_v34 = vld [vmem:[%s13538_s9 + $0x30] sm:$0xff] }
 0x566   : > { %11393 = vmatprep.mubr.f32.mxu1 %v14272_v58  ;;  %5696 = vrot.lane.b32.xlu0 %v14374_v0, %s13080_s6  ;;  %v7430_v60 = vmul.f32 %v13051_v34, %v13562_v2  ;;  %v16440_v2 = vand.u32 4294901760, %v14283_v15 }
 0x567   : > { %5694 = vrot.lane.b32.xlu1 %v14378_v36, %s13080_s6 }
 0x569   : > { %11394 = vmatmul.mubr.f32.vlgmr.msra.gmra.mrb[16].mxu1 %v14268_v5 }
 0x56a   : > { %12176 = vmatpush3.bf16.xpose.msra.mxu1 %v12173_v17  ;;  %11396 = vmatprep.mubr.f32.mxu1 %v14293_v6  ;;  %v14408_v17 = vmul.f32 %v13753_v33, %v16437_v45  ;;  %v16439_v45 = vand.u32 4294901760, %v14260_v50  ;;  %v16441_v50 = vand.u32 4294901760, %v14276_v53 }
 0x56b   : > { %12178 = vmatprep.subr.bf16.mxu1 %v14262_v62  ;;  %5700 = vrot.lane.b32.xlu0 %v14388_v51, %s13080_s6 }
 0x56c   : > { %5698 = vrot.lane.b32.xlu1 %v14393_v61, %s13080_s6  ;;  %v12181_v55 = vpack.c.bf16 %v16439_v45, %v16438_v29 }
 0x56d   : > { %11397 = vmatmul.mubr.f32.gmra.mrb[18].mxu1 %v14290_v39 }
 0x56e   : > { %11399 = vmatprep.mubr.f32.mxu1 %v14313_v41 }
 0x56f   : > { %5704 = vrot.lane.b32.xlu0 %v14403_v28, %s13080_s6 }
 0x570   : > { %5702 = vrot.lane.b32.xlu1 %v14408_v17, %s13080_s6 }
 0x571   : > { %11400 = vmatmul.mubr.f32.gmra.mrb[20].mxu1 %v14309_v4 }
 0x572   : > { %11402 = vmatprep.mubr.f32.mxu1 %v14335_v63 }
 0x573   : > { %7436 = vrot.lane.b32.xlu0 %v7431_v14, %s13081_s18 }
 0x574   : > { %7434 = vrot.lane.b32.xlu1 %v7430_v60, %s13081_s18  ;;  %v16443_v60 = vand.u32 4294901760, %v14300_v1 }
 0x575   : > { %11403 = vmatmul.mubr.f32.gmra.mrb[22].mxu1 %v14329_v48 }
 0x576   : > { %11409 = vmatprep.mubr.f32.mxu1 %v14283_v15  ;;  %v16445_v15 = vand.u32 4294901760, %v14339_v7 }
 0x579   : > { %11410 = vmatmul.mubr.f32.vlgmr.msra.gmra.mrb[16].mxu1 %v14276_v53 }
 0x57a   : > { %12180 = vmatpush3.bf16.xpose.msra.mxu1 %v14262_v62  ;;  %11412 = vmatprep.mubr.f32.mxu1 %v14303_v30 }
 0x57b   : > { %12182 = vmatprep.subr.bf16.mxu1 %v12181_v55 }
 0x57d   : > { %11413 = vmatmul.mubr.f32.gmra.mrb[18].mxu1 %v14300_v1 }
 0x57e   : > { %11415 = vmatprep.mubr.f32.mxu1 %v14323_v22 }
 0x581   : > { %11416 = vmatmul.mubr.f32.gmra.mrb[20].mxu1 %v14317_v18 }
 0x582   : > { %11418 = vmatprep.mubr.f32.mxu1 %v14345_v49  ;;  %v16444_v49 = vand.u32 4294901760, %v14317_v18 }
 0x585   : > { %11419 = vmatmul.mubr.f32.gmra.mrb[22].mxu1 %v14339_v7 }
 0x586   : > { %11425 = vmatprep.mubr.f32.mxu1 %v16440_v2 }
 0x589   : > { %11426 = vmatmul.mubr.f32.vlgmr.msra.gmra.mrb[16].mxu1 %v16441_v50 }
 0x58a   : > { %12184 = vmatpush3.bf16.xpose.msra.mxu1 %v12181_v55  ;;  %11428 = vmatprep.mubr.f32.mxu1 %v16442_v11 }
 0x58b   : > { %12186 = vmatprep.subr.bf16.mxu1 %v14262_v62 }
 0x58d   : > { %11429 = vmatmul.mubr.f32.gmra.mrb[18].mxu1 %v16443_v60 }
 0x58e   : > { %11431 = vmatprep.mubr.f32.mxu1 %v3987_v56 }
 0x591   : > { %11432 = vmatmul.mubr.f32.gmra.mrb[20].mxu1 %v16444_v49 }
 0x592   : > { %11434 = vmatprep.mubr.f32.mxu1 %v4007_v59 }
 0x595   : > { %11435 = vmatmul.mubr.f32.gmra.mrb[22].mxu1 %v16445_v15 }
 0x596   : > { %11441 = vmatprep.mubr.f32.mxu1 %v14272_v58 }
 0x599   : > { %11442 = vmatmul.mubr.f32.vlgmr.msra.gmra.mrb[16].mxu1 %v14268_v5 }
 0x59a   : > { %12188 = vmatpush3.bf16.xpose.msra.mxu1 %v14262_v62  ;;  %11444 = vmatprep.mubr.f32.mxu1 %v14293_v6 }
 0x59d   : > { %11445 = vmatmul.mubr.f32.gmra.mrb[18].mxu1 %v14290_v39 }
 0x59e   : > { %11447 = vmatprep.mubr.f32.mxu1 %v14313_v41 }
 0x5a1   : > { %11448 = vmatmul.mubr.f32.gmra.mrb[20].mxu1 %v14309_v4 }
 0x5a2   : > { %11450 = vmatprep.mubr.f32.mxu1 %v14335_v63 }
 0x5a5   : > { %11451 = vmatmul.mubr.f32.gmra.mrb[22].mxu1 %v14329_v48 }
 0x5a6   : > { %11457 = vmatprep.mubr.f32.mxu1 %v14272_v58 }
 0x5a9   : > { %11458 = vmatmul.mubr.f32.vlgmr.msra.gmra.mrb[16].mxu1 %v14268_v5 }
 0x5aa   : > { %11460 = vmatprep.mubr.f32.mxu1 %v14293_v6 }
 0x5ad   : > { %11461 = vmatmul.mubr.f32.gmra.mrb[18].mxu1 %v14290_v39 }
 0x5ae   : > { %11463 = vmatprep.mubr.f32.mxu1 %v14313_v41 }
 0x5b1   : > { %11464 = vmatmul.mubr.f32.gmra.mrb[20].mxu1 %v14309_v4 }
 0x5b2   : > { %11466 = vmatprep.mubr.f32.mxu1 %v14335_v63 }
 0x5b5   : > { %11467 = vmatmul.mubr.f32.gmra.mrb[22].mxu1 %v14329_v48 }
 0x5d0   : > { %v5711_v62 = vpop.permute.xlu0 %5710 }
 0x5d1   : > { %v5730_v53 = vsel %vm264_vm0, %v5711_v62, 0  ;;  %v5709_v1 = vpop.permute.xlu1 %5708 }
 0x5d2   : > { %v5736_v30 = vand.u32 4294901760, %v5730_v53  ;;  %v5728_v58 = vsel %vm264_vm0, %v5709_v1, 0 }
 0x5d3   : > { %v5733_v5 = vand.u32 4294901760, %v5728_v58 }
 0x5d4   : > { %v14470_v18 = vsub.f32 %v5730_v53, %v5736_v30  ;;  %v5693_v6 = vpop.permute.xlu0 %5692 }
 0x5d5   : > { %v14472_v39 = vpack.c.bf16 %v5736_v30, %v5733_v5  ;;  %v14474_v41 = vsub.f32 %v5728_v58, %v5733_v5  ;;  %v5714_v4 = vsel %vm264_vm0, %v5693_v6, 0  ;;  %v5691_v22 = vpop.permute.xlu1 %5690 }
 0x5d6   : > { %v16317_v48 = vand.u32 4294901760, %v14470_v18  ;;  %v14478_v59 = vand.u32 4294901760, %v5714_v4  ;;  %v5712_v63 = vsel %vm264_vm0, %v5691_v22, 0 }
 0x5d7   : > { %v16319_v56 = vand.u32 4294901760, %v14474_v41  ;;  %v14482_v7 = vand.u32 4294901760, %v5712_v63  ;;  %12214 = vmatprep.subr.bf16.mxu1 %v14472_v39 }
 0x5d8   : > { %v14486_v14 = vsub.f32 %v5714_v4, %v14478_v59  ;;  %12216 = vmatpush3.bf16.xpose.msra.mxu1 %v14472_v39  ;;  %v5697_v34 = vpop.permute.xlu0 %5696  ;;  %v5890_v29 = vsub.f32 %v14470_v18, %v16317_v48 }
 0x5d9   : > { %v14493_v45 = vsub.f32 %v5712_v63, %v14482_v7  ;;  %v5718_v55 = vsel %vm264_vm0, %v5697_v34, 0  ;;  %v5695_v2 = vpop.permute.xlu1 %5694  ;;  %v5883_v50 = vsub.f32 %v14474_v41, %v16319_v56  ;;  %v12221_v56 = vpack.c.bf16 %v14470_v18, %v14474_v41 }
 0x5da   : > { %v16316_v11 = vand.u32 4294901760, %v14486_v14  ;;  %v14500_v60 = vand.u32 4294901760, %v5718_v55  ;;  %v5716_v49 = vsel %vm264_vm0, %v5695_v2, 0  ;;  %v5891_v15 = vand.u32 4294901760, %v5890_v29 }
 0x5db   : > { %v14503_v62 = vand.u32 4294901760, %v5716_v49  ;;  %v5884_v53 = vand.u32 4294901760, %v5883_v50  ;;  %v16318_v1 = vand.u32 4294901760, %v14493_v45 }
 0x5dc   : > { %v5812_v30 = vsub.f32 %v14486_v14, %v16316_v11  ;;  %v14510_v58 = vsub.f32 %v5718_v55, %v14500_v60 }
 0x5dd   : > { %v14513_v5 = vsub.f32 %v5716_v49, %v14503_v62  ;;  %v5701_v6 = vpop.permute.xlu0 %5700  ;;  %v12217_v4 = vpack.c.bf16 %v5891_v15, %v5884_v53  ;;  %v5802_v22 = vsub.f32 %v14493_v45, %v16318_v1 }
 0x5de   : > { %v5722_v63 = vsel %vm264_vm0, %v5701_v6, 0  ;;  %v5699_v34 = vpop.permute.xlu1 %5698  ;;  %v16320_v29 = vand.u32 4294901760, %v14510_v58  ;;  %v5813_v11 = vand.u32 4294901760, %v5812_v30 }
 0x5df   : > { %v14520_v2 = vand.u32 4294901760, %v5722_v63  ;;  %v5720_v50 = vsel %vm264_vm0, %v5699_v34, 0  ;;  %12218 = vmatprep.subr.bf16.mxu1 %v12217_v4  ;;  %v5803_v55 = vand.u32 4294901760, %v5802_v22  ;;  %v16323_v49 = vand.u32 4294901760, %v14513_v5 }
 0x5e0   : > { %v14524_v48 = vand.u32 4294901760, %v5720_v50  ;;  %v5832_v15 = vsub.f32 %v14510_v58, %v16320_v29 }
 0x5e1   : > { %v14530_v53 = vsub.f32 %v5722_v63, %v14520_v2  ;;  %v5705_v6 = vpop.permute.xlu0 %5704  ;;  %11569 = vmatprep.mubr.f32.mxu1 %v5803_v55  ;;  %v5822_v34 = vsub.f32 %v14513_v5, %v16323_v49 }
 0x5e2   : > { %v14536_v22 = vsub.f32 %v5720_v50, %v14524_v48  ;;  %v5726_v30 = vsel %vm264_vm0, %v5705_v6, 0  ;;  %v5703_v1 = vpop.permute.xlu1 %5702  ;;  %11570 = vmatmul.mubr.f32.vlgmr.msra.gmra.mrb[24].mxu1 %v5813_v11  ;;  %v5833_v50 = vand.u32 4294901760, %v5832_v15 }
 0x5e3   : > { %v14541_v29 = vand.u32 4294901760, %v5726_v30  ;;  %v5724_v63 = vsel %vm264_vm0, %v5703_v1, 0  ;;  %12220 = vmatpush3.bf16.xpose.msra.mxu1 %v12217_v4  ;;  %v5823_v55 = vand.u32 4294901760, %v5822_v34  ;;  %v16328_v12 = vand.u32 4294901760, %v14530_v53  ;;  %v16446_v4 = vld [vmem:[#allocation15_spill] sm:$0xff] }
 0x5e4   : > { %v14545_v20 = vand.u32 4294901760, %v5724_v63  ;;  %12222 = vmatprep.subr.bf16.mxu1 %v12221_v56  ;;  %v5841_v49 = vand.u32 4294901760, %v14536_v22 }
 0x5e5   : > { %v14549_v6 = vsub.f32 %v5726_v30, %v14541_v29  ;;  %v7437_v11 = vpop.permute.xlu0 %7436  ;;  %11572 = vmatprep.mubr.f32.mxu1 %v5823_v55  ;;  %v5852_v40 = vsub.f32 %v14530_v53, %v16328_v12 }
 0x5e6   : > { %v14555_v1 = vsub.f32 %v5724_v63, %v14545_v20  ;;  %v7441_v34 = vadd.f32 %v16446_v4, %v7437_v11  ;;  %v7435_v35 = vpop.permute.xlu1 %7434  ;;  %11573 = vmatmul.mubr.f32.gmra.mrb[26].mxu1 %v5833_v50  ;;  %v5842_v15 = vsub.f32 %v14536_v22, %v5841_v49  ;;  %v16448_v11 = vld [vmem:[#allocation18_spill] sm:$0xff] }
 0x5e7   : > { %v7440_v30 = vadd.f32 %v7435_v35, %v16447_v9  ;;  %v5871_v21 = vand.u32 4294901760, %v14549_v6  ;;  %v5853_v63 = vand.u32 4294901760, %v5852_v40  ;;  %v14571_v4 = vmul.f32 %v16448_v11, %v13686_v42  ;;  %v16449_v35 = vld [vmem:[#allocation20_spill] sm:$0xff] }
 0x5e8   : > { %7564 = vrot.lane.b32.xlu0 %v7441_v34, %s13082_s29  ;;  %v5843_v55 = vand.u32 4294901760, %v5842_v15  ;;  %v5861_v12 = vand.u32 4294901760, %v14555_v1  ;;  %v14578_v34 = vmul.f32 %v13680_v16, %v16449_v35  ;;  %v14586_v42 = vmul.f32 %v16448_v11, %v13688_v25 }
 0x5e9   : > { %7562 = vrot.lane.b32.xlu1 %v7440_v30, %s13082_s29  ;;  %v5872_v50 = vsub.f32 %v14549_v6, %v5871_v21  ;;  %v14590_v30 = vmul.f32 %v13695_v23, %v16449_v35  ;;  %v14600_v16 = vmul.f32 %v16448_v11, %v13718_v47  ;;  %v14605_v25 = vmul.f32 %v13722_v27, %v16449_v35 }
 0x5ea   : > { %11575 = vmatprep.mubr.f32.mxu1 %v5843_v55  ;;  %v5862_v9 = vsub.f32 %v14555_v1, %v5861_v12  ;;  %v14615_v23 = vmul.f32 %v16448_v11, %v13743_v26  ;;  %v14620_v47 = vmul.f32 %v13753_v33, %v16449_v35  ;;  %v3757_v27 = vmul.f32 %v14098_v46, %v13917_v3 }
 0x5eb   : > { %11576 = vmatmul.mubr.f32.gmra.mrb[28].mxu1 %v5853_v63  ;;  %v5873_v15 = vand.u32 4294901760, %v5872_v50  ;;  %v3756_v26 = vmul.f32 %v14111_v37, %v13917_v3  ;;  %v3759_v33 = vmul.f32 %v14125_v31, %v13917_v3  ;;  %v3758_v46 = vmul.f32 %v14151_v38, %v13917_v3 }
 0x5ec   : > { %7546 = vrot.lane.b32.xlu0 %v14571_v4, %s13080_s6  ;;  %v5863_v40 = vand.u32 4294901760, %v5862_v9  ;;  %v16452_v37 = vand.u32 4294901760, %v14474_v41  ;;  %v16453_v63 = vand.u32 4294901760, %v14470_v18  ;;  %v3761_v50 = vmul.f32 %v14177_v32, %v13917_v3 }
 0x5ed   : > { %7544 = vrot.lane.b32.xlu1 %v14578_v34, %s13080_s6  ;;  %v3760_v11 = vmul.f32 %v14185_v24, %v13917_v3  ;;  %v3763_v32 = vmul.f32 %v14195_v8, %v13917_v3  ;;  %v3762_v41 = vmul.f32 %v14199_v10, %v13917_v3  ;;  %v16461_v10 = vand.u32 4294901760, %v14486_v14 }
 0x5ee   : > { %11578 = vmatprep.mubr.f32.mxu1 %v5863_v40  ;;  %v12229_v31 = vpack.c.bf16 %v16453_v63, %v16452_v37  ;;  %v16460_v40 = vand.u32 4294901760, %v14493_v45 }
 0x5ef   : > { %11579 = vmatmul.mubr.f32.gmra.mrb[30].mxu1 %v5873_v15  ;;  %v16462_v15 = vand.u32 4294901760, %v14513_v5 }
 0x5f0   : > { %11585 = vmatprep.mubr.f32.mxu1 %v14482_v7  ;;  %7550 = vrot.lane.b32.xlu0 %v14586_v42, %s13080_s6 }
 0x5f1   : > { %7548 = vrot.lane.b32.xlu1 %v14590_v30, %s13080_s6 }
 0x5f3   : > { %11586 = vmatmul.mubr.f32.vlgmr.msra.gmra.mrb[24].mxu1 %v14478_v59 }
 0x5f4   : > { %12224 = vmatpush3.bf16.xpose.msra.mxu1 %v12221_v56  ;;  %11588 = vmatprep.mubr.f32.mxu1 %v14503_v62 }
 0x5f5   : > { %12226 = vmatprep.subr.bf16.mxu1 %v14472_v39  ;;  %7554 = vrot.lane.b32.xlu0 %v14600_v16, %s13080_s6 }
 0x5f6   : > { %7552 = vrot.lane.b32.xlu1 %v14605_v25, %s13080_s6 }
 0x5f7   : > { %11589 = vmatmul.mubr.f32.gmra.mrb[26].mxu1 %v14500_v60 }
 0x5f8   : > { %11591 = vmatprep.mubr.f32.mxu1 %v14524_v48 }
 0x5f9   : > { %7558 = vrot.lane.b32.xlu0 %v14615_v23, %s13080_s6 }
 0x5fa   : > { %7556 = vrot.lane.b32.xlu1 %v14620_v47, %s13080_s6 }
 0x5fb   : > { %11592 = vmatmul.mubr.f32.gmra.mrb[28].mxu1 %v14520_v2 }
 0x5fc   : > { %11594 = vmatprep.mubr.f32.mxu1 %v14545_v20 }
 0x5fd   : > { %3774 = vrot.lane.b32.xlu0 %v3757_v27, %s13080_s6  ;;  %v16463_v27 = vand.u32 4294901760, %v14510_v58 }
 0x5fe   : > { %3772 = vrot.lane.b32.xlu1 %v3756_v26, %s13080_s6  ;;  %v16464_v26 = vand.u32 4294901760, %v14530_v53 }
 0x5ff   : > { %11595 = vmatmul.mubr.f32.gmra.mrb[30].mxu1 %v14541_v29 }
 0x600   : > { %11601 = vmatprep.mubr.f32.mxu1 %v14493_v45  ;;  %v14638_v56 = vpop.f32.mrb[8].mxu1 }
 0x601   : > { %16450 = vst [vmem:[#allocation7_spill] sm:$0xff] %v14638_v56  ;;  %3778 = vrot.lane.b32.xlu0 %v3759_v33, %s13080_s6  ;;  %v14643_v55 = vpop.f32.mrb[9].mxu1 }
 0x602   : > { %16451 = vst [vmem:[#allocation8_spill] sm:$0xff] %v14643_v55  ;;  %3776 = vrot.lane.b32.xlu1 %v3758_v46, %s13080_s6 }
 0x603   : > { %11602 = vmatmul.mubr.f32.vlgmr.msra.gmra.mrb[24].mxu1 %v14486_v14 }
 0x604   : > { %12228 = vmatpush3.bf16.xpose.msra.mxu1 %v14472_v39  ;;  %11604 = vmatprep.mubr.f32.mxu1 %v14513_v5  ;;  %v14655_v38 = vpop.f32.mrb[10].mxu1 }
 0x605   : > { %16454 = vst [vmem:[#allocation10_spill] sm:$0xff] %v14655_v38  ;;  %12230 = vmatprep.subr.bf16.mxu1 %v12229_v31  ;;  %3782 = vrot.lane.b32.xlu0 %v3761_v50, %s13080_s6  ;;  %v14660_v9 = vpop.f32.mrb[11].mxu1 }
 0x606   : > { %16455 = vst [vmem:[#allocation12_spill] sm:$0xff] %v14660_v9  ;;  %3780 = vrot.lane.b32.xlu1 %v3760_v11, %s13080_s6 }
 0x607   : > { %11605 = vmatmul.mubr.f32.gmra.mrb[26].mxu1 %v14510_v58 }
 0x608   : > { %11607 = vmatprep.mubr.f32.mxu1 %v14536_v22  ;;  %v14667_v18 = vpop.f32.mrb[12].mxu1 }
 0x609   : > { %16456 = vst [vmem:[#allocation15_spill] sm:$0xff] %v14667_v18  ;;  %3786 = vrot.lane.b32.xlu0 %v3763_v32, %s13080_s6  ;;  %v14672_v24 = vpop.f32.mrb[13].mxu1 }
 0x60a   : > { %16457 = vst [vmem:[#allocation16_spill] sm:$0xff] %v14672_v24  ;;  %3784 = vrot.lane.b32.xlu1 %v3762_v41, %s13080_s6 }
 0x60b   : > { %11608 = vmatmul.mubr.f32.gmra.mrb[28].mxu1 %v14530_v53 }
 0x60c   : > { %11610 = vmatprep.mubr.f32.mxu1 %v14555_v1  ;;  %v14677_v35 = vpop.f32.mrb[14].mxu1 }
 0x60d   : > { %16458 = vst [vmem:[#allocation18_spill] sm:$0xff] %v14677_v35  ;;  %v14679_v8 = vpop.f32.mrb[15].mxu1 }
 0x60e   : > { %16459 = vst [vmem:[#allocation20_spill] sm:$0xff] %v14679_v8 }
 0x60f   : > { %11611 = vmatmul.mubr.f32.gmra.mrb[30].mxu1 %v14549_v6 }
 0x610   : > { %11617 = vmatprep.mubr.f32.mxu1 %v16460_v40 }
 0x613   : > { %11618 = vmatmul.mubr.f32.vlgmr.msra.gmra.mrb[24].mxu1 %v16461_v10 }
 0x614   : > { %12232 = vmatpush3.bf16.xpose.msra.mxu1 %v12229_v31  ;;  %11620 = vmatprep.mubr.f32.mxu1 %v16462_v15 }
 0x615   : > { %12234 = vmatprep.subr.bf16.mxu1 %v14472_v39 }
 0x617   : > { %11621 = vmatmul.mubr.f32.gmra.mrb[26].mxu1 %v16463_v27 }
 0x618   : > { %11623 = vmatprep.mubr.f32.mxu1 %v5841_v49 }
 0x61b   : > { %11624 = vmatmul.mubr.f32.gmra.mrb[28].mxu1 %v16464_v26 }
 0x61c   : > { %11626 = vmatprep.mubr.f32.mxu1 %v5861_v12 }
 0x61f   : > { %11627 = vmatmul.mubr.f32.gmra.mrb[30].mxu1 %v5871_v21 }
 0x620   : > { %11633 = vmatprep.mubr.f32.mxu1 %v14482_v7 }
 0x623   : > { %11634 = vmatmul.mubr.f32.vlgmr.msra.gmra.mrb[24].mxu1 %v14478_v59 }
 0x624   : > { %12236 = vmatpush3.bf16.xpose.msra.mxu1 %v14472_v39  ;;  %11636 = vmatprep.mubr.f32.mxu1 %v14503_v62 }
 0x627   : > { %11637 = vmatmul.mubr.f32.gmra.mrb[26].mxu1 %v14500_v60 }
 0x628   : > { %11639 = vmatprep.mubr.f32.mxu1 %v14524_v48 }
 0x62b   : > { %11640 = vmatmul.mubr.f32.gmra.mrb[28].mxu1 %v14520_v2 }
 0x62c   : > { %11642 = vmatprep.mubr.f32.mxu1 %v14545_v20 }
 0x62f   : > { %11643 = vmatmul.mubr.f32.gmra.mrb[30].mxu1 %v14541_v29 }
 0x630   : > { %11649 = vmatprep.mubr.f32.mxu1 %v14482_v7 }
 0x633   : > { %11650 = vmatmul.mubr.f32.vlgmr.msra.gmra.mrb[24].mxu1 %v14478_v59 }
 0x634   : > { %11652 = vmatprep.mubr.f32.mxu1 %v14503_v62 }
 0x637   : > { %11653 = vmatmul.mubr.f32.gmra.mrb[26].mxu1 %v14500_v60 }
 0x638   : > { %11655 = vmatprep.mubr.f32.mxu1 %v14524_v48 }
 0x63b   : > { %11656 = vmatmul.mubr.f32.gmra.mrb[28].mxu1 %v14520_v2 }
 0x63c   : > { %11658 = vmatprep.mubr.f32.mxu1 %v14545_v20 }
 0x63f   : > { %11659 = vmatmul.mubr.f32.gmra.mrb[30].mxu1 %v14541_v29 }
 0x65a   : > { %v7565_v21 = vpop.permute.xlu0 %7564 }
 0x65b   : > { %v7584_v12 = vsel %vm264_vm0, %v7565_v21, 0  ;;  %v7563_v39 = vpop.permute.xlu1 %7562 }
 0x65c   : > { %v7590_v14 = vand.u32 4294901760, %v7584_v12  ;;  %v7582_v7 = vsel %vm264_vm0, %v7563_v39, 0 }
 0x65d   : > { %v7587_v59 = vand.u32 4294901760, %v7582_v7 }
 0x65e   : > { %v14718_v45 = vsub.f32 %v7584_v12, %v7590_v14  ;;  %v7547_v62 = vpop.permute.xlu0 %7546 }
 0x65f   : > { %v14720_v60 = vpack.c.bf16 %v7590_v14, %v7587_v59  ;;  %v14722_v48 = vsub.f32 %v7582_v7, %v7587_v59  ;;  %v7568_v58 = vsel %vm264_vm0, %v7547_v62, 0  ;;  %v7545_v20 = vpop.permute.xlu1 %7544 }
 0x660   : > { %v16334_v5 = vand.u32 4294901760, %v14718_v45  ;;  %v14726_v29 = vand.u32 4294901760, %v7568_v58  ;;  %v7566_v2 = vsel %vm264_vm0, %v7545_v20, 0 }
 0x661   : > { %v16335_v49 = vand.u32 4294901760, %v14722_v48  ;;  %v14730_v53 = vand.u32 4294901760, %v7566_v2  ;;  %12262 = vmatprep.subr.bf16.mxu1 %v14720_v60 }
 0x662   : > { %v14734_v22 = vsub.f32 %v7568_v58, %v14726_v29  ;;  %12264 = vmatpush3.bf16.xpose.msra.mxu1 %v14720_v60  ;;  %v7551_v6 = vpop.permute.xlu0 %7550  ;;  %v7744_v1 = vsub.f32 %v14718_v45, %v16334_v5 }
 0x663   : > { %v14741_v33 = vsub.f32 %v7566_v2, %v14730_v53  ;;  %v7572_v46 = vsel %vm264_vm0, %v7551_v6, 0  ;;  %v7549_v37 = vpop.permute.xlu1 %7548  ;;  %v7737_v63 = vsub.f32 %v14722_v48, %v16335_v49 }
 0x664   : > { %v16331_v31 = vand.u32 4294901760, %v14734_v22  ;;  %v14748_v50 = vand.u32 4294901760, %v7572_v46  ;;  %v7570_v11 = vsel %vm264_vm0, %v7549_v37, 0  ;;  %v7745_v32 = vand.u32 4294901760, %v7744_v1 }
 0x665   : > { %v14751_v41 = vand.u32 4294901760, %v7570_v11  ;;  %v7738_v40 = vand.u32 4294901760, %v7737_v63  ;;  %v16332_v10 = vand.u32 4294901760, %v14741_v33 }
 0x666   : > { %v7666_v15 = vsub.f32 %v14734_v22, %v16331_v31  ;;  %v14758_v27 = vsub.f32 %v7572_v46, %v14748_v50 }
 0x667   : > { %v14761_v26 = vsub.f32 %v7570_v11, %v14751_v41  ;;  %v7555_v21 = vpop.permute.xlu0 %7554  ;;  %v12265_v12 = vpack.c.bf16 %v7745_v32, %v7738_v40  ;;  %v7656_v39 = vsub.f32 %v14741_v33, %v16332_v10 }
 0x668   : > { %v7576_v14 = vsel %vm264_vm0, %v7555_v21, 0  ;;  %v7553_v7 = vpop.permute.xlu1 %7552  ;;  %v16329_v59 = vand.u32 4294901760, %v14758_v27  ;;  %v7667_v6 = vand.u32 4294901760, %v7666_v15  ;;  %v12269_v21 = vpack.c.bf16 %v14718_v45, %v14722_v48 }
 0x669   : > { %v14768_v62 = vand.u32 4294901760, %v7576_v14  ;;  %v7574_v58 = vsel %vm264_vm0, %v7553_v7, 0  ;;  %12266 = vmatprep.subr.bf16.mxu1 %v12265_v12  ;;  %v7657_v20 = vand.u32 4294901760, %v7656_v39  ;;  %v16330_v2 = vand.u32 4294901760, %v14761_v26 }
 0x66a   : > { %v14772_v1 = vand.u32 4294901760, %v7574_v58  ;;  %v7686_v46 = vsub.f32 %v14758_v27, %v16329_v59 }
 0x66b   : > { %v14778_v37 = vsub.f32 %v7576_v14, %v14768_v62  ;;  %v7559_v63 = vpop.permute.xlu0 %7558  ;;  %11761 = vmatprep.mubr.f32.mxu1 %v7657_v20  ;;  %v7676_v11 = vsub.f32 %v14761_v26, %v16330_v2 }
 0x66c   : > { %v14784_v32 = vsub.f32 %v7574_v58, %v14772_v1  ;;  %v7580_v40 = vsel %vm264_vm0, %v7559_v63, 0  ;;  %v7557_v15 = vpop.permute.xlu1 %7556  ;;  %11762 = vmatmul.mubr.f32.vlgmr.msra.gmra.mrb[32].mxu1 %v7667_v6  ;;  %v7687_v58 = vand.u32 4294901760, %v7686_v46 }
 0x66d   : > { %v14789_v39 = vand.u32 4294901760, %v7580_v40  ;;  %v7578_v14 = vsel %vm264_vm0, %v7557_v15, 0  ;;  %12268 = vmatpush3.bf16.xpose.msra.mxu1 %v12265_v12  ;;  %v7677_v7 = vand.u32 4294901760, %v7676_v11  ;;  %v16333_v20 = vand.u32 4294901760, %v14778_v37 }
 0x66e   : > { %v14793_v59 = vand.u32 4294901760, %v7578_v14  ;;  %12270 = vmatprep.subr.bf16.mxu1 %v12269_v21  ;;  %v16336_v2 = vand.u32 4294901760, %v14784_v32 }
 0x66f   : > { %v14797_v63 = vsub.f32 %v7580_v40, %v14789_v39  ;;  %v3775_v6 = vpop.permute.xlu0 %3774  ;;  %11764 = vmatprep.mubr.f32.mxu1 %v7677_v7  ;;  %v7706_v31 = vsub.f32 %v14778_v37, %v16333_v20 }
 0x670   : > { %v14803_v12 = vsub.f32 %v7578_v14, %v14793_v59  ;;  %v3773_v11 = vpop.permute.xlu1 %3772  ;;  %v3799_v15 = vsel %vm264_vm0, %v3775_v6, 0.0  ;;  %11765 = vmatmul.mubr.f32.gmra.mrb[34].mxu1 %v7687_v58  ;;  %v7696_v46 = vsub.f32 %v14784_v32, %v16336_v2 }
 0x671   : > { %3800 = vadd.xlane.f32.xlu0 %v3799_v15  ;;  %v3796_v40 = vsel %vm264_vm0, %v3773_v11, 0.0  ;;  %v16337_v7 = vand.u32 4294901760, %v14797_v63  ;;  %v7707_v14 = vand.u32 4294901760, %v7706_v31 }
 0x672   : > { %3797 = vadd.xlane.f32.xlu1 %v3796_v40  ;;  %v7697_v10 = vand.u32 4294901760, %v7696_v46  ;;  %v16338_v20 = vand.u32 4294901760, %v14803_v12 }
 0x673   : > { %v3779_v5 = vpop.permute.xlu0 %3778  ;;  %v7726_v6 = vsub.f32 %v14797_v63, %v16337_v7 }
 0x674   : > { %11767 = vmatprep.mubr.f32.mxu1 %v7697_v10  ;;  %v3777_v58 = vpop.permute.xlu1 %3776  ;;  %v3805_v49 = vsel %vm264_vm0, %v3779_v5, 0.0  ;;  %v7716_v11 = vsub.f32 %v14803_v12, %v16338_v20 }
 0x675   : > { %11768 = vmatmul.mubr.f32.gmra.mrb[36].mxu1 %v7707_v14  ;;  %v3802_v15 = vsel %vm264_vm0, %v3777_v58, 0.0  ;;  %v7727_v31 = vand.u32 4294901760, %v7726_v6 }
 0x676   : > { %3806 = vadd.xlane.f32.xlu1 %v3805_v49  ;;  %3803 = vadd.xlane.f32.xlu0 %v3802_v15  ;;  %v7717_v46 = vand.u32 4294901760, %v7716_v11 }
 0x677   : > { %v3783_v40 = vpop.permute.xlu0 %3782 }
 0x678   : > { %11770 = vmatprep.mubr.f32.mxu1 %v7717_v46  ;;  %v3781_v2 = vpop.permute.xlu1 %3780  ;;  %v3811_v7 = vsel %vm264_vm0, %v3783_v40, 0.0  ;;  %v16465_v40 = vand.u32 4294901760, %v14722_v48  ;;  %v5613_v48 = vmul.f32 %v14374_v0, %v13917_v3  ;;  %v16469_v0 = vand.u32 4294901760, %v14761_v26 }
 0x679   : > { %11771 = vmatmul.mubr.f32.gmra.mrb[38].mxu1 %v7727_v31  ;;  %v3808_v10 = vsel %vm264_vm0, %v3781_v2, 0.0  ;;  %v16466_v31 = vand.u32 4294901760, %v14718_v45  ;;  %v5610_v45 = vmul.f32 %v14366_v13, %v13917_v3  ;;  %v5616_v13 = vmul.f32 %v14408_v17, %v13917_v3 }
 0x67a   : > { %11777 = vmatprep.mubr.f32.mxu1 %v14730_v53  ;;  %3812 = vadd.xlane.f32.xlu1 %v3811_v7  ;;  %v5617_v17 = vmul.f32 %v14403_v28, %v13917_v3  ;;  %v14921_v28 = vld [vmem:[%s13538_s9 + $0x40] sm:$0xf] }
 0x67b   : > { %3809 = vadd.xlane.f32.xlu0 %v3808_v10  ;;  %v3787_v5 = vpop.permute.xlu0 %3786  ;;  %v12277_v10 = vpack.c.bf16 %v16466_v31, %v16465_v40 }
 0x67c   : > { %v3785_v14 = vpop.permute.xlu1 %3784  ;;  %v14823_v20 = vpop.f32.mrb[16].mxu1  ;;  %v3817_v49 = vsel %vm264_vm0, %v3787_v5, 0.0  ;;  %v5611_v5 = vmul.f32 %v14361_v43, %v13917_v3  ;;  %v5614_v43 = vmul.f32 %v14393_v61, %v13917_v3  ;;  %v5615_v61 = vmul.f32 %v14388_v51, %v13917_v3 }
 0x67d   : > { %11778 = vmatmul.mubr.f32.vlgmr.msra.gmra.mrb[32].mxu1 %v14726_v29  ;;  %v3814_v6 = vsel %vm264_vm0, %v3785_v14, 0.0  ;;  %v14828_v58 = vpop.f32.mrb[17].mxu1  ;;  %v5612_v14 = vmul.f32 %v14378_v36, %v13917_v3  ;;  %v16467_v36 = vand.u32 4294901760, %v14741_v33  ;;  %v16471_v51 = vand.u32 4294901760, %v14784_v32 }
 0x67e   : > { %12272 = vmatpush3.bf16.xpose.msra.mxu1 %v12269_v21  ;;  %11780 = vmatprep.mubr.f32.mxu1 %v14751_v41 }
 0x67f   : > { %12274 = vmatprep.subr.bf16.mxu1 %v14720_v60  ;;  %3818 = vadd.xlane.f32.xlu1 %v3817_v49  ;;  %v16468_v49 = vand.u32 4294901760, %v14734_v22 }
 0x680   : > { %3815 = vadd.xlane.f32.xlu0 %v3814_v6  ;;  %v14832_v2 = vpop.f32.mrb[18].mxu1  ;;  %v16473_v6 = vand.u32 4294901760, %v14803_v12 }
 0x681   : > { %11781 = vmatmul.mubr.f32.gmra.mrb[34].mxu1 %v14748_v50  ;;  %v14835_v7 = vpop.f32.mrb[19].mxu1 }
 0x682   : > { %11783 = vmatprep.mubr.f32.mxu1 %v14772_v1 }
 0x684   : > { %v14838_v11 = vpop.f32.mrb[20].mxu1 }
 0x685   : > { %11784 = vmatmul.mubr.f32.gmra.mrb[36].mxu1 %v14768_v62  ;;  %v14841_v15 = vpop.f32.mrb[21].mxu1 }
 0x686   : > { %11786 = vmatprep.mubr.f32.mxu1 %v14793_v59 }
 0x688   : > { %v14844_v21 = vpop.f32.mrb[22].mxu1 }
 0x689   : > { %11787 = vmatmul.mubr.f32.gmra.mrb[38].mxu1 %v14789_v39  ;;  %v14847_v46 = vpop.f32.mrb[23].mxu1 }
 0x68a   : > { %11793 = vmatprep.mubr.f32.mxu1 %v14741_v33  ;;  %v16470_v33 = vand.u32 4294901760, %v14758_v27 }
 0x68d   : > { %11794 = vmatmul.mubr.f32.vlgmr.msra.gmra.mrb[32].mxu1 %v14734_v22  ;;  %v16472_v22 = vand.u32 4294901760, %v14778_v37 }
 0x68e   : > { %12276 = vmatpush3.bf16.xpose.msra.mxu1 %v14720_v60  ;;  %11796 = vmatprep.mubr.f32.mxu1 %v14761_v26  ;;  %v16474_v26 = vand.u32 4294901760, %v14797_v63 }
 0x68f   : > { %12278 = vmatprep.subr.bf16.mxu1 %v12277_v10 }
 0x690   : > { %5628 = vrot.lane.b32.xlu1 %v5611_v5, %s13080_s6 }
 0x691   : > { %11797 = vmatmul.mubr.f32.gmra.mrb[34].mxu1 %v14758_v27  ;;  %v13053_v27 = vld [vmem:[%s13538_s9 + $0x18] sm:$0xff] }
 0x692   : > { %11799 = vmatprep.mubr.f32.mxu1 %v14784_v32 }
 0x694   : > { %5630 = vrot.lane.b32.xlu1 %v5612_v14, %s13080_s6 }
 0x695   : > { %11800 = vmatmul.mubr.f32.gmra.mrb[36].mxu1 %v14778_v37  ;;  %v13054_v37 = vld [vmem:[%s13538_s9 + $0x10] sm:$0xff] }
 0x696   : > { %5626 = vrot.lane.b32.xlu0 %v5610_v45, %s13080_s6  ;;  %11802 = vmatprep.mubr.f32.mxu1 %v14803_v12 }
 0x698   : > { %5634 = vrot.lane.b32.xlu1 %v5614_v43, %s13080_s6 }
 0x699   : > { %11803 = vmatmul.mubr.f32.gmra.mrb[38].mxu1 %v14797_v63 }
 0x69a   : > { %5632 = vrot.lane.b32.xlu0 %v5613_v48, %s13080_s6  ;;  %11809 = vmatprep.mubr.f32.mxu1 %v16467_v36 }
 0x69c   : > { %5638 = vrot.lane.b32.xlu1 %v5616_v13, %s13080_s6 }
 0x69d   : > { %11810 = vmatmul.mubr.f32.vlgmr.msra.gmra.mrb[32].mxu1 %v16468_v49 }
 0x69e   : > { %5636 = vrot.lane.b32.xlu0 %v5615_v61, %s13080_s6  ;;  %12280 = vmatpush3.bf16.xpose.msra.mxu1 %v12277_v10 }
 0x69f   : > { %11812 = vmatprep.mubr.f32.mxu1 %v16469_v0  ;;  %12282 = vmatprep.subr.bf16.mxu1 %v14720_v60 }
 0x6a1   : > { %11813 = vmatmul.mubr.f32.gmra.mrb[34].mxu1 %v16470_v33 }
 0x6a2   : > { %5640 = vrot.lane.b32.xlu0 %v5617_v17, %s13080_s6  ;;  %11815 = vmatprep.mubr.f32.mxu1 %v16471_v51 }
 0x6a5   : > { %11816 = vmatmul.mubr.f32.gmra.mrb[36].mxu1 %v16472_v22 }
 0x6a6   : > { %11818 = vmatprep.mubr.f32.mxu1 %v16473_v6 }
 0x6a9   : > { %11819 = vmatmul.mubr.f32.gmra.mrb[38].mxu1 %v16474_v26 }
 0x6aa   : > { %11825 = vmatprep.mubr.f32.mxu1 %v14730_v53 }
 0x6ad   : > { %11826 = vmatmul.mubr.f32.vlgmr.msra.gmra.mrb[32].mxu1 %v14726_v29 }
 0x6ae   : > { %12284 = vmatpush3.bf16.xpose.msra.mxu1 %v14720_v60  ;;  %11828 = vmatprep.mubr.f32.mxu1 %v14751_v41  ;;  %v16475_v60 = vsub.s32 1, %v13540_v54 }
 0x6b1   : > { %11829 = vmatmul.mubr.f32.gmra.mrb[34].mxu1 %v14748_v50 }
 0x6b2   : > { %11831 = vmatprep.mubr.f32.mxu1 %v14772_v1 }
 0x6b5   : > { %11832 = vmatmul.mubr.f32.gmra.mrb[36].mxu1 %v14768_v62 }
 0x6b6   : > { %11834 = vmatprep.mubr.f32.mxu1 %v14793_v59 }
 0x6b9   : > { %11835 = vmatmul.mubr.f32.gmra.mrb[38].mxu1 %v14789_v39 }
 0x6ba   : > { %11841 = vmatprep.mubr.f32.mxu1 %v14730_v53  ;;  %v3737_v53 = vrot.slane %v14921_v28, %v16475_v60 }
 0x6bd   : > { %11842 = vmatmul.mubr.f32.vlgmr.msra.gmra.mrb[32].mxu1 %v14726_v29  ;;  %v3739_v29 = vsub.f32 %v13053_v27, %v3737_v53 }
 0x6be   : > { %11844 = vmatprep.mubr.f32.mxu1 %v14751_v41  ;;  %v3738_v41 = vsub.f32 %v13054_v37, %v3737_v53 }
 0x6bf   : > { %v3741_v63 = vand.u32 2147483647, %v3739_v29 }
 0x6c1   : > { %11845 = vmatmul.mubr.f32.gmra.mrb[34].mxu1 %v14748_v50  ;;  %v3743_v40 = vmax.f32 %v3741_v63, 0.0 }
 0x6c2   : > { %11847 = vmatprep.mubr.f32.mxu1 %v14772_v1  ;;  %v3740_v1 = vand.u32 2147483647, %v3738_v41 }
 0x6c3   : > { %v3745_v5 = vmin.f32 %v3743_v40, 5000.0 }
 0x6c5   : > { %11848 = vmatmul.mubr.f32.gmra.mrb[36].mxu1 %v14768_v62  ;;  %v14936_v13 = vmul.f32 0.0002, %v3745_v5 }
 0x6c6   : > { %11850 = vmatprep.mubr.f32.mxu1 %v14793_v59  ;;  %v3742_v59 = vmax.f32 %v3740_v1, 0.0 }
 0x6c8   : > { %v3744_v45 = vmin.f32 %v3742_v59, 5000.0 }
 0x6c9   : > { %11851 = vmatmul.mubr.f32.gmra.mrb[38].mxu1 %v14789_v39 }
 0x6ca   : > { %v14938_v61 = vmul.f32 0.0002, %v3744_v45 }
 0x6fe   : > { %v3801_v32 = vpop.xlane.xlu0 %3800 }
 0x6ff   : > { %v3798_v50 = vpop.xlane.xlu1 %3797  ;;  %v3821_v33 = vmul.f32 %v3801_v32, %v14936_v13 }
 0x700   : > { %v3820_v22 = vmul.f32 %v3798_v50, %v14938_v61 }
 0x701   : > { %v12373_v29 = vadd.f32 %v14823_v20, %v3821_v33 }
 0x702   : > { %v12374_v41 = vadd.f32 %v14828_v58, %v3820_v22 }
 0x703   : > { %v3804_v12 = vpop.xlane.xlu0 %3803  ;;  %v3807_v62 = vpop.xlane.xlu1 %3806  ;;  %v14958_v5 = vmul.f32 0.17677669, %v12373_v29 }
 0x704   : > { %v3822_v32 = vmul.f32 %v3804_v12, %v14938_v61  ;;  %v3823_v50 = vmul.f32 %v3807_v62, %v14936_v13  ;;  %v14963_v12 = vmul.f32 0.17677669, %v12374_v41 }
 0x706   : > { %v14928_v31 = vpop.f32.mrb[24].mxu1  ;;  %v12376_v45 = vadd.f32 %v14835_v7, %v3822_v32  ;;  %v12375_v20 = vadd.f32 %v14832_v2, %v3823_v50  ;;  %v4649_v7 = vsel %vm2787_vm1, %v14958_v5, -inf }
 0x707   : > { %v3813_v39 = vpop.xlane.xlu1 %3812  ;;  %v14930_v10 = vpop.f32.mrb[25].mxu1 }
 0x708   : > { %v3810_v14 = vpop.xlane.xlu0 %3809  ;;  %v14972_v2 = vmul.f32 0.17677669, %v12375_v20 }
 0x709   : > { %v3824_v62 = vmul.f32 %v3810_v14, %v14938_v61 }
 0x70a   : > { %v14932_v43 = vpop.f32.mrb[26].mxu1 }
 0x70b   : > { %v14934_v48 = vpop.f32.mrb[27].mxu1 }
 0x70c   : > { %v3819_v36 = vpop.xlane.xlu1 %3818 }
 0x70d   : > { %v3816_v49 = vpop.xlane.xlu0 %3815  ;;  %v3827_v29 = vmul.f32 %v3819_v36, %v14936_v13 }
 0x70e   : > { %v14940_v0 = vpop.f32.mrb[28].mxu1 }
 0x70f   : > { %v14942_v17 = vpop.f32.mrb[29].mxu1  ;;  %v12379_v50 = vadd.f32 %v14844_v21, %v3827_v29 }
 0x710   : > { %v5629_v51 = vpop.permute.xlu1 %5628 }
 0x711   : > { %v5627_v6 = vpop.permute.xlu0 %5626  ;;  %v5653_v26 = vsel %vm264_vm0, %v5629_v51, 0.0  ;;  %v3825_v51 = vmul.f32 %v3813_v39, %v14936_v13  ;;  %v3826_v39 = vmul.f32 %v3816_v49, %v14938_v61  ;;  %v14994_v49 = vmul.f32 0.17677669, %v12379_v50 }
 0x712   : > { %v5650_v60 = vsel %vm264_vm0, %v5627_v6, 0.0  ;;  %5654 = vadd.xlane.f32.xlu1 %v5653_v26  ;;  %v14948_v53 = vpop.f32.mrb[30].mxu1  ;;  %v4646_v6 = vsel %vm2787_vm1, %v14963_v12, -inf  ;;  %v14974_v26 = vmul.f32 0.17677669, %v12376_v45 }
 0x713   : > { %5651 = vadd.xlane.f32.xlu0 %v5650_v60  ;;  %v14950_v27 = vpop.f32.mrb[31].mxu1  ;;  %v12378_v60 = vadd.f32 %v14841_v15, %v3824_v62  ;;  %v12377_v14 = vadd.f32 %v14838_v11, %v3825_v51  ;;  %v12380_v32 = vadd.f32 %v14847_v46, %v3826_v39  ;;  %v4667_v21 = vsel %vm2787_vm1, %v14994_v49, -inf }
 0x714   : > { %v5631_v37 = vpop.permute.xlu1 %5630  ;;  %v4652_v41 = vsel %vm2787_vm1, %v14974_v26, -inf  ;;  %v7464_v62 = vmul.f32 %v14578_v34, %v13917_v3  ;;  %v7468_v51 = vmul.f32 %v14605_v25, %v13917_v3  ;;  %v7469_v34 = vmul.f32 %v14600_v16, %v13917_v3 }
 0x715   : > { %v5633_v63 = vpop.permute.xlu0 %5632  ;;  %v5656_v1 = vsel %vm264_vm0, %v5631_v37, 0.0  ;;  %v4655_v37 = vsel %vm2787_vm1, %v14972_v2, -inf  ;;  %v14988_v15 = vmul.f32 0.17677669, %v12378_v60 }
 0x716   : > { %v5659_v40 = vsel %vm264_vm0, %v5633_v63, 0.0  ;;  %v14986_v63 = vmul.f32 0.17677669, %v12377_v14 }
 0x717   : > { %5660 = vadd.xlane.f32.xlu1 %v5659_v40  ;;  %5657 = vadd.xlane.f32.xlu0 %v5656_v1  ;;  %v4658_v36 = vsel %vm2787_vm1, %v14988_v15, -inf  ;;  %v14996_v1 = vmul.f32 0.17677669, %v12380_v32 }
 0x718   : > { %v5635_v59 = vpop.permute.xlu1 %5634  ;;  %v4661_v11 = vsel %vm2787_vm1, %v14986_v63, -inf }
 0x719   : > { %v5637_v33 = vpop.permute.xlu0 %5636  ;;  %v5662_v58 = vsel %vm264_vm0, %v5635_v59, 0.0  ;;  %v4664_v46 = vsel %vm2787_vm1, %v14996_v1, -inf }
 0x71a   : > { %v5665_v22 = vsel %vm264_vm0, %v5637_v33, 0.0  ;;  %v7465_v33 = vmul.f32 %v14571_v4, %v13917_v3  ;;  %v7470_v4 = vmul.f32 %v14620_v47, %v13917_v3 }
 0x71b   : > { %5666 = vadd.xlane.f32.xlu1 %v5665_v22  ;;  %5663 = vadd.xlane.f32.xlu0 %v5662_v58  ;;  %v7466_v58 = vmul.f32 %v14590_v30, %v13917_v3  ;;  %v7467_v22 = vmul.f32 %v14586_v42, %v13917_v3  ;;  %v7471_v30 = vmul.f32 %v14615_v23, %v13917_v3  ;;  %v16339_v42 = vsub.s32 2, %v13540_v54 }
 0x71c   : > { %v5639_v59 = vpop.permute.xlu1 %5638 }
 0x71d   : > { %v5641_v40 = vpop.permute.xlu0 %5640  ;;  %v5668_v20 = vsel %vm264_vm0, %v5639_v59, 0.0  ;;  %v5591_v25 = vrot.slane %v14921_v28, %v16339_v42 }
 0x71e   : > { %v5671_v45 = vsel %vm264_vm0, %v5641_v40, 0.0 }
 0x71f   : > { %4647 = vmax.xlane.f32.xlu1 %v4646_v6  ;;  %4650 = vmax.xlane.f32.xlu0 %v4649_v7  ;;  %v13055_v6 = vld [vmem:[%s13538_s9 + $0x20] sm:$0xff] }
 0x720   : > { %v5592_v47 = vsub.f32 %v13055_v6, %v5591_v25 }
 0x722   : > { %v5594_v16 = vand.u32 2147483647, %v5592_v47 }
 0x723   : > { %4656 = vmax.xlane.f32.xlu1 %v4655_v37  ;;  %4653 = vmax.xlane.f32.xlu0 %v4652_v41 }
 0x724   : > { %v5596_v39 = vmax.f32 %v5594_v16, 0.0 }
 0x726   : > { %v5598_v29 = vmin.f32 %v5596_v39, 5000.0 }
 0x727   : > { %4662 = vmax.xlane.f32.xlu1 %v4661_v11  ;;  %4659 = vmax.xlane.f32.xlu0 %v4658_v36 }
 0x728   : > { %v15047_v32 = vmul.f32 0.0002, %v5598_v29 }
 0x72a   : > { %16476 = vst [vmem:[#allocation29_spill] sm:$0xff] %v15047_v32 }
 0x72b   : > { %4668 = vmax.xlane.f32.xlu1 %v4667_v21  ;;  %4665 = vmax.xlane.f32.xlu0 %v4664_v46  ;;  %v13056_v21 = vld [vmem:[%s13538_s9 + $0x28] sm:$0xff] }
 0x72c   : > { %v5593_v46 = vsub.f32 %v13056_v21, %v5591_v25 }
 0x72f   : > { %5672 = vadd.xlane.f32.xlu1 %v5671_v45  ;;  %5669 = vadd.xlane.f32.xlu0 %v5668_v20 }
 0x740   : > { %7482 = vrot.lane.b32.xlu1 %v7465_v33, %s13080_s6  ;;  %v5595_v33 = vand.u32 2147483647, %v5593_v46 }
 0x744   : > { %7484 = vrot.lane.b32.xlu1 %v7466_v58, %s13080_s6 }
 0x745   : > { %7480 = vrot.lane.b32.xlu0 %v7464_v62, %s13080_s6 }
 0x748   : > { %7488 = vrot.lane.b32.xlu1 %v7468_v51, %s13080_s6 }
 0x749   : > { %7486 = vrot.lane.b32.xlu0 %v7467_v22, %s13080_s6 }
 0x74c   : > { %7492 = vrot.lane.b32.xlu1 %v7470_v4, %s13080_s6  ;;  %v5597_v4 = vmax.f32 %v5595_v33, 0.0 }
 0x74d   : > { %7490 = vrot.lane.b32.xlu0 %v7469_v34, %s13080_s6 }
 0x74e   : > { %v5599_v25 = vmin.f32 %v5597_v4, 5000.0 }
 0x751   : > { %7494 = vrot.lane.b32.xlu0 %v7471_v30, %s13080_s6 }
 0x790   : > { %v15033_v7 = vpop.f32.mrb[32].mxu1 }
 0x791   : > { %v15035_v60 = vpop.f32.mrb[33].mxu1 }
 0x794   : > { %v15037_v14 = vpop.f32.mrb[34].mxu1 }
 0x795   : > { %v15039_v3 = vpop.f32.mrb[35].mxu1 }
 0x798   : > { %v15041_v23 = vpop.f32.mrb[36].mxu1 }
 0x799   : > { %v15043_v37 = vpop.f32.mrb[37].mxu1 }
 0x79c   : > { %v15045_v41 = vpop.f32.mrb[38].mxu1 }
 0x79d   : > { %v15049_v50 = vpop.f32.mrb[39].mxu1 }
 0x79f   : > { %v5655_v11 = vpop.xlane.xlu1 %5654 }
 0x7a0   : > { %v5652_v36 = vpop.xlane.xlu0 %5651 }
 0x7a1   : > { %v5674_v40 = vmul.f32 %v5652_v36, %v15047_v32  ;;  %v15062_v36 = vmul.f32 0.0002, %v5599_v25 }
 0x7a3   : > { %v12390_v59 = vadd.f32 %v14930_v10, %v5674_v40  ;;  %16477 = vst [vmem:[#allocation30_spill] sm:$0xff] %v15062_v36 }
 0x7a4   : > { %v5658_v45 = vpop.xlane.xlu0 %5657  ;;  %v5661_v20 = vpop.xlane.xlu1 %5660 }
 0x7a5   : > { %v15054_v58 = vmul.f32 0.17677669, %v12390_v59 }
 0x7a7   : > { %v6500_v62 = vsel %vm2787_vm1, %v15054_v58, -inf }
 0x7a8   : > { %6501 = vmax.xlane.f32.xlu1 %v6500_v62  ;;  %v15058_v51 = vpop.xlane.xlu0 %5663  ;;  %v5667_v22 = vpop.xlane.xlu1 %5666 }
 0x7ac   : > { %v4651_v34 = vpop.xlane.xlu0 %4650  ;;  %v4648_v30 = vpop.xlane.xlu1 %4647 }
 0x7ad   : > { %v4671_v6 = vsub.f32 %v14958_v5, %v4651_v34  ;;  %v4670_v10 = vsub.f32 %v14963_v12, %v4648_v30  ;;  %v5675_v5 = vmul.f32 %v5655_v11, %v15062_v36 }
 0x7af   : > { %v4680_v47 = vmul.f32 1.442695, %v4671_v6  ;;  %v4678_v16 = vmul.f32 1.442695, %v4670_v10 }
 0x7b0   : > { %v4654_v39 = vpop.xlane.xlu0 %4653  ;;  %v4657_v29 = vpop.xlane.xlu1 %4656 }
 0x7b1   : > { %12954 = vpow2.f32 %v4680_v47  ;;  %v4672_v21 = vsub.f32 %v14974_v26, %v4654_v39  ;;  %v4673_v46 = vsub.f32 %v14972_v2, %v4657_v29  ;;  %v12389_v26 = vadd.f32 %v14928_v31, %v5675_v5 }
 0x7b2   : > { %12956 = vpow2.f32 %v4678_v16  ;;  %v5676_v16 = vmul.f32 %v5658_v45, %v15047_v32  ;;  %v5677_v29 = vmul.f32 %v5661_v20, %v15062_v36  ;;  %v5679_v20 = vmul.f32 %v5667_v22, %v15062_v36 }
 0x7b3   : > { %v4682_v40 = vmul.f32 1.442695, %v4672_v21  ;;  %v4684_v59 = vmul.f32 1.442695, %v4673_v46  ;;  %v15081_v39 = vmul.f32 0.17677669, %v12389_v26 }
 0x7b4   : > { %v4660_v33 = vpop.xlane.xlu0 %4659  ;;  %v4663_v62 = vpop.xlane.xlu1 %4662  ;;  %v12392_v46 = vadd.f32 %v14934_v48, %v5676_v16  ;;  %v12393_v22 = vadd.f32 %v14940_v0, %v5679_v20 }
 0x7b5   : > { %12958 = vpow2.f32 %v4682_v40  ;;  %v4674_v12 = vsub.f32 %v14988_v15, %v4660_v33  ;;  %v4675_v4 = vsub.f32 %v14986_v63, %v4663_v62  ;;  %v6503_v45 = vsel %vm2787_vm1, %v15081_v39, -inf }
 0x7b6   : > { %12960 = vpow2.f32 %v4684_v59  ;;  %v12391_v33 = vadd.f32 %v14932_v43, %v5677_v29  ;;  %v15101_v5 = vmul.f32 0.17677669, %v12392_v46  ;;  %v15124_v16 = vmul.f32 0.17677669, %v12393_v22 }
 0x7b7   : > { %v4688_v34 = vmul.f32 1.442695, %v4675_v4  ;;  %v4686_v30 = vmul.f32 1.442695, %v4674_v12 }
 0x7b8   : > { %v4669_v25 = vpop.xlane.xlu1 %4668  ;;  %v4666_v6 = vpop.xlane.xlu0 %4665  ;;  %v15107_v43 = vmul.f32 0.17677669, %v12391_v33  ;;  %v6515_v46 = vsel %vm2787_vm1, %v15124_v16, -inf }
 0x7b9   : > { %v4677_v2 = vsub.f32 %v14994_v49, %v4669_v25  ;;  %12962 = vpow2.f32 %v4688_v34  ;;  %v4676_v11 = vsub.f32 %v14996_v1, %v4666_v6  ;;  %v5678_v34 = vmul.f32 %v15058_v51, %v15047_v32 }
 0x7ba   : > { %12964 = vpow2.f32 %v4686_v30  ;;  %v6506_v25 = vsel %vm2787_vm1, %v15101_v5, -inf  ;;  %v6509_v51 = vsel %vm2787_vm1, %v15107_v43, -inf }
 0x7bb   : > { %v15071_v10 = vpop.eup %12954  ;;  %v4692_v15 = vmul.f32 1.442695, %v4677_v2  ;;  %v4690_v21 = vmul.f32 1.442695, %v4676_v11  ;;  %v12394_v11 = vadd.f32 %v14942_v17, %v5678_v34 }
 0x7bc   : > { %v15073_v47 = vpop.eup %12956  ;;  %v4697_v63 = vsel %vm2787_vm1, %v15071_v10, 0.0  ;;  %v5673_v4 = vpop.xlane.xlu1 %5672 }
 0x7bd   : > { %v4694_v31 = vsel %vm2787_vm1, %v15073_v47, 0.0  ;;  %4698 = vadd.xlane.f32.xlu0 %v4697_v63  ;;  %12966 = vpow2.f32 %v4692_v15  ;;  %v5681_v30 = vmul.f32 %v5673_v4, %v15062_v36  ;;  %v5670_v2 = vpop.xlane.xlu0 %5669 }
 0x7be   : > { %4695 = vadd.xlane.f32.xlu1 %v4694_v31  ;;  %12968 = vpow2.f32 %v4690_v21  ;;  %v5680_v0 = vmul.f32 %v5670_v2, %v15047_v32  ;;  %v15128_v21 = vmul.f32 0.17677669, %v12394_v11 }
 0x7bf   : > { %v15083_v49 = vpop.eup %12958  ;;  %v12395_v15 = vadd.f32 %v14948_v53, %v5681_v30 }
 0x7c0   : > { %v4700_v1 = vsel %vm2787_vm1, %v15083_v49, 0.0  ;;  %v15091_v40 = vpop.eup %12960  ;;  %v12396_v17 = vadd.f32 %v14950_v27, %v5680_v0 }
 0x7c1   : > { %4701 = vadd.xlane.f32.xlu0 %v4700_v1  ;;  %v4703_v62 = vsel %vm2787_vm1, %v15091_v40, 0.0  ;;  %v7481_v29 = vpop.permute.xlu0 %7480  ;;  %v15131_v1 = vmul.f32 0.17677669, %v12395_v15 }
 0x7c2   : > { %6504 = vmax.xlane.f32.xlu1 %v6503_v45  ;;  %v7483_v45 = vpop.permute.xlu1 %7482  ;;  %v15137_v33 = vmul.f32 0.17677669, %v12396_v17  ;;  %v7504_v30 = vsel %vm264_vm0, %v7481_v29, 0.0 }
 0x7c3   : > { %v15093_v59 = vpop.eup %12962  ;;  %v6521_v20 = vsel %vm2787_vm1, %v15131_v1, -inf }
 0x7c4   : > { %v4709_v48 = vsel %vm2787_vm1, %v15093_v59, 0.0  ;;  %v15103_v12 = vpop.eup %12964  ;;  %v6518_v4 = vsel %vm2787_vm1, %v15137_v33, -inf }
 0x7c5   : > { %4710 = vadd.xlane.f32.xlu0 %v4709_v48  ;;  %v4706_v26 = vsel %vm2787_vm1, %v15103_v12, 0.0  ;;  %v7487_v27 = vpop.permute.xlu0 %7486  ;;  %v7507_v48 = vsel %vm264_vm0, %v7483_v45, 0.0 }
 0x7c6   : > { %4704 = vadd.xlane.f32.xlu1 %v4703_v62  ;;  %v6512_v62 = vsel %vm2787_vm1, %v15128_v21, -inf  ;;  %v7485_v34 = vpop.permute.xlu1 %7484 }
 0x7c7   : > { %v15115_v6 = vpop.eup %12966  ;;  %v7510_v2 = vsel %vm264_vm0, %v7485_v34, 0.0 }
 0x7c8   : > { %v4715_v63 = vsel %vm2787_vm1, %v15115_v6, 0.0  ;;  %v15126_v31 = vpop.eup %12968 }
 0x7c9   : > { %4707 = vadd.xlane.f32.xlu0 %v4706_v26  ;;  %v4712_v53 = vsel %vm2787_vm1, %v15126_v31, 0.0  ;;  %v7491_v22 = vpop.permute.xlu0 %7490 }
 0x7ca   : > { %6507 = vmax.xlane.f32.xlu1 %v6506_v25  ;;  %v7513_v25 = vsel %vm264_vm0, %v7487_v27, 0.0  ;;  %v7489_v26 = vpop.permute.xlu1 %7488  ;;  %v7519_v11 = vsel %vm264_vm0, %v7491_v22, 0.0  ;;  %v16478_v27 = vsub.s32 3, %v13540_v54  ;;  %v13057_v22 = vld [vmem:[%s13538_s9 + $0x38] sm:$0xff] }
 0x7cb   : > { %v7516_v0 = vsel %vm264_vm0, %v7489_v26, 0.0 }
 0x7cd   : > { %4716 = vadd.xlane.f32.xlu0 %v4715_v63 }
 0x7ce   : > { %6510 = vmax.xlane.f32.xlu1 %v6509_v51  ;;  %v7495_v51 = vpop.permute.xlu0 %7494  ;;  %v7493_v63 = vpop.permute.xlu1 %7492 }
 0x7cf   : > { %v7525_v15 = vsel %vm264_vm0, %v7495_v51, 0.0  ;;  %v7522_v29 = vsel %vm264_vm0, %v7493_v63, 0.0 }
 0x7d1   : > { %4713 = vadd.xlane.f32.xlu0 %v4712_v53 }
 0x7d2   : > { %6516 = vmax.xlane.f32.xlu1 %v6515_v46 }
 0x7d5   : > { %6513 = vmax.xlane.f32.xlu0 %v6512_v62 }
 0x7d6   : > { %6522 = vmax.xlane.f32.xlu1 %v6521_v20 }
 0x7d9   : > { %6519 = vmax.xlane.f32.xlu0 %v6518_v4 }
 0x7da   : > { %7508 = vadd.xlane.f32.xlu1 %v7507_v48  ;;  %v7445_v48 = vrot.slane %v14921_v28, %v16478_v27 }
 0x7dd   : > { %7505 = vadd.xlane.f32.xlu0 %v7504_v30 }
 0x7de   : > { %7514 = vadd.xlane.f32.xlu1 %v7513_v25 }
 0x7e1   : > { %7511 = vadd.xlane.f32.xlu0 %v7510_v2 }
 0x7e2   : > { %7520 = vadd.xlane.f32.xlu1 %v7519_v11 }
 0x7e5   : > { %7517 = vadd.xlane.f32.xlu0 %v7516_v0  ;;  %v13058_v0 = vld [vmem:[%s13538_s9 + $0x30] sm:$0xff] }
 0x7e6   : > { %7526 = vadd.xlane.f32.xlu1 %v7525_v15  ;;  %v7446_v15 = vsub.f32 %v13058_v0, %v7445_v48 }
 0x7e9   : > { %7523 = vadd.xlane.f32.xlu0 %v7522_v29 }
 0x835   : > { %v6502_v17 = vpop.xlane.xlu1 %6501 }
 0x836   : > { %v6524_v46 = vsub.f32 %v15054_v58, %v6502_v17  ;;  %v7447_v58 = vsub.f32 %v13057_v22, %v7445_v48  ;;  %v7448_v48 = vand.u32 2147483647, %v7446_v15 }
 0x838   : > { %v6532_v53 = vmul.f32 1.442695, %v6524_v46  ;;  %v7449_v25 = vand.u32 2147483647, %v7447_v58 }
 0x83a   : > { %12970 = vpow2.f32 %v6532_v53  ;;  %v7451_v28 = vmax.f32 %v7449_v25, 0.0 }
 0x83c   : > { %v7453_v22 = vmin.f32 %v7451_v28, 5000.0 }
 0x83e   : > { %v15197_v28 = vmul.f32 0.0002, %v7453_v22 }
 0x844   : > { %v15154_v45 = vpop.eup %12970 }
 0x845   : > { %v6548_v20 = vsel %vm2787_vm1, %v15154_v45, 0.0 }
 0x846   : > { %6549 = vadd.xlane.f32.xlu0 %v6548_v20 }
 0x84a   : > { %v4699_v62 = vpop.xlane.xlu0 %4698 }
 0x84b   : > { %v4696_v4 = vpop.xlane.xlu1 %4695  ;;  %12972 = vrcp.f32 %v4699_v62 }
 0x84c   : > { %12974 = vrcp.f32 %v4696_v4 }
 0x84e   : > { %v4702_v34 = vpop.xlane.xlu0 %4701 }
 0x84f   : > { %v15162_v30 = vpop.xlane.xlu1 %6504  ;;  %12976 = vrcp.f32 %v4702_v34 }
 0x852   : > { %v4711_v2 = vpop.xlane.xlu0 %4710 }
 0x853   : > { %v4705_v26 = vpop.xlane.xlu1 %4704 }
 0x854   : > { %12978 = vrcp.f32 %v4705_v26 }
 0x855   : > { %v12973_v11 = vpop.eup %12972  ;;  %12980 = vrcp.f32 %v4711_v2 }
 0x856   : > { %v12975_v51 = vpop.eup %12974  ;;  %v15166_v63 = vmul.f32 %v12973_v11, %v15071_v10  ;;  %v4708_v46 = vpop.xlane.xlu0 %4707 }
 0x857   : > { %v15169_v29 = vmul.f32 %v12975_v51, %v15073_v47  ;;  %v6508_v17 = vpop.xlane.xlu1 %6507  ;;  %12982 = vrcp.f32 %v4708_v46  ;;  %v7450_v51 = vmax.f32 %v7448_v48, 0.0 }
 0x858   : > { %v4778_v53 = vsel %vm2787_vm1, %v15166_v63, 0  ;;  %v6526_v20 = vsub.f32 %v15101_v5, %v6508_v17 }
 0x859   : > { %v12977_v62 = vpop.eup %12976  ;;  %v15174_v27 = vand.u32 4294901760, %v4778_v53  ;;  %v4775_v10 = vsel %vm2787_vm1, %v15169_v29, 0  ;;  %v7452_v35 = vmin.f32 %v7450_v51, 5000.0 }
 0x85a   : > { %v15179_v4 = vmul.f32 %v12977_v62, %v15083_v49  ;;  %v6536_v47 = vmul.f32 1.442695, %v6526_v20  ;;  %v15181_v34 = vand.u32 4294901760, %v4775_v10  ;;  %v4717_v5 = vpop.xlane.xlu0 %4716 }
 0x85b   : > { %v15184_v58 = vsub.f32 %v4778_v53, %v15174_v27  ;;  %v15186_v25 = vpop.xlane.xlu1 %6510 }
 0x85c   : > { %12984 = vpow2.f32 %v6536_v47  ;;  %v15189_v26 = vsub.f32 %v4775_v10, %v15181_v34  ;;  %v4781_v2 = vsel %vm2787_vm1, %v15179_v4, 0  ;;  %v6525_v10 = vsub.f32 %v15081_v39, %v15162_v30 }
 0x85d   : > { %12986 = vrcp.f32 %v4717_v5  ;;  %v16340_v49 = vand.u32 4294901760, %v15184_v58  ;;  %v15194_v11 = vand.u32 4294901760, %v4781_v2 }
 0x85e   : > { %v16342_v0 = vand.u32 4294901760, %v15189_v26  ;;  %v12979_v15 = vpop.eup %12978  ;;  %v4714_v46 = vpop.xlane.xlu0 %4713 }
 0x85f   : > { %v6517_v17 = vpop.xlane.xlu1 %6516  ;;  %v4878_v53 = vsub.f32 %v15184_v58, %v16340_v49  ;;  %v15203_v20 = vsub.f32 %v4781_v2, %v15194_v11  ;;  %v12981_v62 = vpop.eup %12980  ;;  %v15208_v48 = vmul.f32 %v12979_v15, %v15091_v40  ;;  %12988 = vrcp.f32 %v4714_v46 }
 0x860   : > { %v6529_v47 = vsub.f32 %v15124_v16, %v6517_v17  ;;  %v4868_v22 = vsub.f32 %v15189_v26, %v16342_v0  ;;  %v15215_v5 = vmul.f32 %v12981_v62, %v15093_v59 }
 0x861   : > { %v4879_v42 = vand.u32 4294901760, %v4878_v53  ;;  %v16341_v2 = vand.u32 4294901760, %v15203_v20  ;;  %v12983_v49 = vpop.eup %12982  ;;  %v4784_v40 = vsel %vm2787_vm1, %v15208_v48, 0 }
 0x862   : > { %v6542_v8 = vmul.f32 1.442695, %v6529_v47  ;;  %v4869_v39 = vand.u32 4294901760, %v4868_v22  ;;  %v15221_v16 = vmul.f32 %v12983_v49, %v15103_v12  ;;  %v6514_v15 = vpop.xlane.xlu0 %6513  ;;  %v15226_v17 = vand.u32 4294901760, %v4784_v40 }
 0x863   : > { %v6523_v30 = vpop.xlane.xlu1 %6522  ;;  %v4888_v59 = vsub.f32 %v15203_v20, %v16341_v2  ;;  %v4790_v46 = vsel %vm2787_vm1, %v15215_v5, 0  ;;  %v6528_v53 = vsub.f32 %v15128_v21, %v6514_v15  ;;  %v6534_v12 = vmul.f32 1.442695, %v6525_v10 }
 0x864   : > { %12990 = vpow2.f32 %v6542_v8  ;;  %v6531_v51 = vsub.f32 %v15131_v1, %v6523_v30  ;;  %11473 = vmatprep.mubr.f32.mxu0 %v4869_v39  ;;  %v15232_v62 = vand.u32 4294901760, %v4790_v46  ;;  %v15235_v47 = vsub.f32 %v4784_v40, %v15226_v17  ;;  %v16479_v30 = vld [vmem:[#allocation6_spill] sm:$0xff]  ;;  %v16480_v40 = vld [vmem:[#allocation4_spill] sm:$0xff] }
 0x865   : > { %11474 = vmatmul.mubr.f32.vlgmr.msra.gmra.mrb[24].mxu0 %v4879_v42  ;;  %v4889_v49 = vand.u32 4294901760, %v4888_v59  ;;  %v4787_v22 = vsel %vm2787_vm1, %v15221_v16, 0  ;;  %v6527_v8 = vsub.f32 %v15107_v43, %v15186_v25  ;;  %v6540_v1 = vmul.f32 1.442695, %v6528_v53 }
 0x866   : > { %v15239_v2 = vpop.eup %12984  ;;  %12196 = vmatpush3.bf16.msra.mxu0 %v16479_v30  ;;  %v15244_v21 = vand.u32 4294901760, %v4787_v22  ;;  %v15247_v10 = vsub.f32 %v4790_v46, %v15232_v62  ;;  %v6546_v39 = vmul.f32 1.442695, %v6531_v51  ;;  %v6520_v59 = vpop.xlane.xlu0 %6519  ;;  %v16343_v43 = vand.u32 4294901760, %v15235_v47 }
 0x867   : > { %v12987_v42 = vpop.eup %12986  ;;  %12198 = vmatprep.subr.bf16.mxu0 %v16480_v40  ;;  %v7509_v15 = vpop.xlane.xlu1 %7508  ;;  %v6554_v0 = vsel %vm2787_vm1, %v15239_v2, 0.0  ;;  %11476 = vmatprep.mubr.f32.mxu0 %v4889_v49  ;;  %v15253_v25 = vmul.f32 0.0002, %v7452_v35  ;;  %v6530_v30 = vsub.f32 %v15137_v33, %v6520_v59  ;;  %12992 = vpow2.f32 %v6540_v1 }
 0x868   : > { %v15256_v53 = vmul.f32 %v12987_v42, %v15115_v6  ;;  %v7529_v46 = vmul.f32 %v7509_v15, %v15197_v28  ;;  %6555 = vadd.xlane.f32.xlu0 %v6554_v0  ;;  %v4898_v51 = vsub.f32 %v15235_v47, %v16343_v43  ;;  %v15264_v18 = vsub.f32 %v4787_v22, %v15244_v21 }
 0x869   : > { %v16344_v49 = vand.u32 4294901760, %v15247_v10  ;;  %12994 = vpow2.f32 %v6534_v12  ;;  %v6538_v35 = vmul.f32 1.442695, %v6527_v8  ;;  %v12989_v15 = vpop.eup %12988  ;;  %v6544_v12 = vmul.f32 1.442695, %v6530_v30 }
 0x86a   : > { %v12405_v6 = vadd.f32 %v15033_v7, %v7529_v46  ;;  %v4796_v42 = vsel %vm2787_vm1, %v15256_v53, 0  ;;  %12996 = vpow2.f32 %v6546_v39  ;;  %v7506_v33 = vpop.xlane.xlu0 %7505  ;;  %v4899_v0 = vand.u32 4294901760, %v4898_v51 }
 0x86b   : > { %v16345_v1 = vand.u32 4294901760, %v15264_v18  ;;  %v15271_v59 = vand.u32 4294901760, %v4796_v42  ;;  %v15274_v22 = vmul.f32 %v12989_v15, %v15126_v31  ;;  %v4918_v7 = vsub.f32 %v15247_v10, %v16344_v49 }
 0x86c   : > { %v15276_v43 = vmul.f32 0.17677669, %v12405_v6  ;;  %v7528_v8 = vmul.f32 %v7506_v33, %v15253_v25  ;;  %11477 = vmatmul.mubr.f32.gmra.mrb[26].mxu0 %v4899_v0  ;;  %12998 = vpow2.f32 %v6538_v35 }
 0x86d   : > { %v4908_v39 = vsub.f32 %v15264_v18, %v16345_v1  ;;  %v15286_v46 = vsub.f32 %v4796_v42, %v15271_v59  ;;  %v4793_v30 = vsel %vm2787_vm1, %v15274_v22, 0  ;;  %13000 = vpow2.f32 %v6544_v12  ;;  %v7515_v42 = vpop.xlane.xlu1 %7514 }
 0x86e   : > { %v15288_v51 = vpop.eup %12990  ;;  %v8357_v31 = vsel %vm2787_vm1, %v15276_v43, -inf  ;;  %v12406_v6 = vadd.f32 %v15035_v60, %v7528_v8  ;;  %v7512_v15 = vpop.xlane.xlu0 %7511  ;;  %v15297_v49 = vand.u32 4294901760, %v4793_v30  ;;  %v4919_v35 = vand.u32 4294901760, %v4918_v7 }
 0x86f   : > { %8358 = vmax.xlane.f32.xlu1 %v8357_v31  ;;  %v6563_v33 = vsel %vm2787_vm1, %v15288_v51, 0.0  ;;  %v4909_v0 = vand.u32 4294901760, %v4908_v39  ;;  %v16346_v1 = vand.u32 4294901760, %v15286_v46  ;;  %v7530_v8 = vmul.f32 %v7512_v15, %v15253_v25 }
 0x870   : > { %6564 = vadd.xlane.f32.xlu0 %v6563_v33  ;;  %v15300_v24 = vmul.f32 0.17677669, %v12406_v6  ;;  %v15303_v38 = vsub.f32 %v4793_v30, %v15297_v49  ;;  %v7531_v56 = vmul.f32 %v7515_v42, %v15197_v28 }
 0x871   : > { %11479 = vmatprep.mubr.f32.mxu0 %v4909_v0  ;;  %v15305_v60 = vpop.eup %12992  ;;  %v4938_v6 = vsub.f32 %v15286_v46, %v16346_v1 }
 0x872   : > { %11480 = vmatmul.mubr.f32.gmra.mrb[28].mxu0 %v4919_v35  ;;  %v8354_v39 = vsel %vm2787_vm1, %v15300_v24, -inf  ;;  %v7518_v12 = vpop.xlane.xlu0 %7517  ;;  %v4927_v31 = vand.u32 4294901760, %v15303_v38  ;;  %v6560_v15 = vsel %vm2787_vm1, %v15305_v60, 0.0  ;;  %v7521_v35 = vpop.xlane.xlu1 %7520 }
 0x873   : > { %v15311_v7 = vpop.eup %12994  ;;  %8355 = vmax.xlane.f32.xlu1 %v8354_v39  ;;  %v7532_v33 = vmul.f32 %v7518_v12, %v15253_v25  ;;  %v12408_v39 = vadd.f32 %v15039_v3, %v7530_v8  ;;  %v4939_v12 = vand.u32 4294901760, %v4938_v6  ;;  %v12407_v3 = vadd.f32 %v15037_v14, %v7531_v56 }
 0x874   : > { %v15316_v30 = vpop.eup %12996  ;;  %v4928_v0 = vsub.f32 %v15303_v38, %v4927_v31  ;;  %6561 = vadd.xlane.f32.xlu0 %v6560_v15  ;;  %v6551_v1 = vsel %vm2787_vm1, %v15311_v7, 0.0  ;;  %v7533_v8 = vmul.f32 %v7521_v35, %v15197_v28 }
 0x875   : > { %v12410_v32 = vadd.f32 %v15043_v37, %v7532_v33  ;;  %v6569_v15 = vsel %vm2787_vm1, %v15316_v30, 0.0  ;;  %v15349_v56 = vmul.f32 0.17677669, %v12407_v3 }
 0x876   : > { %v7524_v9 = vpop.xlane.xlu0 %7523  ;;  %v4929_v55 = vand.u32 4294901760, %v4928_v0  ;;  %v15328_v54 = vpop.eup %12998  ;;  %v15338_v0 = vmul.f32 0.17677669, %v12408_v39  ;;  %v12409_v14 = vadd.f32 %v15041_v23, %v7533_v8  ;;  %v16482_v8 = vld [vmem:[#allocation5_spill] sm:$0xff] }
 0x877   : > { %6552 = vadd.xlane.f32.xlu1 %v6551_v1  ;;  %v7534_v36 = vmul.f32 %v7524_v9, %v15253_v25  ;;  %v15334_v42 = vpop.eup %13000  ;;  %v6557_v37 = vsel %vm2787_vm1, %v15328_v54, 0.0  ;;  %v7527_v9 = vpop.xlane.xlu1 %7526  ;;  %v8363_v39 = vsel %vm2787_vm1, %v15349_v56, -inf }
 0x878   : > { %11482 = vmatprep.mubr.f32.mxu0 %v4929_v55  ;;  %6570 = vadd.xlane.f32.xlu0 %v6569_v15  ;;  %v15343_v55 = vmul.f32 0.17677669, %v12410_v32  ;;  %v6566_v6 = vsel %vm2787_vm1, %v15334_v42, 0.0  ;;  %v7535_v33 = vmul.f32 %v7527_v9, %v15197_v28  ;;  %v8360_v32 = vsel %vm2787_vm1, %v15338_v0, -inf }
 0x879   : > { %11483 = vmatmul.mubr.f32.gmra.mrb[30].mxu0 %v4939_v12  ;;  %v12412_v1 = vadd.f32 %v15049_v50, %v7534_v36  ;;  %v16481_v50 = vld [vmem:[#allocation3_spill] sm:$0xff]  ;;  %v15363_v23 = vmul.f32 0.17677669, %v12409_v14  ;;  %v16484_v9 = vand.u32 4294901760, %v15184_v58  ;;  %v16487_v14 = vand.u32 4294901760, %v15264_v18 }
 0x87a   : > { %11489 = vmatprep.mubr.f32.mxu0 %v15181_v34  ;;  %v8366_v35 = vsel %vm2787_vm1, %v15343_v55, -inf }
 0x87b   : > { %6558 = vadd.xlane.f32.xlu1 %v6557_v37  ;;  %v15358_v36 = vmul.f32 0.17677669, %v12412_v1  ;;  %v8369_v3 = vsel %vm2787_vm1, %v15363_v23, -inf  ;;  %v16483_v37 = vand.u32 4294901760, %v15189_v26  ;;  %v16485_v1 = vand.u32 4294901760, %v15203_v20 }
 0x87c   : > { %6567 = vadd.xlane.f32.xlu0 %v6566_v6  ;;  %v16486_v6 = vand.u32 4294901760, %v15235_v47 }
 0x87d   : > { %11490 = vmatmul.mubr.f32.vlgmr.msra.gmra.mrb[24].mxu0 %v15174_v27  ;;  %v8372_v12 = vsel %vm2787_vm1, %v15358_v36, -inf }
 0x87e   : > { %12200 = vmatpush3.bf16.msra.mxu0 %v16480_v40  ;;  %11492 = vmatprep.mubr.f32.mxu0 %v15194_v11  ;;  %v12411_v40 = vadd.f32 %v15045_v41, %v7535_v33  ;;  %v16488_v33 = vand.u32 4294901760, %v15247_v10 }
 0x87f   : > { %12202 = vmatprep.subr.bf16.mxu0 %v16481_v50  ;;  %8361 = vmax.xlane.f32.xlu1 %v8360_v32 }
 0x880   : > { %8367 = vmax.xlane.f32.xlu0 %v8366_v35  ;;  %v15372_v15 = vmul.f32 0.17677669, %v12411_v40 }
 0x881   : > { %11493 = vmatmul.mubr.f32.gmra.mrb[26].mxu0 %v15226_v17 }
 0x882   : > { %11495 = vmatprep.mubr.f32.mxu0 %v15244_v21  ;;  %v8375_v41 = vsel %vm2787_vm1, %v15372_v15, -inf }
 0x883   : > { %8364 = vmax.xlane.f32.xlu1 %v8363_v39 }
 0x884   : > { %8373 = vmax.xlane.f32.xlu0 %v8372_v12 }
 0x885   : > { %11496 = vmatmul.mubr.f32.gmra.mrb[28].mxu0 %v15232_v62 }
 0x886   : > { %11498 = vmatprep.mubr.f32.mxu0 %v15297_v49 }
 0x887   : > { %8370 = vmax.xlane.f32.xlu1 %v8369_v3 }
 0x889   : > { %11499 = vmatmul.mubr.f32.gmra.mrb[30].mxu0 %v15271_v59 }
 0x88a   : > { %11505 = vmatprep.mubr.f32.mxu0 %v15189_v26  ;;  %v16490_v26 = vld [vmem:[#allocation9_spill] sm:$0xff] }
 0x88b   : > { %8376 = vmax.xlane.f32.xlu1 %v8375_v41 }
 0x88d   : > { %11506 = vmatmul.mubr.f32.vlgmr.msra.gmra.mrb[24].mxu0 %v15184_v58  ;;  %v16489_v58 = vand.u32 4294901760, %v15286_v46 }
 0x88e   : > { %12204 = vmatpush3.bf16.msra.mxu0 %v16481_v50  ;;  %11508 = vmatprep.mubr.f32.mxu0 %v15203_v20 }
 0x88f   : > { %12206 = vmatprep.subr.bf16.mxu0 %v16482_v8 }
 0x891   : > { %11509 = vmatmul.mubr.f32.gmra.mrb[26].mxu0 %v15235_v47 }
 0x892   : > { %11511 = vmatprep.mubr.f32.mxu0 %v15264_v18 }
 0x895   : > { %11512 = vmatmul.mubr.f32.gmra.mrb[28].mxu0 %v15247_v10 }
 0x896   : > { %11514 = vmatprep.mubr.f32.mxu0 %v15303_v38  ;;  %v16491_v38 = vld [vmem:[#allocation14_spill] sm:$0xff] }
 0x899   : > { %11515 = vmatmul.mubr.f32.gmra.mrb[30].mxu0 %v15286_v46 }
 0x89a   : > { %11521 = vmatprep.mubr.f32.mxu0 %v16483_v37 }
 0x89d   : > { %11522 = vmatmul.mubr.f32.vlgmr.msra.gmra.mrb[24].mxu0 %v16484_v9 }
 0x89e   : > { %12208 = vmatpush3.bf16.msra.mxu0 %v16482_v8  ;;  %11524 = vmatprep.mubr.f32.mxu0 %v16485_v1 }
 0x89f   : > { %12210 = vmatprep.subr.bf16.mxu0 %v16481_v50 }
 0x8a1   : > { %11525 = vmatmul.mubr.f32.gmra.mrb[26].mxu0 %v16486_v6 }
 0x8a2   : > { %11527 = vmatprep.mubr.f32.mxu0 %v16487_v14 }
 0x8a5   : > { %11528 = vmatmul.mubr.f32.gmra.mrb[28].mxu0 %v16488_v33 }
 0x8a6   : > { %11530 = vmatprep.mubr.f32.mxu0 %v4927_v31 }
 0x8a9   : > { %11531 = vmatmul.mubr.f32.gmra.mrb[30].mxu0 %v16489_v58 }
 0x8aa   : > { %11537 = vmatprep.mubr.f32.mxu0 %v15181_v34 }
 0x8ad   : > { %11538 = vmatmul.mubr.f32.vlgmr.msra.gmra.mrb[24].mxu0 %v15174_v27 }
 0x8ae   : > { %12212 = vmatpush3.bf16.msra.mxu0 %v16481_v50  ;;  %11540 = vmatprep.mubr.f32.mxu0 %v15194_v11 }
 0x8af   : > { %12238 = vmatprep.subr.bf16.mxu0 %v16490_v26 }
 0x8b1   : > { %11541 = vmatmul.mubr.f32.gmra.mrb[26].mxu0 %v15226_v17 }
 0x8b2   : > { %11543 = vmatprep.mubr.f32.mxu0 %v15244_v21 }
 0x8b5   : > { %11544 = vmatmul.mubr.f32.gmra.mrb[28].mxu0 %v15232_v62 }
 0x8b6   : > { %11546 = vmatprep.mubr.f32.mxu0 %v15297_v49 }
 0x8b9   : > { %11547 = vmatmul.mubr.f32.gmra.mrb[30].mxu0 %v15271_v59 }
 0x8ba   : > { %11553 = vmatprep.mubr.f32.mxu0 %v15181_v34 }
 0x8bd   : > { %11554 = vmatmul.mubr.f32.vlgmr.msra.gmra.mrb[24].mxu0 %v15174_v27 }
 0x8be   : > { %12240 = vmatpush3.bf16.msra.mxu0 %v16490_v26  ;;  %11556 = vmatprep.mubr.f32.mxu0 %v15194_v11 }
 0x8bf   : > { %12242 = vmatprep.subr.bf16.mxu0 %v16491_v38 }
 0x8c1   : > { %11557 = vmatmul.mubr.f32.gmra.mrb[26].mxu0 %v15226_v17 }
 0x8c2   : > { %11559 = vmatprep.mubr.f32.mxu0 %v15244_v21 }
 0x8c5   : > { %11560 = vmatmul.mubr.f32.gmra.mrb[28].mxu0 %v15232_v62 }
 0x8c6   : > { %11562 = vmatprep.mubr.f32.mxu0 %v15297_v49 }
 0x8c9   : > { %11563 = vmatmul.mubr.f32.gmra.mrb[30].mxu0 %v15271_v59 }
 0x8d3   : > { %v6550_v18 = vpop.xlane.xlu0 %6549 }
 0x8d4   : > { %13002 = vrcp.f32 %v6550_v18 }
 0x8de   : > { %v13003_v34 = vpop.eup %13002 }
 0x8df   : > { %v15429_v27 = vmul.f32 %v13003_v34, %v15154_v45 }
 0x8e1   : > { %v6629_v11 = vsel %vm2787_vm1, %v15429_v27, 0 }
 0x8e2   : > { %v15433_v20 = vand.u32 4294901760, %v6629_v11 }
 0x8e4   : > { %v15436_v17 = vsub.f32 %v6629_v11, %v15433_v20 }
 0x8e6   : > { %v6721_v62 = vand.u32 4294901760, %v15436_v17 }
 0x8e8   : > { %v6722_v47 = vsub.f32 %v15436_v17, %v6721_v62 }
 0x8ea   : > { %v6723_v21 = vand.u32 4294901760, %v6722_v47 }
 0x8ec   : > { %11665 = vmatprep.mubr.f32.mxu0 %v6723_v21 }
 0x8f5   : > { %v6556_v10 = vpop.xlane.xlu0 %6555 }
 0x8f6   : > { %13004 = vrcp.f32 %v6556_v10 }
 0x8fc   : > { %v8359_v45 = vpop.xlane.xlu1 %8358 }
 0x8fd   : > { %v8379_v49 = vsub.f32 %v15276_v43, %v8359_v45  ;;  %v6565_v59 = vpop.xlane.xlu0 %6564 }
 0x8fe   : > { %13006 = vrcp.f32 %v6565_v59 }
 0x8ff   : > { %v8388_v46 = vmul.f32 1.442695, %v8379_v49 }
 0x900   : > { %v13005_v31 = vpop.eup %13004  ;;  %v8356_v32 = vpop.xlane.xlu1 %8355 }
 0x901   : > { %13008 = vpow2.f32 %v8388_v46  ;;  %v8378_v50 = vsub.f32 %v15300_v24, %v8356_v32  ;;  %v6562_v35 = vpop.xlane.xlu0 %6561  ;;  %v15445_v40 = vmul.f32 %v13005_v31, %v15239_v2 }
 0x902   : > { %13010 = vrcp.f32 %v6562_v35 }
 0x903   : > { %v8386_v39 = vmul.f32 1.442695, %v8378_v50  ;;  %v6635_v43 = vsel %vm2787_vm1, %v15445_v40, 0 }
 0x904   : > { %v6553_v12 = vpop.xlane.xlu1 %6552  ;;  %v15451_v9 = vand.u32 4294901760, %v6635_v43 }
 0x905   : > { %13012 = vpow2.f32 %v8386_v39  ;;  %v6571_v3 = vpop.xlane.xlu0 %6570 }
 0x906   : > { %13014 = vrcp.f32 %v6553_v12  ;;  %v15463_v34 = vsub.f32 %v6635_v43, %v15451_v9 }
 0x907   : > { %13016 = vrcp.f32 %v6571_v3 }
 0x908   : > { %v13007_v41 = vpop.eup %13006  ;;  %v6559_v8 = vpop.xlane.xlu1 %6558  ;;  %v16357_v50 = vand.u32 4294901760, %v15463_v34 }
 0x909   : > { %13018 = vrcp.f32 %v6559_v8  ;;  %v6568_v24 = vpop.xlane.xlu0 %6567  ;;  %v15454_v2 = vmul.f32 %v13007_v41, %v15288_v51 }
 0x90a   : > { %13020 = vrcp.f32 %v6568_v24 }
 0x90b   : > { %v15449_v37 = vpop.eup %13008  ;;  %v6644_v21 = vsel %vm2787_vm1, %v15454_v2, 0 }
 0x90c   : > { %v8405_v1 = vsel %vm2787_vm1, %v15449_v37, 0.0  ;;  %v8362_v6 = vpop.xlane.xlu1 %8361  ;;  %v13011_v14 = vpop.eup %13010  ;;  %v15484_v39 = vand.u32 4294901760, %v6644_v21 }
 0x90d   : > { %8406 = vadd.xlane.f32.xlu1 %v8405_v1  ;;  %v8380_v33 = vsub.f32 %v15338_v0, %v8362_v6  ;;  %v15460_v58 = vmul.f32 %v13011_v14, %v15305_v60  ;;  %v8368_v18 = vpop.xlane.xlu0 %8367 }
 0x90e   : > { %v8382_v47 = vsub.f32 %v15343_v55, %v8368_v18 }
 0x90f   : > { %v15465_v11 = vpop.eup %13012  ;;  %v8390_v51 = vmul.f32 1.442695, %v8380_v33  ;;  %v6641_v60 = vsel %vm2787_vm1, %v15460_v58, 0 }
 0x910   : > { %v13015_v10 = vpop.eup %13014  ;;  %v8365_v45 = vpop.xlane.xlu1 %8364  ;;  %v8402_v0 = vsel %vm2787_vm1, %v15465_v11, 0.0  ;;  %v8394_v46 = vmul.f32 1.442695, %v8382_v47  ;;  %v15482_v35 = vand.u32 4294901760, %v6641_v60 }
 0x911   : > { %v13017_v49 = vpop.eup %13016  ;;  %v15475_v59 = vmul.f32 %v13015_v10, %v15311_v7  ;;  %13022 = vpow2.f32 %v8390_v51  ;;  %v8381_v31 = vsub.f32 %v15349_v56, %v8365_v45  ;;  %8403 = vadd.xlane.f32.xlu0 %v8402_v0  ;;  %v8374_v32 = vpop.xlane.xlu0 %8373 }
 0x912   : > { %v15479_v55 = vmul.f32 %v13017_v49, %v15316_v30  ;;  %13024 = vpow2.f32 %v8394_v46  ;;  %v8384_v43 = vsub.f32 %v15358_v36, %v8374_v32  ;;  %v15495_v8 = vsub.f32 %v6641_v60, %v15482_v35 }
 0x913   : > { %v13019_v12 = vpop.eup %13018  ;;  %v6632_v7 = vsel %vm2787_vm1, %v15475_v59, 0  ;;  %v8392_v3 = vmul.f32 1.442695, %v8381_v31 }
 0x914   : > { %v15489_v56 = vand.u32 4294901760, %v6632_v7  ;;  %v15492_v30 = vmul.f32 %v13019_v12, %v15328_v54  ;;  %v8371_v41 = vpop.xlane.xlu1 %8370  ;;  %v13021_v24 = vpop.eup %13020  ;;  %v8398_v1 = vmul.f32 1.442695, %v8384_v43  ;;  %v6650_v14 = vsel %vm2787_vm1, %v15479_v55, 0 }
 0x915   : > { %13026 = vpow2.f32 %v8392_v3  ;;  %v8383_v6 = vsub.f32 %v15363_v23, %v8371_v41  ;;  %v15504_v36 = vmul.f32 %v13021_v24, %v15334_v42  ;;  %v6742_v54 = vsub.f32 %v15463_v34, %v16357_v50  ;;  %v16493_v50 = vld [vmem:[#allocation24_spill] sm:$0xff] }
 0x916   : > { %v15501_v33 = vsub.f32 %v6632_v7, %v15489_v56  ;;  %v6638_v18 = vsel %vm2787_vm1, %v15492_v30, 0  ;;  %13028 = vpow2.f32 %v8398_v1  ;;  %v15514_v23 = vsub.f32 %v6644_v21, %v15484_v39 }
 0x917   : > { %v8396_v51 = vmul.f32 1.442695, %v8383_v6  ;;  %v15511_v47 = vand.u32 4294901760, %v6638_v18  ;;  %v16353_v42 = vand.u32 4294901760, %v15495_v8  ;;  %v6647_v0 = vsel %vm2787_vm1, %v15504_v36, 0 }
 0x918   : > { %v8377_v10 = vpop.xlane.xlu1 %8376  ;;  %v16358_v45 = vand.u32 4294901760, %v15501_v33  ;;  %v15520_v60 = vand.u32 4294901760, %v6650_v14  ;;  %v15526_v31 = vand.u32 4294901760, %v6647_v0  ;;  %v6743_v7 = vand.u32 4294901760, %v6742_v54 }
 0x919   : > { %13030 = vpow2.f32 %v8396_v51  ;;  %v8385_v49 = vsub.f32 %v15372_v15, %v8377_v10  ;;  %v15524_v46 = vsub.f32 %v6638_v18, %v15511_v47  ;;  %v16354_v24 = vand.u32 4294901760, %v15514_v23 }
 0x91a   : > { %v6732_v21 = vsub.f32 %v15501_v33, %v16358_v45  ;;  %v15535_v43 = vsub.f32 %v6647_v0, %v15526_v31  ;;  %v15541_v1 = vsub.f32 %v6650_v14, %v15520_v60  ;;  %v6762_v18 = vsub.f32 %v15495_v8, %v16353_v42  ;;  %v16492_v0 = vld [vmem:[#allocation11_spill] sm:$0xff] }
 0x91b   : > { %v15531_v32 = vpop.eup %13022  ;;  %v8400_v12 = vmul.f32 1.442695, %v8385_v49  ;;  %v16355_v3 = vand.u32 4294901760, %v15524_v46  ;;  %v2876_v42 = vmul.f32 %v14060_v57, %v14017_v44  ;;  %v2877_v57 = vmul.f32 %v14058_v19, %v14015_v52  ;;  %v16494_v19 = vld [vmem:[#allocation23_spill] sm:$0xff] }
 0x91c   : > { %v8408_v15 = vsel %vm2787_vm1, %v15531_v32, 0.0  ;;  %v6733_v41 = vand.u32 4294901760, %v6732_v21  ;;  %v15543_v6 = vpop.eup %13024  ;;  %v16356_v51 = vand.u32 4294901760, %v15535_v43  ;;  %v2878_v45 = vmul.f32 %v16493_v50, %v14017_v44 }
 0x91d   : > { %13032 = vpow2.f32 %v8400_v12  ;;  %8409 = vadd.xlane.f32.xlu0 %v8408_v15  ;;  %v6752_v54 = vsub.f32 %v15524_v46, %v16355_v3  ;;  %v8414_v21 = vsel %vm2787_vm1, %v15543_v6, 0.0  ;;  %v6772_v12 = vsub.f32 %v15514_v23, %v16354_v24 }
 0x91e   : > { %11666 = vmatmul.mubr.f32.vlgmr.msra.gmra.mrb[32].mxu0 %v6733_v41  ;;  %v6791_v15 = vand.u32 4294901760, %v15541_v1 }
 0x91f   : > { %v15552_v10 = vpop.eup %13026  ;;  %12244 = vmatpush3.bf16.msra.mxu0 %v16491_v38  ;;  %11668 = vmatprep.mubr.f32.mxu0 %v6743_v7  ;;  %v6753_v14 = vand.u32 4294901760, %v6752_v54  ;;  %v6763_v38 = vand.u32 4294901760, %v6762_v18  ;;  %v6782_v7 = vsub.f32 %v15535_v43, %v16356_v51  ;;  %v6773_v3 = vand.u32 4294901760, %v6772_v12 }
 0x920   : > { %12246 = vmatprep.subr.bf16.mxu0 %v16492_v0  ;;  %v8411_v49 = vsel %vm2787_vm1, %v15552_v10, 0.0  ;;  %v15564_v41 = vpop.eup %13028  ;;  %v6792_v18 = vsub.f32 %v15541_v1, %v6791_v15  ;;  %v2884_v51 = vsel %vm2787_vm1, %v2876_v42, 0.0  ;;  %v16496_v42 = vld [vmem:[#allocation25_spill] sm:$0xff] }
 0x921   : > { %8412 = vadd.xlane.f32.xlu1 %v8411_v49  ;;  %8415 = vadd.xlane.f32.xlu0 %v8414_v21  ;;  %v8420_v49 = vsel %vm2787_vm1, %v15564_v41, 0.0 }
 0x922   : > { %11669 = vmatmul.mubr.f32.gmra.mrb[34].mxu0 %v6753_v14  ;;  %v6783_v14 = vand.u32 4294901760, %v6782_v7  ;;  %v2879_v7 = vmul.f32 %v16494_v19, %v14015_v52  ;;  %v16498_v19 = vld [vmem:[#allocation27_spill] sm:$0xff] }
 0x923   : > { %v15569_v54 = vpop.eup %13030  ;;  %11671 = vmatprep.mubr.f32.mxu0 %v6763_v38  ;;  %v6793_v38 = vand.u32 4294901760, %v6792_v18 }
 0x924   : > { %v8417_v24 = vsel %vm2787_vm1, %v15569_v54, 0.0  ;;  %v2893_v50 = vsel %vm2787_vm1, %v2879_v7, 0.0  ;;  %v2883_v7 = vmul.f32 %v16498_v19, %v14015_v52 }
 0x925   : > { %8418 = vadd.xlane.f32.xlu1 %v8417_v24  ;;  %8421 = vadd.xlane.f32.xlu0 %v8420_v49  ;;  %v2887_v24 = vsel %vm2787_vm1, %v2877_v57, 0.0  ;;  %v16495_v49 = vld [vmem:[#allocation26_spill] sm:$0xff] }
 0x926   : > { %11672 = vmatmul.mubr.f32.gmra.mrb[36].mxu0 %v6773_v3  ;;  %v2890_v3 = vsel %vm2787_vm1, %v2878_v45, 0.0  ;;  %v2880_v18 = vmul.f32 %v16495_v49, %v14017_v44  ;;  %v4735_v49 = vmul.f32 %v15166_v63, %v14936_v13 }
 0x927   : > { %v15580_v21 = vpop.eup %13032  ;;  %11674 = vmatprep.mubr.f32.mxu0 %v6783_v14  ;;  %v16497_v14 = vld [vmem:[#allocation28_spill] sm:$0xff] }
 0x928   : > { %v8423_v12 = vsel %vm2787_vm1, %v15580_v21, 0.0  ;;  %v2896_v45 = vsel %vm2787_vm1, %v2880_v18, 0.0  ;;  %v2882_v57 = vmul.f32 %v16497_v14, %v14017_v44  ;;  %v4737_v18 = vmul.f32 %v15208_v48, %v14936_v13 }
 0x929   : > { %8424 = vadd.xlane.f32.xlu1 %v8423_v12  ;;  %2885 = vadd.xlane.f32.xlu0 %v2884_v51  ;;  %v2881_v51 = vmul.f32 %v16496_v42, %v14015_v52  ;;  %v16499_v52 = vld [vmem:[#allocation13_spill] sm:$0xff]  ;;  %v4739_v48 = vmul.f32 %v15215_v5, %v14936_v13  ;;  %v4741_v14 = vmul.f32 %v15256_v53, %v14936_v13  ;;  %v16500_v5 = vand.u32 4294901760, %v15501_v33 }
 0x92a   : > { %11675 = vmatmul.mubr.f32.gmra.mrb[38].mxu0 %v6793_v38  ;;  %v2902_v12 = vsel %vm2787_vm1, %v2882_v57, 0.0  ;;  %v4734_v38 = vmul.f32 %v15169_v29, %v14938_v61  ;;  %v2905_v29 = vsel %vm2787_vm1, %v2883_v7, 0.0  ;;  %v4751_v63 = vsel %vm2787_vm1, %v4737_v18, 0.0 }
 0x92b   : > { %11681 = vmatprep.mubr.f32.mxu0 %v15433_v20  ;;  %v4757_v42 = vsel %vm2787_vm1, %v4739_v48, 0.0  ;;  %v16501_v13 = vand.u32 4294901760, %v15463_v34  ;;  %v16502_v53 = vand.u32 4294901760, %v15524_v46  ;;  %v16504_v57 = vand.u32 4294901760, %v15514_v23 }
 0x92c   : > { %v4742_v44 = vsel %vm2787_vm1, %v4734_v38, 0.0 }
 0x92d   : > { %2891 = vadd.xlane.f32.xlu1 %v2890_v3  ;;  %2888 = vadd.xlane.f32.xlu0 %v2887_v24  ;;  %v4736_v3 = vmul.f32 %v15179_v4, %v14938_v61  ;;  %v4745_v4 = vsel %vm2787_vm1, %v4735_v49, 0.0 }
 0x92e   : > { %11682 = vmatmul.mubr.f32.vlgmr.msra.gmra.mrb[32].mxu0 %v15489_v56 }
 0x92f   : > { %12248 = vmatpush3.bf16.msra.mxu0 %v16492_v0  ;;  %11684 = vmatprep.mubr.f32.mxu0 %v15451_v9  ;;  %v2899_v0 = vsel %vm2787_vm1, %v2881_v51, 0.0  ;;  %v4748_v24 = vsel %vm2787_vm1, %v4736_v3, 0.0 }
 0x930   : > { %12250 = vmatprep.subr.bf16.mxu0 %v16490_v26 }
 0x931   : > { %2894 = vadd.xlane.f32.xlu1 %v2893_v50  ;;  %2897 = vadd.xlane.f32.xlu0 %v2896_v45  ;;  %v4738_v50 = vmul.f32 %v15221_v16, %v14938_v61  ;;  %v4740_v16 = vmul.f32 %v15274_v22, %v14938_v61  ;;  %v4763_v61 = vsel %vm2787_vm1, %v4741_v14, 0.0  ;;  %v16503_v22 = vand.u32 4294901760, %v15495_v8 }
 0x932   : > { %11685 = vmatmul.mubr.f32.gmra.mrb[34].mxu0 %v15511_v47 }
 0x933   : > { %11687 = vmatprep.mubr.f32.mxu0 %v15482_v35  ;;  %v4754_v45 = vsel %vm2787_vm1, %v4738_v50, 0.0  ;;  %v4760_v51 = vsel %vm2787_vm1, %v4740_v16, 0.0 }
 0x935   : > { %2900 = vadd.xlane.f32.xlu1 %v2899_v0  ;;  %2903 = vadd.xlane.f32.xlu0 %v2902_v12 }
 0x936   : > { %11688 = vmatmul.mubr.f32.gmra.mrb[36].mxu0 %v15484_v39 }
 0x937   : > { %11690 = vmatprep.mubr.f32.mxu0 %v15526_v31 }
 0x939   : > { %4743 = vadd.xlane.f32.xlu1 %v4742_v44  ;;  %4749 = vadd.xlane.f32.xlu0 %v4748_v24 }
 0x93a   : > { %11691 = vmatmul.mubr.f32.gmra.mrb[38].mxu0 %v15520_v60 }
 0x93b   : > { %11697 = vmatprep.mubr.f32.mxu0 %v15436_v17  ;;  %v16505_v17 = vand.u32 4294901760, %v15535_v43 }
 0x93d   : > { %2906 = vadd.xlane.f32.xlu1 %v2905_v29  ;;  %4746 = vadd.xlane.f32.xlu0 %v4745_v4 }
 0x93e   : > { %11698 = vmatmul.mubr.f32.vlgmr.msra.gmra.mrb[32].mxu0 %v15501_v33  ;;  %v16508_v33 = vld [vmem:[#allocation30_spill] sm:$0xff] }
 0x93f   : > { %12252 = vmatpush3.bf16.msra.mxu0 %v16490_v26  ;;  %11700 = vmatprep.mubr.f32.mxu0 %v15463_v34  ;;  %v13060_v34 = vld [vmem:[%s16243_s2] sm:$0xff] }
 0x940   : > { %12254 = vmatprep.subr.bf16.mxu0 %v16499_v52 }
 0x941   : > { %4752 = vadd.xlane.f32.xlu1 %v4751_v63  ;;  %4755 = vadd.xlane.f32.xlu0 %v4754_v45 }
 0x942   : > { %11701 = vmatmul.mubr.f32.gmra.mrb[34].mxu0 %v15524_v46 }
 0x943   : > { %11703 = vmatprep.mubr.f32.mxu0 %v15495_v8  ;;  %v16506_v8 = vld [vmem:[#allocation17_spill] sm:$0xff] }
 0x945   : > { %4758 = vadd.xlane.f32.xlu1 %v4757_v42  ;;  %4761 = vadd.xlane.f32.xlu0 %v4760_v51 }
 0x946   : > { %11704 = vmatmul.mubr.f32.gmra.mrb[36].mxu0 %v15514_v23  ;;  %v6589_v23 = vmul.f32 %v15475_v59, %v16508_v33  ;;  %v6591_v59 = vmul.f32 %v15492_v30, %v16508_v33 }
 0x947   : > { %11706 = vmatprep.mubr.f32.mxu0 %v15535_v43 }
 0x949   : > { %4764 = vadd.xlane.f32.xlu1 %v4763_v61 }
 0x94a   : > { %11707 = vmatmul.mubr.f32.gmra.mrb[38].mxu0 %v15541_v1 }
 0x94b   : > { %11713 = vmatprep.mubr.f32.mxu0 %v6721_v62  ;;  %v13059_v62 = vld [vmem:[%s16243_s2 + $0x8] sm:$0xff] }
 0x94e   : > { %11714 = vmatmul.mubr.f32.vlgmr.msra.gmra.mrb[32].mxu0 %v16500_v5 }
 0x94f   : > { %12256 = vmatpush3.bf16.msra.mxu0 %v16499_v52  ;;  %11716 = vmatprep.mubr.f32.mxu0 %v16501_v13 }
 0x950   : > { %12258 = vmatprep.subr.bf16.mxu0 %v16490_v26 }
 0x952   : > { %11717 = vmatmul.mubr.f32.gmra.mrb[34].mxu0 %v16502_v53 }
 0x953   : > { %11719 = vmatprep.mubr.f32.mxu0 %v16503_v22 }
 0x956   : > { %11720 = vmatmul.mubr.f32.gmra.mrb[36].mxu0 %v16504_v57  ;;  %v15762_v57 = vld [vmem:[%s16244_s3] sm:$0xff] }
 0x957   : > { %11722 = vmatprep.mubr.f32.mxu0 %v16505_v17  ;;  %v16510_v17 = vld [vmem:[#allocation2_spill] sm:$0xff] }
 0x95a   : > { %11723 = vmatmul.mubr.f32.gmra.mrb[38].mxu0 %v6791_v15  ;;  %9290 = vrot.lane.b32.xlu1 %v13059_v62, %s13081_s18  ;;  %v16511_v62 = vsub.s32 2, %v16510_v17 }
 0x95b   : > { %11729 = vmatprep.mubr.f32.mxu0 %v15433_v20  ;;  %9288 = vrot.lane.b32.xlu0 %v13060_v34, %s13081_s18 }
 0x95c   : > { %v15767_v34 = vrot.slane %v15762_v57, %v16511_v62 }
 0x95e   : > { %11730 = vmatmul.mubr.f32.vlgmr.msra.gmra.mrb[32].mxu0 %v15489_v56 }
 0x95f   : > { %12260 = vmatpush3.bf16.msra.mxu0 %v16490_v26  ;;  %11732 = vmatprep.mubr.f32.mxu0 %v15451_v9  ;;  %v16507_v26 = vld [vmem:[#allocation22_spill] sm:$0xff] }
 0x960   : > { %12286 = vmatprep.subr.bf16.mxu0 %v16506_v8 }
 0x962   : > { %11733 = vmatmul.mubr.f32.gmra.mrb[34].mxu0 %v15511_v47 }
 0x963   : > { %11735 = vmatprep.mubr.f32.mxu0 %v15482_v35 }
 0x966   : > { %11736 = vmatmul.mubr.f32.gmra.mrb[36].mxu0 %v15484_v39 }
 0x967   : > { %11738 = vmatprep.mubr.f32.mxu0 %v15526_v31 }
 0x96a   : > { %11739 = vmatmul.mubr.f32.gmra.mrb[38].mxu0 %v15520_v60 }
 0x96b   : > { %11745 = vmatprep.mubr.f32.mxu0 %v15433_v20  ;;  %v6599_v20 = vsel %vm2787_vm1, %v6589_v23, 0.0 }
 0x96e   : > { %11746 = vmatmul.mubr.f32.vlgmr.msra.gmra.mrb[32].mxu0 %v15489_v56  ;;  %v16509_v56 = vld [vmem:[#allocation29_spill] sm:$0xff] }
 0x96f   : > { %12288 = vmatpush3.bf16.msra.mxu0 %v16506_v8  ;;  %11748 = vmatprep.mubr.f32.mxu0 %v15451_v9  ;;  %v6588_v46 = vmul.f32 %v15429_v27, %v16509_v56  ;;  %v6590_v9 = vmul.f32 %v15445_v40, %v16509_v56  ;;  %v6605_v27 = vsel %vm2787_vm1, %v6591_v59, 0.0  ;;  %v6593_v40 = vmul.f32 %v15454_v2, %v16508_v33 }
 0x970   : > { %12290 = vmatprep.subr.bf16.mxu0 %v16507_v26 }
 0x971   : > { %v6611_v43 = vsel %vm2787_vm1, %v6593_v40, 0.0 }
 0x972   : > { %11749 = vmatmul.mubr.f32.gmra.mrb[34].mxu0 %v15511_v47  ;;  %v6602_v47 = vsel %vm2787_vm1, %v6590_v9, 0.0 }
 0x973   : > { %11751 = vmatprep.mubr.f32.mxu0 %v15482_v35  ;;  %v6596_v35 = vsel %vm2787_vm1, %v6588_v46, 0.0 }
 0x976   : > { %11752 = vmatmul.mubr.f32.gmra.mrb[36].mxu0 %v15484_v39  ;;  %v6592_v39 = vmul.f32 %v15460_v58, %v16509_v56  ;;  %v6595_v58 = vmul.f32 %v15479_v55, %v16508_v33 }
 0x977   : > { %11754 = vmatprep.mubr.f32.mxu0 %v15526_v31 }
 0x978   : > { %v6608_v31 = vsel %vm2787_vm1, %v6592_v39, 0.0  ;;  %v6617_v1 = vsel %vm2787_vm1, %v6595_v58, 0.0 }
 0x97a   : > { %11755 = vmatmul.mubr.f32.gmra.mrb[38].mxu0 %v15520_v60  ;;  %6600 = vadd.xlane.f32.xlu0 %v6599_v20  ;;  %v6594_v60 = vmul.f32 %v15504_v36, %v16509_v56 }
 0x97c   : > { %v6614_v30 = vsel %vm2787_vm1, %v6594_v60, 0.0 }
 0x97e   : > { %6597 = vadd.xlane.f32.xlu1 %v6596_v35  ;;  %6603 = vadd.xlane.f32.xlu0 %v6602_v47 }
 0x982   : > { %6606 = vadd.xlane.f32.xlu1 %v6605_v27  ;;  %6609 = vadd.xlane.f32.xlu0 %v6608_v31  ;;  %v16512_v31 = vld [vmem:[#allocation8_spill] sm:$0xff] }
 0x986   : > { %6612 = vadd.xlane.f32.xlu1 %v6611_v43  ;;  %6615 = vadd.xlane.f32.xlu0 %v6614_v30  ;;  %v16513_v30 = vld [vmem:[#allocation19_spill] sm:$0xff] }
 0x98a   : > { %6618 = vadd.xlane.f32.xlu1 %v6617_v1 }
 0x990   : > { %v15720_v15 = vpop.f32.mrb[24].mxu0 }
 0x991   : > { %v15722_v2 = vpop.f32.mrb[25].mxu0 }
 0x994   : > { %v15724_v0 = vpop.f32.mrb[26].mxu0 }
 0x995   : > { %v15726_v36 = vpop.f32.mrb[27].mxu0 }
 0x998   : > { %v15728_v12 = vpop.f32.mrb[28].mxu0 }
 0x999   : > { %v15730_v38 = vpop.f32.mrb[29].mxu0 }
 0x99a   : > { %v8407_v3 = vpop.xlane.xlu1 %8406 }
 0x99b   : > { %13034 = vrcp.f32 %v8407_v3 }
 0x99c   : > { %v15732_v55 = vpop.f32.mrb[30].mxu0 }
 0x99d   : > { %v15734_v44 = vpop.f32.mrb[31].mxu0 }
 0x99e   : > { %v8404_v24 = vpop.xlane.xlu0 %8403 }
 0x99f   : > { %13036 = vrcp.f32 %v8404_v24 }
 0x9a5   : > { %v13035_v19 = vpop.eup %13034 }
 0x9a6   : > { %v8435_v7 = vmul.f32 %v13035_v19, %v15449_v37 }
 0x9a8   : > { %v8443_v49 = vmul.f32 %v8435_v7, %v15197_v28  ;;  %v8486_v29 = vsel %vm2787_vm1, %v8435_v7, 0 }
 0x9a9   : > { %v15739_v4 = vand.u32 4294901760, %v8486_v29  ;;  %v13037_v18 = vpop.eup %13036 }
 0x9aa   : > { %v8453_v50 = vsel %vm2787_vm1, %v8443_v49, 0.0  ;;  %v8410_v52 = vpop.xlane.xlu0 %8409  ;;  %v8434_v45 = vmul.f32 %v13037_v18, %v15465_v11 }
 0x9ab   : > { %v15743_v63 = vsub.f32 %v8486_v29, %v15739_v4  ;;  %8454 = vadd.xlane.f32.xlu0 %v8453_v50  ;;  %13038 = vrcp.f32 %v8410_v52  ;;  %v16514_v52 = vld [vmem:[#allocation12_spill] sm:$0xff] }
 0x9ac   : > { %v8442_v48 = vmul.f32 %v8434_v45, %v15253_v25  ;;  %v8483_v37 = vsel %vm2787_vm1, %v8434_v45, 0 }
 0x9ad   : > { %v15748_v16 = vand.u32 4294901760, %v8483_v37  ;;  %v8585_v42 = vand.u32 4294901760, %v15743_v63 }
 0x9ae   : > { %v8413_v51 = vpop.xlane.xlu1 %8412  ;;  %v8416_v14 = vpop.xlane.xlu0 %8415  ;;  %v8450_v61 = vsel %vm2787_vm1, %v8442_v48, 0.0  ;;  %v16515_v48 = vld [vmem:[#allocation7_spill] sm:$0xff] }
 0x9af   : > { %13040 = vrcp.f32 %v8413_v51  ;;  %v15753_v5 = vsub.f32 %v8483_v37, %v15748_v16  ;;  %8451 = vadd.xlane.f32.xlu1 %v8450_v61  ;;  %v8586_v22 = vsub.f32 %v15743_v63, %v8585_v42 }
 0x9b0   : > { %13042 = vrcp.f32 %v8416_v14 }
 0x9b1   : > { %v8575_v11 = vand.u32 4294901760, %v15753_v5  ;;  %v8587_v9 = vand.u32 4294901760, %v8586_v22 }
 0x9b2   : > { %v8419_v13 = vpop.xlane.xlu1 %8418  ;;  %v8422_v53 = vpop.xlane.xlu0 %8421 }
 0x9b3   : > { %13044 = vrcp.f32 %v8419_v13  ;;  %v8576_v33 = vsub.f32 %v15753_v5, %v8575_v11 }
 0x9b4   : > { %13046 = vrcp.f32 %v8422_v53 }
 0x9b5   : > { %v13039_v23 = vpop.eup %13038  ;;  %v8577_v20 = vand.u32 4294901760, %v8576_v33 }
 0x9b6   : > { %v8425_v56 = vpop.xlane.xlu1 %8424  ;;  %v2886_v46 = vpop.xlane.xlu0 %2885  ;;  %v8436_v35 = vmul.f32 %v13039_v23, %v15531_v32 }
 0x9b7   : > { %13048 = vrcp.f32 %v8425_v56  ;;  %v2912_v47 = vmul.f32 %v15767_v34, %v2886_v46  ;;  %11857 = vmatprep.mubr.f32.mxu0 %v8577_v20  ;;  %v15815_v20 = vld [vmem:[%s16244_s3 + $0x10] sm:$0xff] }
 0x9b8   : > { %11858 = vmatmul.mubr.f32.vlgmr.msra.gmra.mrb[40].mxu0 %v8587_v9  ;;  %v8444_v59 = vmul.f32 %v8436_v35, %v15253_v25  ;;  %v8489_v39 = vsel %vm2787_vm1, %v8436_v35, 0 }
 0x9b9   : > { %v13041_v27 = vpop.eup %13040  ;;  %v12366_v40 = vadd.f32 %v16512_v31, %v2912_v47  ;;  %12292 = vmatpush3.bf16.msra.mxu0 %v16507_v26  ;;  %v15778_v60 = vand.u32 4294901760, %v8489_v39  ;;  %v15791_v26 = vld [vmem:[%s16244_s3 + $0x8] sm:$0xff] }
 0x9ba   : > { %v13043_v43 = vpop.eup %13042  ;;  %12294 = vmatprep.subr.bf16.mxu0 %v16513_v30  ;;  %v2892_v32 = vpop.xlane.xlu1 %2891  ;;  %v8456_v1 = vsel %vm2787_vm1, %v8444_v59, 0.0  ;;  %v8437_v3 = vmul.f32 %v13041_v27, %v15552_v10 }
 0x9bb   : > { %v2889_v58 = vpop.xlane.xlu0 %2888  ;;  %v2914_v24 = vmul.f32 %v15767_v34, %v2892_v32  ;;  %v15786_v7 = vsub.f32 %v8489_v39, %v15778_v60  ;;  %8457 = vadd.xlane.f32.xlu0 %v8456_v1  ;;  %v3704_v49 = vmul.f32 %v15791_v26, %v12366_v40  ;;  %v8438_v10 = vmul.f32 %v13043_v43, %v15543_v6  ;;  %v15809_v6 = vld [vmem:[%s16244_s3 + $0x18] sm:$0xff]  ;;  %v16516_v40 = vld [vmem:[#allocation10_spill] sm:$0xff]  ;;  %v16517_v32 = vld [vmem:[#allocation16_spill] sm:$0xff] }
 0x9bc   : > { %v2913_v19 = vmul.f32 %v15767_v34, %v2889_v58  ;;  %v8445_v29 = vmul.f32 %v8437_v3, %v15197_v28  ;;  %v8492_v18 = vsel %vm2787_vm1, %v8437_v3, 0 }
 0x9bd   : > { %v13045_v50 = vpop.eup %13044  ;;  %v12368_v45 = vadd.f32 %v16514_v52, %v2914_v24  ;;  %v15799_v51 = vand.u32 4294901760, %v8492_v18  ;;  %v8595_v14 = vand.u32 4294901760, %v15786_v7  ;;  %v8446_v22 = vmul.f32 %v8438_v10, %v15253_v25  ;;  %v15848_v52 = vld [vmem:[%s16244_s3 + $0x28] sm:$0xff] }
 0x9be   : > { %v12365_v37 = vadd.f32 %v16515_v48, %v2913_v19  ;;  %v2895_v61 = vpop.xlane.xlu1 %2894  ;;  %v8459_v53 = vsel %vm2787_vm1, %v8445_v29, 0.0  ;;  %v8495_v62 = vsel %vm2787_vm1, %v8438_v10, 0  ;;  %v8439_v33 = vmul.f32 %v13045_v50, %v15569_v54  ;;  %v13047_v54 = vpop.eup %13046  ;;  %v15842_v10 = vld [vmem:[%s16244_s3 + $0x20] sm:$0xff] }
 0x9bf   : > { %v2898_v13 = vpop.xlane.xlu0 %2897  ;;  %v3706_v23 = vmul.f32 %v15809_v6, %v12368_v45  ;;  %v2915_v46 = vmul.f32 %v15767_v34, %v2895_v61  ;;  %8460 = vadd.xlane.f32.xlu1 %v8459_v53  ;;  %v15821_v35 = vsub.f32 %v8492_v18, %v15799_v51  ;;  %v8462_v47 = vsel %vm2787_vm1, %v8446_v22, 0.0 }
 0x9c0   : > { %v3705_v56 = vmul.f32 %v15815_v20, %v12365_v37  ;;  %v2916_v9 = vmul.f32 %v15767_v34, %v2898_v13  ;;  %v15824_v59 = vand.u32 4294901760, %v8495_v62  ;;  %v8447_v39 = vmul.f32 %v8439_v33, %v15197_v28  ;;  %8463 = vadd.xlane.f32.xlu0 %v8462_v47 }
 0x9c1   : > { %v13049_v27 = vpop.eup %13048  ;;  %v3712_v31 = vadd.f32 %v3706_v23, %v3704_v49  ;;  %v12367_v43 = vadd.f32 %v16516_v40, %v2915_v46  ;;  %v8498_v1 = vsel %vm2787_vm1, %v8439_v33, 0  ;;  %v8596_v49 = vsub.f32 %v15786_v7, %v8595_v14  ;;  %v16518_v23 = vld [vmem:[#allocation15_spill] sm:$0xff] }
 0x9c2   : > { %v12370_v58 = vadd.f32 %v16517_v32, %v2916_v9  ;;  %v15831_v3 = vsub.f32 %v8495_v62, %v15824_v59  ;;  %v2901_v24 = vpop.xlane.xlu1 %2900  ;;  %v8465_v29 = vsel %vm2787_vm1, %v8447_v39, 0.0  ;;  %v15834_v18 = vand.u32 4294901760, %v8498_v1  ;;  %v16519_v9 = vld [vmem:[#allocation20_spill] sm:$0xff] }
 0x9c3   : > { %v2904_v19 = vpop.xlane.xlu0 %2903  ;;  %v3707_v50 = vmul.f32 %v15842_v10, %v12367_v43  ;;  %v2917_v48 = vmul.f32 %v15767_v34, %v2901_v24  ;;  %8466 = vadd.xlane.f32.xlu1 %v8465_v29  ;;  %v8597_v13 = vand.u32 4294901760, %v8596_v49  ;;  %v8440_v53 = vmul.f32 %v13047_v54, %v15564_v41  ;;  %v15867_v41 = vld [vmem:[%s16244_s3 + $0x30] sm:$0xff] }
 0x9c4   : > { %v3708_v45 = vmul.f32 %v15848_v52, %v12370_v58  ;;  %v2918_v37 = vmul.f32 %v15767_v34, %v2904_v19  ;;  %v15854_v61 = vsub.f32 %v8498_v1, %v15834_v18  ;;  %v8441_v22 = vmul.f32 %v13049_v27, %v15580_v21 }
 0x9c5   : > { %v3713_v62 = vadd.f32 %v3707_v50, %v3705_v56  ;;  %v12369_v46 = vadd.f32 %v16518_v23, %v2917_v48  ;;  %11860 = vmatprep.mubr.f32.mxu0 %v8597_v13  ;;  %v8448_v39 = vmul.f32 %v8440_v53, %v15253_v25  ;;  %v8501_v40 = vsel %vm2787_vm1, %v8440_v53, 0  ;;  %v15873_v56 = vld [vmem:[%s16244_s3 + $0x38] sm:$0xff] }
 0x9c6   : > { %v3714_v33 = vadd.f32 %v3712_v31, %v3708_v45  ;;  %v12372_v47 = vadd.f32 %v16519_v9, %v2918_v37  ;;  %v4744_v43 = vpop.xlane.xlu1 %4743  ;;  %v8449_v58 = vmul.f32 %v8441_v22, %v15197_v28  ;;  %v8504_v1 = vsel %vm2787_vm1, %v8441_v22, 0 }
 0x9c7   : > { %v4750_v32 = vpop.xlane.xlu0 %4749  ;;  %v3709_v21 = vmul.f32 %v15867_v41, %v12369_v46  ;;  %v15876_v54 = vand.u32 4294901760, %v8501_v40  ;;  %v4766_v28 = vmul.f32 %v4744_v43, %v15767_v34  ;;  %v8468_v27 = vsel %vm2787_vm1, %v8448_v39, 0.0 }
 0x9c8   : > { %v3710_v25 = vmul.f32 %v15873_v56, %v12372_v47  ;;  %v4768_v31 = vmul.f32 %v4750_v32, %v15767_v34  ;;  %v8471_v24 = vsel %vm2787_vm1, %v8449_v58, 0.0  ;;  %v15882_v19 = vand.u32 4294901760, %v8504_v1  ;;  %8469 = vadd.xlane.f32.xlu0 %v8468_v27 }
 0x9c9   : > { %v3715_v29 = vadd.f32 %v3713_v62, %v3709_v21  ;;  %v15885_v50 = vsub.f32 %v8501_v40, %v15876_v54  ;;  %v12382_v45 = vadd.f32 %v15722_v2, %v4766_v28  ;;  %8472 = vadd.xlane.f32.xlu1 %v8471_v24  ;;  %v8605_v13 = vand.u32 4294901760, %v15821_v35  ;;  %v16520_v40 = vld [vmem:[#allocation18_spill] sm:$0xff] }
 0x9ca   : > { %v3716_v49 = vadd.f32 %v3714_v33, %v3710_v25  ;;  %v12384_v48 = vadd.f32 %v15726_v36, %v4768_v31  ;;  %v15890_v37 = vsub.f32 %v8504_v1, %v15882_v19  ;;  %v8615_v53 = vand.u32 4294901760, %v15831_v3  ;;  %v2907_v22 = vpop.xlane.xlu1 %2906 }
 0x9cb   : > { %v4747_v23 = vpop.xlane.xlu0 %4746  ;;  %v5558_v33 = vmul.f32 %v15791_v26, %v12382_v45  ;;  %v2919_v46 = vmul.f32 %v15767_v34, %v2907_v22  ;;  %v8606_v47 = vsub.f32 %v15821_v35, %v8605_v13  ;;  %v8625_v58 = vand.u32 4294901760, %v15854_v61 }
 0x9cc   : > { %v9301_v62 = vsel %vm264_vm0, %v3716_v49, 0  ;;  %v4767_v2 = vmul.f32 %v4747_v23, %v15767_v34  ;;  %v5560_v36 = vmul.f32 %v15809_v6, %v12384_v48  ;;  %v8616_v39 = vsub.f32 %v15831_v3, %v8615_v53  ;;  %v15915_v49 = vld [vmem:[%s16244_s3 + $0x40] sm:$0xff] }
 0x9cd   : > { %v15898_v9 = vand.u32 4294901760, %v9301_v62  ;;  %v12371_v43 = vadd.f32 %v16520_v40, %v2919_v46  ;;  %v8635_v1 = vand.u32 4294901760, %v15885_v50  ;;  %v8607_v25 = vand.u32 4294901760, %v8606_v47 }
 0x9ce   : > { %v12381_v32 = vadd.f32 %v15720_v15, %v4767_v2  ;;  %v5566_v21 = vadd.f32 %v5560_v36, %v5558_v33  ;;  %v8617_v28 = vand.u32 4294901760, %v8616_v39  ;;  %v4753_v27 = vpop.xlane.xlu1 %4752  ;;  %v16359_v24 = vand.u32 4294901760, %v15890_v37 }
 0x9cf   : > { %v4756_v31 = vpop.xlane.xlu0 %4755  ;;  %v3711_v45 = vmul.f32 %v15915_v49, %v12371_v43  ;;  %v8626_v15 = vsub.f32 %v15854_v61, %v8625_v58  ;;  %v8636_v48 = vsub.f32 %v15885_v50, %v8635_v1  ;;  %11861 = vmatmul.mubr.f32.gmra.mrb[42].mxu0 %v8607_v25  ;;  %v4769_v22 = vmul.f32 %v4753_v27, %v15767_v34 }
 0x9d0   : > { %v4770_v23 = vmul.f32 %v4756_v31, %v15767_v34  ;;  %v8646_v33 = vsub.f32 %v15890_v37, %v16359_v24  ;;  %v15930_v46 = vsub.f32 %v9301_v62, %v15898_v9  ;;  %11863 = vmatprep.mubr.f32.mxu0 %v8617_v28  ;;  %v5559_v31 = vmul.f32 %v15815_v20, %v12381_v32 }
 0x9d1   : > { %v15932_v2 = vadd.f32 %v3715_v29, %v3711_v45  ;;  %v8627_v36 = vand.u32 4294901760, %v8626_v15  ;;  %v8637_v47 = vand.u32 4294901760, %v8636_v48  ;;  %v12383_v39 = vadd.f32 %v15724_v0, %v4769_v22 }
 0x9d2   : > { %v12386_v40 = vadd.f32 %v15730_v38, %v4770_v23  ;;  %v4759_v43 = vpop.xlane.xlu1 %4758  ;;  %v9395_v27 = vand.u32 4294901760, %v15930_v46  ;;  %v8647_v45 = vand.u32 4294901760, %v8646_v33 }
 0x9d3   : > { %v4762_v25 = vpop.xlane.xlu0 %4761  ;;  %v4771_v24 = vmul.f32 %v4759_v43, %v15767_v34  ;;  %11864 = vmatmul.mubr.f32.gmra.mrb[44].mxu0 %v8627_v36  ;;  %v5561_v29 = vmul.f32 %v15842_v10, %v12383_v39 }
 0x9d4   : > { %v4772_v62 = vmul.f32 %v4762_v25, %v15767_v34  ;;  %v5562_v28 = vmul.f32 %v15848_v52, %v12386_v40  ;;  %v9396_v0 = vsub.f32 %v15930_v46, %v9395_v27  ;;  %11866 = vmatprep.mubr.f32.mxu0 %v8637_v47 }
 0x9d5   : > { %v12385_v38 = vadd.f32 %v15728_v12, %v4771_v24  ;;  %v5567_v32 = vadd.f32 %v5561_v29, %v5559_v31  ;;  %v13070_v31 = vld [vmem:[%s16243_s2 + $0x10] sm:$0xff] }
 0x9d6   : > { %v12388_v15 = vadd.f32 %v15734_v44, %v4772_v62  ;;  %v5568_v48 = vadd.f32 %v5566_v21, %v5562_v28  ;;  %v4765_v22 = vpop.xlane.xlu1 %4764  ;;  %v9397_v23 = vand.u32 4294901760, %v9396_v0 }
 0x9d7   : > { %v9289_v43 = vpop.permute.xlu0 %9288  ;;  %v5563_v36 = vmul.f32 %v15867_v41, %v12385_v38  ;;  %v4773_v33 = vmul.f32 %v4765_v22, %v15767_v34  ;;  %11867 = vmatmul.mubr.f32.gmra.mrb[46].mxu0 %v8647_v45  ;;  %v13071_v45 = vld [vmem:[%s16243_s2 + $0x18] sm:$0xff] }
 0x9d8   : > { %v5564_v39 = vmul.f32 %v15873_v56, %v12388_v15  ;;  %v9325_v40 = vand.u32 4294901760, %v9289_v43  ;;  %11957 = vmatprep.mubr.f32.mxu1 %v9397_v23  ;;  %11873 = vmatprep.mubr.f32.mxu0 %v15748_v16  ;;  %v16521_v23 = vld [vmem:[#allocation21_spill] sm:$0xff] }
 0x9d9   : > { %v5569_v47 = vadd.f32 %v5567_v32, %v5563_v36  ;;  %v12387_v44 = vadd.f32 %v15732_v55, %v4773_v33 }
 0x9da   : > { %v15951_v12 = vadd.f32 %v5568_v48, %v5564_v39  ;;  %v15954_v21 = vsub.f32 %v9289_v43, %v9325_v40  ;;  %v9291_v24 = vpop.permute.xlu1 %9290  ;;  %9292 = vrot.lane.b32.xlu1 %v13070_v31, %s13081_s18 }
 0x9db   : > { %v5565_v25 = vmul.f32 %v15915_v49, %v12387_v44  ;;  %v9328_v62 = vand.u32 4294901760, %v9291_v24  ;;  %11874 = vmatmul.mubr.f32.vlgmr.msra.gmra.mrb[40].mxu0 %v15739_v4 }
 0x9dc   : > { %12296 = vmatpush3.bf16.msra.mxu0 %v16513_v30  ;;  %11876 = vmatprep.mubr.f32.mxu0 %v15778_v60  ;;  %v9476_v30 = vand.u32 4294901760, %v15954_v21 }
 0x9dd   : > { %v15964_v29 = vadd.f32 %v5569_v47, %v5565_v25  ;;  %v15966_v55 = vpack.c.bf16 %v9328_v62, %v9325_v40  ;;  %12298 = vmatprep.subr.bf16.mxu0 %v16506_v8  ;;  %v15969_v28 = vsub.f32 %v9291_v24, %v9328_v62 }
 0x9de   : > { %9294 = vrot.lane.b32.xlu0 %v13071_v45, %s13081_s18  ;;  %v9477_v38 = vsub.f32 %v15954_v21, %v9476_v30  ;;  %s10196_s18 = sshll.u32 %s16524_s16, 6 }
 0x9df   : > { %12310 = vmatprep.subr.bf16.mxu1 %v15966_v55  ;;  %11877 = vmatmul.mubr.f32.gmra.mrb[42].mxu0 %v15799_v51  ;;  %v9483_v0 = vand.u32 4294901760, %v15969_v28  ;;  %v15994_v22 = vpack.c.bf16 %v15969_v28, %v15954_v21  ;;  %s217_s9 = scalar_lea.vmem %s16245_s4, %s10196_s18 }
 0x9e0   : > { %12312 = vmatpush3.bf16.msra.mxu1 %v15966_v55  ;;  %11879 = vmatprep.mubr.f32.mxu0 %v15824_v59  ;;  %v9478_v32 = vand.u32 4294901760, %v9477_v38 }
 0x9e1   : > { %v9484_v15 = vsub.f32 %v15969_v28, %v9483_v0 }
 0x9e3   : > { %11880 = vmatmul.mubr.f32.gmra.mrb[44].mxu0 %v15834_v18  ;;  %v9485_v48 = vand.u32 4294901760, %v9484_v15 }
 0x9e4   : > { %11882 = vmatprep.mubr.f32.mxu0 %v15876_v54 }
 0x9e5   : > { %v15999_v43 = vpack.c.bf16 %v9485_v48, %v9478_v32 }
 0x9e7   : > { %11883 = vmatmul.mubr.f32.gmra.mrb[46].mxu0 %v15882_v19 }
 0x9e8   : > { %11889 = vmatprep.mubr.f32.mxu0 %v15753_v5 }
 0x9eb   : > { %11890 = vmatmul.mubr.f32.vlgmr.msra.gmra.mrb[40].mxu0 %v15743_v63  ;;  %v16522_v63 = vand.u32 4294901760, %v15890_v37 }
 0x9ec   : > { %12300 = vmatpush3.bf16.msra.mxu0 %v16506_v8  ;;  %11892 = vmatprep.mubr.f32.mxu0 %v15786_v7 }
 0x9ed   : > { %12302 = vmatprep.subr.bf16.mxu0 %v16521_v23 }
 0x9ef   : > { %11893 = vmatmul.mubr.f32.gmra.mrb[42].mxu0 %v15821_v35 }
 0x9f0   : > { %11895 = vmatprep.mubr.f32.mxu0 %v15831_v3 }
 0x9f3   : > { %11896 = vmatmul.mubr.f32.gmra.mrb[44].mxu0 %v15854_v61 }
 0x9f4   : > { %11898 = vmatprep.mubr.f32.mxu0 %v15885_v50 }
 0x9f7   : > { %11899 = vmatmul.mubr.f32.gmra.mrb[46].mxu0 %v15890_v37 }
 0x9f8   : > { %11905 = vmatprep.mubr.f32.mxu0 %v8575_v11 }
 0x9fb   : > { %11906 = vmatmul.mubr.f32.vlgmr.msra.gmra.mrb[40].mxu0 %v8585_v42 }
 0x9fc   : > { %12304 = vmatpush3.bf16.msra.mxu0 %v16521_v23  ;;  %11908 = vmatprep.mubr.f32.mxu0 %v8595_v14 }
 0x9fd   : > { %12306 = vmatprep.subr.bf16.mxu0 %v16506_v8 }
 0x9ff   : > { %11909 = vmatmul.mubr.f32.gmra.mrb[42].mxu0 %v8605_v13 }
 0xa00   : > { %11911 = vmatprep.mubr.f32.mxu0 %v8615_v53 }
 0xa03   : > { %11912 = vmatmul.mubr.f32.gmra.mrb[44].mxu0 %v8625_v58 }
 0xa04   : > { %11914 = vmatprep.mubr.f32.mxu0 %v8635_v1 }
 0xa07   : > { %11915 = vmatmul.mubr.f32.gmra.mrb[46].mxu0 %v16522_v63 }
 0xa08   : > { %11921 = vmatprep.mubr.f32.mxu0 %v15748_v16 }
 0xa0b   : > { %11922 = vmatmul.mubr.f32.vlgmr.msra.gmra.mrb[40].mxu0 %v15739_v4  ;;  %v6598_v42 = vpop.xlane.xlu1 %6597 }
 0xa0c   : > { %12308 = vmatpush3.bf16.msra.mxu0 %v16506_v8  ;;  %11924 = vmatprep.mubr.f32.mxu0 %v15778_v60  ;;  %v6601_v8 = vpop.xlane.xlu0 %6600 }
 0xa0f   : > { %11925 = vmatmul.mubr.f32.gmra.mrb[42].mxu0 %v15799_v51  ;;  %v6607_v11 = vpop.xlane.xlu1 %6606 }
 0xa10   : > { %11927 = vmatprep.mubr.f32.mxu0 %v15824_v59  ;;  %v6604_v5 = vpop.xlane.xlu0 %6603 }
 0xa11   : > { %v6622_v61 = vmul.f32 %v6604_v5, %v15767_v34 }
 0xa13   : > { %11928 = vmatmul.mubr.f32.gmra.mrb[44].mxu0 %v15834_v18 }
 0xa14   : > { %11930 = vmatprep.mubr.f32.mxu0 %v15876_v54  ;;  %v6610_v7 = vpop.xlane.xlu0 %6609 }
 0xa15   : > { %v6624_v33 = vmul.f32 %v6610_v7, %v15767_v34 }
 0xa17   : > { %11931 = vmatmul.mubr.f32.gmra.mrb[46].mxu0 %v15882_v19 }
 0xa18   : > { %11937 = vmatprep.mubr.f32.mxu0 %v15748_v16  ;;  %v6613_v16 = vpop.xlane.xlu1 %6612 }
 0xa19   : > { %v6625_v58 = vmul.f32 %v6613_v16, %v15767_v34 }
 0xa1b   : > { %11938 = vmatmul.mubr.f32.vlgmr.msra.gmra.mrb[40].mxu0 %v15739_v4  ;;  %v6621_v4 = vmul.f32 %v6601_v8, %v15767_v34 }
 0xa1c   : > { %11940 = vmatprep.mubr.f32.mxu0 %v15778_v60  ;;  %v6616_v60 = vpop.xlane.xlu0 %6615  ;;  %v6619_v3 = vpop.xlane.xlu1 %6618 }
 0xa1d   : > { %v6627_v15 = vmul.f32 %v6619_v3, %v15767_v34  ;;  %v6626_v23 = vmul.f32 %v6616_v60, %v15767_v34 }
 0xa1f   : > { %11941 = vmatmul.mubr.f32.gmra.mrb[42].mxu0 %v15799_v51  ;;  %v6620_v51 = vmul.f32 %v6598_v42, %v15767_v34  ;;  %v9304_v42 = vsel %vm264_vm0, %v15932_v2, 0 }
 0xa20   : > { %11943 = vmatprep.mubr.f32.mxu0 %v15824_v59  ;;  %v6623_v59 = vmul.f32 %v6607_v11, %v15767_v34 }
 0xa23   : > { %11944 = vmatmul.mubr.f32.gmra.mrb[44].mxu0 %v15834_v18 }
 0xa24   : > { %11946 = vmatprep.mubr.f32.mxu0 %v15876_v54 }
 0xa27   : > { %11947 = vmatmul.mubr.f32.gmra.mrb[46].mxu0 %v15882_v19 }
 0xa38   : > { %v16045_v50 = vpop.xlane.xlu0 %8454 }
 0xa3c   : > { %v16048_v1 = vpop.xlane.xlu1 %8451 }
 0xa41   : > { %v11747_v14 = vpop.f32.mrb[32].mxu0 }
 0xa42   : > { %v7366_v35 = vpop.f32.mrb[33].mxu0  ;;  %v12397_v18 = vadd.f32 %v11747_v14, %v6621_v4  ;;  %v9307_v4 = vsel %vm264_vm0, %v15951_v12, 0 }
 0xa43   : > { %v12398_v54 = vadd.f32 %v7366_v35, %v6620_v51  ;;  %v16075_v2 = vand.u32 4294901760, %v9307_v4 }
 0xa44   : > { %v7413_v36 = vmul.f32 %v15815_v20, %v12397_v18 }
 0xa45   : > { %v11750_v19 = vpop.f32.mrb[34].mxu0  ;;  %v7412_v40 = vmul.f32 %v15791_v26, %v12398_v54 }
 0xa46   : > { %v12399_v37 = vadd.f32 %v11750_v19, %v6623_v59  ;;  %v7378_v13 = vpop.f32.mrb[35].mxu0  ;;  %v16070_v59 = vand.u32 4294901760, %v9304_v42 }
 0xa47   : > { %v12400_v53 = vadd.f32 %v7378_v13, %v6622_v61  ;;  %v9310_v61 = vsel %vm264_vm0, %v15964_v29, 0 }
 0xa48   : > { %v7415_v39 = vmul.f32 %v15842_v10, %v12399_v37  ;;  %v16055_v31 = vpop.xlane.xlu0 %8457  ;;  %v16080_v19 = vsub.f32 %v9304_v42, %v16070_v59  ;;  %v16083_v37 = vand.u32 4294901760, %v9310_v61 }
 0xa49   : > { %v7414_v47 = vmul.f32 %v15809_v6, %v12400_v53  ;;  %v11753_v44 = vpop.f32.mrb[36].mxu0 }
 0xa4a   : > { %v7421_v24 = vadd.f32 %v7415_v39, %v7413_v36  ;;  %v12401_v25 = vadd.f32 %v11753_v44, %v6625_v58  ;;  %v7390_v62 = vpop.f32.mrb[37].mxu0  ;;  %v16093_v39 = vsub.f32 %v9307_v4, %v16075_v2  ;;  %v9405_v29 = vand.u32 4294901760, %v16080_v19 }
 0xa4b   : > { %v7420_v45 = vadd.f32 %v7414_v47, %v7412_v40  ;;  %v12402_v38 = vadd.f32 %v7390_v62, %v6624_v33  ;;  %v16099_v47 = vsub.f32 %v9310_v61, %v16083_v37 }
 0xa4c   : > { %v7417_v32 = vmul.f32 %v15867_v41, %v12401_v25  ;;  %v16059_v48 = vpop.xlane.xlu1 %8460  ;;  %v9415_v62 = vand.u32 4294901760, %v16093_v39 }
 0xa4d   : > { %v7416_v63 = vmul.f32 %v15848_v52, %v12402_v38  ;;  %v11756_v8 = vpop.f32.mrb[38].mxu0  ;;  %v16068_v51 = vpop.xlane.xlu0 %8463 }
 0xa4e   : > { %v7423_v5 = vadd.f32 %v7421_v24, %v7417_v32  ;;  %v12403_v11 = vadd.f32 %v11756_v8, %v6627_v15  ;;  %v7402_v7 = vpop.f32.mrb[39].mxu0  ;;  %v9406_v15 = vsub.f32 %v16080_v19, %v9405_v29  ;;  %v9425_v8 = vand.u32 4294901760, %v16099_v47 }
 0xa4f   : > { %v7422_v16 = vadd.f32 %v7420_v45, %v7416_v63  ;;  %v12404_v14 = vadd.f32 %v7402_v7, %v6626_v23 }
 0xa50   : > { %v7419_v35 = vmul.f32 %v15915_v49, %v12403_v11  ;;  %v16073_v3 = vpop.xlane.xlu1 %8466  ;;  %v9407_v4 = vand.u32 4294901760, %v9406_v15 }
 0xa51   : > { %v7418_v60 = vmul.f32 %v15873_v56, %v12404_v14 }
 0xa52   : > { %v7425_v18 = vadd.f32 %v7423_v5, %v7419_v35  ;;  %v9416_v5 = vsub.f32 %v16093_v39, %v9415_v62  ;;  %v9426_v35 = vsub.f32 %v16099_v47, %v9425_v8 }
 0xa53   : > { %v7424_v54 = vadd.f32 %v7422_v16, %v7418_v60 }
 0xa54   : > { %v9316_v53 = vsel %vm264_vm0, %v7425_v18, 0  ;;  %v9417_v61 = vand.u32 4294901760, %v9416_v5 }
 0xa55   : > { %v9313_v12 = vsel %vm264_vm0, %v7424_v54, 0  ;;  %v16085_v13 = vpop.xlane.xlu0 %8469  ;;  %v16096_v33 = vand.u32 4294901760, %v9316_v53 }
 0xa56   : > { %v16088_v58 = vand.u32 4294901760, %v9313_v12  ;;  %v16090_v36 = vpop.xlane.xlu1 %8472 }
 0xa57   : > { %v16109_v32 = vsub.f32 %v9316_v53, %v16096_v33  ;;  %v9427_v53 = vand.u32 4294901760, %v9426_v35 }
 0xa58   : > { %v16102_v44 = vsub.f32 %v9313_v12, %v16088_v58 }
 0xa59   : > { %v9295_v40 = vpop.permute.xlu0 %9294  ;;  %v9445_v60 = vand.u32 4294901760, %v16109_v32 }
 0xa5a   : > { %v9293_v24 = vpop.permute.xlu1 %9292  ;;  %v9334_v25 = vand.u32 4294901760, %v9295_v40  ;;  %v9435_v11 = vand.u32 4294901760, %v16102_v44 }
 0xa5b   : > { %v9331_v45 = vand.u32 4294901760, %v9293_v24 }
 0xa5c   : > { %v9496_v38 = vsub.f32 %v9295_v40, %v9334_v25  ;;  %v9436_v54 = vsub.f32 %v16102_v44, %v9435_v11  ;;  %v9446_v40 = vsub.f32 %v16109_v32, %v9445_v60 }
 0xa5d   : > { %v9489_v23 = vsub.f32 %v9293_v24, %v9331_v45  ;;  %v16111_v63 = vpack.c.bf16 %v9334_v25, %v9331_v45 }
 0xa5e   : > { %v9497_v42 = vand.u32 4294901760, %v9496_v38  ;;  %v9437_v25 = vand.u32 4294901760, %v9436_v54  ;;  %v9447_v45 = vand.u32 4294901760, %v9446_v40  ;;  %v8476_v54 = vmul.f32 %v16055_v31, %v15767_v34 }
 0xa5f   : > { %v9490_v7 = vand.u32 4294901760, %v9489_v23  ;;  %12314 = vmatprep.subr.bf16.mxu1 %v16111_v63  ;;  %v12329_v15 = vpack.c.bf16 %v9496_v38, %v9489_v23 }
 0xa60   : > { %v9498_v16 = vsub.f32 %v9496_v38, %v9497_v42  ;;  %12316 = vmatpush3.bf16.msra.mxu1 %v16111_v63 }
 0xa61   : > { %v9491_v14 = vsub.f32 %v9489_v23, %v9490_v7  ;;  %12318 = vmatprep.subr.bf16.mxu1 %v15999_v43  ;;  %v16133_v5 = vpack.c.bf16 %v9497_v42, %v9490_v7 }
 0xa62   : > { %v9499_v18 = vand.u32 4294901760, %v9498_v16  ;;  %v8474_v16 = vmul.f32 %v16048_v1, %v15767_v34 }
 0xa63   : > { %v9492_v12 = vand.u32 4294901760, %v9491_v14  ;;  %11958 = vmatmul.mubr.f32.vlgmr.msra.gmra.mrb[40].mxu1 %v9407_v4 }
 0xa64   : > { %11960 = vmatprep.mubr.f32.mxu1 %v9417_v61  ;;  %12320 = vmatpush3.bf16.msra.mxu1 %v15999_v43  ;;  %v8475_v43 = vmul.f32 %v16045_v50, %v15767_v34  ;;  %v8477_v61 = vmul.f32 %v16059_v48, %v15767_v34  ;;  %v8479_v50 = vmul.f32 %v16073_v3, %v15767_v34 }
 0xa65   : > { %v12321_v24 = vpack.c.bf16 %v9499_v18, %v9492_v12  ;;  %v8481_v3 = vmul.f32 %v16090_v36, %v15767_v34 }
 0xa67   : > { %11961 = vmatmul.mubr.f32.gmra.mrb[42].mxu1 %v9427_v53  ;;  %12322 = vmatprep.subr.bf16.mxu1 %v12321_v24  ;;  %v8478_v53 = vmul.f32 %v16068_v51, %v15767_v34 }
 0xa68   : > { %11963 = vmatprep.mubr.f32.mxu1 %v9437_v25  ;;  %12324 = vmatpush3.bf16.msra.mxu1 %v12321_v24 }
 0xa69   : > { %12326 = vmatprep.subr.bf16.mxu1 %v15994_v22 }
 0xa6b   : > { %11964 = vmatmul.mubr.f32.gmra.mrb[44].mxu1 %v9447_v45 }
 0xaee   : > { %v11939_v14 = vpop.f32.mrb[40].mxu0 }
 0xaef   : > { %v12413_v4 = vadd.f32 %v11939_v14, %v8475_v43  ;;  %v9220_v35 = vpop.f32.mrb[41].mxu0 }
 0xaf0   : > { %v12414_v18 = vadd.f32 %v9220_v35, %v8474_v16 }
 0xaf1   : > { %v9267_v7 = vmul.f32 %v15815_v20, %v12413_v4 }
 0xaf2   : > { %v11942_v12 = vpop.f32.mrb[42].mxu0  ;;  %v9266_v40 = vmul.f32 %v15791_v26, %v12414_v18 }
 0xaf3   : > { %v12415_v38 = vadd.f32 %v11942_v12, %v8477_v61  ;;  %v9232_v23 = vpop.f32.mrb[43].mxu0 }
 0xaf4   : > { %v12416_v42 = vadd.f32 %v9232_v23, %v8476_v54 }
 0xaf5   : > { %v9269_v1 = vmul.f32 %v15842_v10, %v12415_v38  ;;  %v8480_v10 = vmul.f32 %v16085_v13, %v15767_v34 }
 0xaf6   : > { %v9268_v48 = vmul.f32 %v15809_v6, %v12416_v42  ;;  %v11945_v24 = vpop.f32.mrb[44].mxu0 }
 0xaf7   : > { %v9275_v31 = vadd.f32 %v9269_v1, %v9267_v7  ;;  %v12417_v25 = vadd.f32 %v11945_v24, %v8479_v50  ;;  %v9244_v45 = vpop.f32.mrb[45].mxu0 }
 0xaf8   : > { %v9274_v43 = vadd.f32 %v9268_v48, %v9266_v40  ;;  %v12418_v16 = vadd.f32 %v9244_v45, %v8478_v53 }
 0xaf9   : > { %v9271_v20 = vmul.f32 %v15867_v41, %v12417_v25 }
 0xafa   : > { %v9270_v51 = vmul.f32 %v15848_v52, %v12418_v16  ;;  %v11948_v14 = vpop.f32.mrb[46].mxu0 }
 0xafb   : > { %v9277_v26 = vadd.f32 %v9275_v31, %v9271_v20  ;;  %v12419_v4 = vadd.f32 %v11948_v14, %v8481_v3  ;;  %v9256_v6 = vpop.f32.mrb[47].mxu0 }
 0xafc   : > { %v9276_v35 = vadd.f32 %v9274_v43, %v9270_v51  ;;  %v12420_v18 = vadd.f32 %v9256_v6, %v8480_v10 }
 0xafd   : > { %v9273_v61 = vmul.f32 %v15915_v49, %v12419_v4 }
 0xafe   : > { %v9272_v54 = vmul.f32 %v15873_v56, %v12420_v18 }
 0xaff   : > { %v9279_v12 = vadd.f32 %v9277_v26, %v9273_v61 }
 0xb00   : > { %v9278_v38 = vadd.f32 %v9276_v35, %v9272_v54 }
 0xb01   : > { %v9322_v36 = vsel %vm264_vm0, %v9279_v12, 0 }
 0xb02   : > { %v16160_v41 = vand.u32 4294901760, %v9322_v36  ;;  %v9319_v34 = vsel %vm264_vm0, %v9278_v38, 0 }
 0xb03   : > { %v16163_v13 = vand.u32 4294901760, %v9319_v34 }
 0xb04   : > { %v9464_v52 = vsub.f32 %v9322_v36, %v16160_v41 }
 0xb05   : > { %v9454_v23 = vsub.f32 %v9319_v34, %v16163_v13 }
 0xb06   : > { %v9465_v42 = vand.u32 4294901760, %v9464_v52 }
 0xb07   : > { %v9455_v50 = vand.u32 4294901760, %v9454_v23 }
 0xb08   : > { %v9466_v7 = vsub.f32 %v9464_v52, %v9465_v42 }
 0xb09   : > { %v9456_v49 = vsub.f32 %v9454_v23, %v9455_v50 }
 0xb0a   : > { %v9467_v56 = vand.u32 4294901760, %v9466_v7 }
 0xb0b   : > { %v9457_v1 = vand.u32 4294901760, %v9456_v49 }
 0xb0d   : > { %11966 = vmatprep.mubr.f32.mxu1 %v9457_v1 }
 0xb0e   : > { %11967 = vmatmul.mubr.f32.gmra.mrb[46].mxu1 %v9467_v56 }
 0xb0f   : > { %11977 = vmatprep.mubr.f32.mxu1 %v15898_v9 }
 0xb12   : > { %11978 = vmatmul.mubr.f32.vlgmr.msra.gmra.mrb[40].mxu1 %v16070_v59 }
 0xb13   : > { %12328 = vmatpush3.bf16.msra.mxu1 %v15994_v22  ;;  %11980 = vmatprep.mubr.f32.mxu1 %v16075_v2  ;;  %v12341_v22 = vpack.c.bf16 %v9483_v0, %v9476_v30 }
 0xb14   : > { %12330 = vmatprep.subr.bf16.mxu1 %v12329_v15 }
 0xb16   : > { %11981 = vmatmul.mubr.f32.gmra.mrb[42].mxu1 %v16083_v37 }
 0xb17   : > { %12332 = vmatpush3.bf16.msra.mxu1 %v12329_v15  ;;  %11983 = vmatprep.mubr.f32.mxu1 %v16088_v58 }
 0xb18   : > { %12334 = vmatprep.subr.bf16.mxu1 %v15966_v55 }
 0xb1a   : > { %11984 = vmatmul.mubr.f32.gmra.mrb[44].mxu1 %v16096_v33 }
 0xb1b   : > { %11986 = vmatprep.mubr.f32.mxu1 %v16163_v13 }
 0xb1e   : > { %11987 = vmatmul.mubr.f32.gmra.mrb[46].mxu1 %v16160_v41 }
 0xb1f   : > { %11997 = vmatprep.mubr.f32.mxu1 %v15930_v46  ;;  %v9282_v46 = vsub.s32 4, %v16510_v17 }
 0xb22   : > { %11998 = vmatmul.mubr.f32.vlgmr.msra.gmra.mrb[40].mxu1 %v16080_v19 }
 0xb23   : > { %12336 = vmatpush3.bf16.msra.mxu1 %v15966_v55  ;;  %12000 = vmatprep.mubr.f32.mxu1 %v16093_v39 }
 0xb24   : > { %12338 = vmatprep.subr.bf16.mxu1 %v16111_v63 }
 0xb26   : > { %12001 = vmatmul.mubr.f32.gmra.mrb[42].mxu1 %v16099_v47 }
 0xb27   : > { %12340 = vmatpush3.bf16.msra.mxu1 %v16111_v63  ;;  %12003 = vmatprep.mubr.f32.mxu1 %v16102_v44 }
 0xb28   : > { %12342 = vmatprep.subr.bf16.mxu1 %v12341_v22 }
 0xb2a   : > { %12004 = vmatmul.mubr.f32.gmra.mrb[44].mxu1 %v16109_v32 }
 0xb2b   : > { %12006 = vmatprep.mubr.f32.mxu1 %v9454_v23 }
 0xb2e   : > { %12007 = vmatmul.mubr.f32.gmra.mrb[46].mxu1 %v9464_v52 }
 0xb2f   : > { %12017 = vmatprep.mubr.f32.mxu1 %v9395_v27  ;;  %v9283_v27 = vrot.slane %v15762_v57, %v9282_v46 }
 0xb32   : > { %12018 = vmatmul.mubr.f32.vlgmr.msra.gmra.mrb[40].mxu1 %v9405_v29 }
 0xb33   : > { %12344 = vmatpush3.bf16.msra.mxu1 %v12341_v22  ;;  %12020 = vmatprep.mubr.f32.mxu1 %v9415_v62 }
 0xb34   : > { %12346 = vmatprep.subr.bf16.mxu1 %v16133_v5 }
 0xb36   : > { %12021 = vmatmul.mubr.f32.gmra.mrb[42].mxu1 %v9425_v8 }
 0xb37   : > { %12348 = vmatpush3.bf16.msra.mxu1 %v16133_v5  ;;  %12023 = vmatprep.mubr.f32.mxu1 %v9435_v11 }
 0xb38   : > { %12350 = vmatprep.subr.bf16.mxu1 %v15966_v55 }
 0xb3a   : > { %12024 = vmatmul.mubr.f32.gmra.mrb[44].mxu1 %v9445_v60 }
 0xb3b   : > { %12026 = vmatprep.mubr.f32.mxu1 %v9455_v50 }
 0xb3e   : > { %12027 = vmatmul.mubr.f32.gmra.mrb[46].mxu1 %v9465_v42 }
 0xb3f   : > { %12037 = vmatprep.mubr.f32.mxu1 %v15898_v9 }
 0xb42   : > { %12038 = vmatmul.mubr.f32.vlgmr.msra.gmra.mrb[40].mxu1 %v16070_v59 }
 0xb43   : > { %12352 = vmatpush3.bf16.msra.mxu1 %v15966_v55  ;;  %12040 = vmatprep.mubr.f32.mxu1 %v16075_v2 }
 0xb44   : > { %12354 = vmatprep.subr.bf16.mxu1 %v16111_v63 }
 0xb46   : > { %12041 = vmatmul.mubr.f32.gmra.mrb[42].mxu1 %v16083_v37 }
 0xb47   : > { %12356 = vmatpush3.bf16.msra.mxu1 %v16111_v63  ;;  %12043 = vmatprep.mubr.f32.mxu1 %v16088_v58 }
 0xb4a   : > { %12044 = vmatmul.mubr.f32.gmra.mrb[44].mxu1 %v16096_v33 }
 0xb4b   : > { %12046 = vmatprep.mubr.f32.mxu1 %v16163_v13 }
 0xb4e   : > { %12047 = vmatmul.mubr.f32.gmra.mrb[46].mxu1 %v16160_v41 }
 0xb4f   : > { %12057 = vmatprep.mubr.f32.mxu1 %v15898_v9 }
 0xb52   : > { %12058 = vmatmul.mubr.f32.vlgmr.msra.gmra.mrb[40].mxu1 %v16070_v59 }
 0xb53   : > { %12060 = vmatprep.mubr.f32.mxu1 %v16075_v2 }
 0xb56   : > { %12061 = vmatmul.mubr.f32.gmra.mrb[42].mxu1 %v16083_v37 }
 0xb57   : > { %12063 = vmatprep.mubr.f32.mxu1 %v16088_v58 }
 0xb5a   : > { %12064 = vmatmul.mubr.f32.gmra.mrb[44].mxu1 %v16096_v33 }
 0xb5b   : > { %12066 = vmatprep.mubr.f32.mxu1 %v16163_v13 }
 0xb5e   : > { %12067 = vmatmul.mubr.f32.gmra.mrb[46].mxu1 %v16160_v41 }
 0xc25   : > { %v12059_v9 = vpop.f32.mrb[40].mxu1 }
 0xc26   : > { %v12421_v21 = vadd.f32 %v12059_v9, %v9283_v27  ;;  %v10064_v55 = vpop.f32.mrb[41].mxu1 }
 0xc27   : > { %v12422_v28 = vadd.f32 %v10064_v55, %v9283_v27 }
 0xc28   : > { %10111 = vst.msk [vmem:[%s217_s9 + $0x8] sm:$0xff] %vm264_vm0, %v12421_v21 }
 0xc29   : > { %10110 = vst.msk [vmem:[%s217_s9] sm:$0xff] %vm264_vm0, %v12422_v28  ;;  %v12062_v30 = vpop.f32.mrb[42].mxu1 }
 0xc2a   : > { %v12423_v0 = vadd.f32 %v12062_v30, %v9283_v27  ;;  %v10076_v59 = vpop.f32.mrb[43].mxu1 }
 0xc2b   : > { %v12424_v2 = vadd.f32 %v10076_v59, %v9283_v27 }
 0xc2c   : > { %10113 = vst.msk [vmem:[%s217_s9 + $0x18] sm:$0xff] %vm264_vm0, %v12423_v0 }
 0xc2d   : > { %10112 = vst.msk [vmem:[%s217_s9 + $0x10] sm:$0xff] %vm264_vm0, %v12424_v2  ;;  %v12065_v57 = vpop.f32.mrb[44].mxu1 }
 0xc2e   : > { %v12425_v17 = vadd.f32 %v12065_v57, %v9283_v27  ;;  %v10088_v19 = vpop.f32.mrb[45].mxu1 }
 0xc2f   : > { %v12426_v37 = vadd.f32 %v10088_v19, %v9283_v27 }
 0xc30   : > { %10115 = vst.msk [vmem:[%s217_s9 + $0x28] sm:$0xff] %vm264_vm0, %v12425_v17 }
 0xc31   : > { %10114 = vst.msk [vmem:[%s217_s9 + $0x20] sm:$0xff] %vm264_vm0, %v12426_v37  ;;  %v12068_v58 = vpop.f32.mrb[46].mxu1 }
 0xc32   : > { %v12427_v39 = vadd.f32 %v12068_v58, %v9283_v27  ;;  %v10100_v29 = vpop.f32.mrb[47].mxu1 }
 0xc33   : > { %v12428_v33 = vadd.f32 %v10100_v29, %v9283_v27 }
 0xc34   : > { %10117 = vst.msk [vmem:[%s217_s9 + $0x38] sm:$0xff] %vm264_vm0, %v12427_v39 }
 0xc35   : > { %10116 = vst.msk [vmem:[%s217_s9 + $0x30] sm:$0xff] %vm264_vm0, %v12428_v33 }
 0xc36 PF: > { %s14_s15 = sadd.s32 1, %s13078_s15  }
 0xc37   : > { %p11_p4 = scmp.ge.s32.totalorder %s14_s15, 4  }
 0xc39   :  { %13 = sbr.rel (!%p11_p4) target bundleno = 1 (0x1), region = 69 }

</bundles_post_ra>
